<compile_context>
chip_gen: v7x
topology: tpu7x:2x2x1
jax: 0.10.0
libtpu: 0.0.40
codegen_flags: <defaults>
</compile_context>

<pallas_src>
import functools

import jax
import jax.numpy as jnp
from jax import lax
from jax.experimental import pallas as pl
from jax.experimental.pallas import tpu as pltpu

WINDOW = 11
C1 = 0.01 ** 2
C2 = 0.03 ** 2


def _round_up8(x):
    return ((x + 7) // 8) * 8


def _band_matrix(n, pad, dtype=jnp.float32):
    """(n, n) 0/1 band: band[k, j] = 1 iff |k - j| <= pad.

    Right-multiplying by this band implements a zero-padded
    (count_include_pad=True) sliding-window sum along the lane axis.
    """
    idx = jnp.arange(n, dtype=jnp.int32)
    return (jnp.abs(idx[:, None] - idx[None, :]) <= pad).astype(dtype)


def _ssim_partial_kernel(pred_ref, targ_ref, band_w_ref, out_ref, halo_ref, *, win):
    """Per-block SSIM partial sums.

    pred_ref / targ_ref : (Tb, H, W)  unpadded f32 planes in VMEM.
    band_w_ref          : (W, W)      shared 0/1 band (fetched once).
    out_ref             : (Tb, 1, W)  per-plane, per-column sums of the SSIM map.
    halo_ref            : (5*Tb, H + 2*pad_top, W) VMEM scratch (vertical pass).
    """
    p = pred_ref[...]
    t = targ_ref[...]
    tb, h, w = p.shape
    pad = win // 2
    pad_top = _round_up8(pad)          # aligned halo so the big store is unmasked
    inv_n = 1.0 / float(win * win)
    ptb = 5 * tb

    # ---- Stack the five pooled quantities along the plane axis -------------
    xs = jnp.concatenate([p, t, p * p, t * t, p * t], axis=0)        # (5Tb, H, W)

    # ---- Horizontal zero-padded window sum: one flat MXU matmul ------------
    #   (5*Tb*H, W) @ (W, W) band, weight-stationary, f32 multi-pass.
    hs = jnp.dot(
        xs.reshape(ptb * h, w),
        band_w_ref[...],
        preferred_element_type=jnp.float32,
        precision=lax.Precision.HIGHEST,
    ).reshape(ptb, h, w)

    # ---- Vertical zero-padded window sum: separable shifted-add ------------
    # Halo layout: rows [0, pad_top) and [pad_top+H, end) are zero, the middle
    # holds hs.  Output row i then sums input rows i-pad .. i+pad with zeros
    # outside the image -- exactly count_include_pad=True pooling.
    zeros_pad = jnp.zeros((ptb, pad_top, w), jnp.float32)
    halo_ref[:, :pad_top, :] = zeros_pad
    halo_ref[:, pad_top + h:, :] = zeros_pad
    halo_ref[:, pad_top:pad_top + h, :] = hs

    base = pad_top - pad
    vs = halo_ref[:, base:base + h, :]
    for d in range(1, win):
        vs = vs + halo_ref[:, base + d:base + d + h, :]
    ws = vs * inv_n                                                   # window means

    mu1 = ws[0 * tb:1 * tb]
    mu2 = ws[1 * tb:2 * tb]
    e_pp = ws[2 * tb:3 * tb]
    e_tt = ws[3 * tb:4 * tb]
    e_pt = ws[4 * tb:5 * tb]

    mu1_sq = mu1 * mu1
    mu2_sq = mu2 * mu2
    mu1_mu2 = mu1 * mu2
    sigma1_sq = e_pp - mu1_sq
    sigma2_sq = e_tt - mu2_sq
    sigma12 = e_pt - mu1_mu2

    num = (2.0 * mu1_mu2 + C1) * (2.0 * sigma12 + C2)
    den = (mu1_sq + mu2_sq + C1) * (sigma1_sq + sigma2_sq + C2)

    # EUP approx reciprocal + one Newton refinement (~2^-24 rel err): keeps the
    # divide off the VPU while staying far inside the 1e-5 tolerance.
    r = pl.reciprocal(den, approx=True)
    r = r * (2.0 - den * r)
    ssim = num * r

    # Reduce over the row (sublane) axis -> tiny per-plane partials.
    out_ref[...] = jnp.sum(ssim, axis=1, keepdims=True)


def _vmem_config():
    """Generation-aware VMEM sizing (budget for Tb, and the Mosaic limit)."""
    try:
        cap = int(pltpu.get_tpu_info().vmem_capacity_bytes)
    except Exception:
        cap = 64 * 1024 * 1024          # conservative (v7x-sized) fallback
    budget = max(4 << 20, min(cap // 3, 40 << 20))       # ~21 MiB v7x, 40 MiB v5e/v6e
    limit = max(32 << 20, min((cap * 3) // 4, 96 << 20))  # ~48 MiB v7x, 96 MiB v5e/v6e
    return budget, limit


def _pick_tb(n, h, w, budget_bytes, win):
    """Planes per grid step: largest divisor of n that fits the VMEM budget
    and keeps >= 2 grid steps so the plane axis shards across TensorCores."""
    pad_top = _round_up8(win // 2)
    # Conservative count of live f32 plane-sized buffers per plane:
    #   2 inputs x 2 pipeline buffers, stacked/hsum/wsum values, halo scratch,
    #   and the elementwise epilogue temporaries.
    per_plane = (40 * h * w + 5 * (h + 2 * pad_top) * w) * 4
    tb_max = max(1, int(budget_bytes // per_plane))
    cap = min(tb_max, max(1, n // 2)) if n >= 2 else 1
    cap = max(1, min(cap, n))
    best = 1
    for d in range(1, cap + 1):
        if n % d == 0:
            best = d
    return best


def ssim_loss(pred, target, *, window_size=WINDOW, size_average=True):
    """Pallas implementation of SSIMLoss.forward (NCHW inputs)."""
    assert pred.shape == target.shape
    B, C, H, W = pred.shape
    N = B * C
    pad = window_size // 2
    pad_top = _round_up8(pad)

    pred_f = pred.reshape(N, H, W).astype(jnp.float32)
    targ_f = target.reshape(N, H, W).astype(jnp.float32)
    band_w = _band_matrix(W, pad)

    budget, vmem_limit = _vmem_config()
    tb = _pick_tb(N, H, W, budget, window_size)
    g = N // tb                                   # tb divides N -> no input padding

    kernel = functools.partial(_ssim_partial_kernel, win=window_size)

    partials = pl.pallas_call(
        kernel,
        out_shape=jax.ShapeDtypeStruct((N, 1, W), jnp.float32),
        grid_spec=pltpu.PrefetchScalarGridSpec(
            num_scalar_prefetch=0,
            grid=(g,),
            in_specs=[
                pl.BlockSpec((tb, H, W), lambda i: (i, 0, 0)),
                pl.BlockSpec((tb, H, W), lambda i: (i, 0, 0)),
                # Constant block index -> fetched once, stays resident in VMEM.
                pl.BlockSpec((W, W), lambda i: (0, 0)),
            ],
            out_specs=pl.BlockSpec((tb, 1, W), lambda i: (i, 0, 0)),
            scratch_shapes=[
                pltpu.VMEM((5 * tb, H + 2 * pad_top, W), jnp.float32),
            ],
        ),
        compiler_params=pltpu.CompilerParams(
            dimension_semantics=("parallel",),
            vmem_limit_bytes=vmem_limit,
        ),
    )(pred_f, targ_f, band_w)

    plane_sums = partials.sum(axis=(1, 2))        # (N,) sum of the SSIM map per plane
    if size_average:
        return 1.0 - plane_sums.sum() / (N * H * W)
    per_image = plane_sums.reshape(B, C).sum(axis=1) / (C * H * W)
    return 1.0 - per_image


def _ssim_loss_ref(pred, target, *, window_size=WINDOW):
    """Pure-JAX reference reproducing torch avg_pool2d(count_include_pad=True)."""
    pad = window_size // 2
    n = float(window_size * window_size)

    def avg_pool(x):
        s = lax.reduce_window(
            x, 0.0, lax.add,
            window_dimensions=(1, 1, window_size, window_size),
            window_strides=(1, 1, 1, 1),
            padding=((0, 0), (0, 0), (pad, pad), (pad, pad)),
        )
        return s / n

    mu1 = avg_pool(pred)
    mu2 = avg_pool(target)
    mu1_sq, mu2_sq, mu1_mu2 = mu1 * mu1, mu2 * mu2, mu1 * mu2
    sigma1_sq = avg_pool(pred * pred) - mu1_sq
    sigma2_sq = avg_pool(target * target) - mu2_sq
    sigma12 = avg_pool(pred * target) - mu1_mu2
    ssim_map = ((2 * mu1_mu2 + C1) * (2 * sigma12 + C2)
                / ((mu1_sq + mu2_sq + C1) * (sigma1_sq + sigma2_sq + C2)))
    return 1.0 - ssim_map.mean()


if __name__ == "__main__":
    key = jax.random.PRNGKey(0)
    k1, k2 = jax.random.split(key)
    B, C, H, W = 2, 4, 16, 16
    pred = jax.random.uniform(k1, (B, C, H, W), dtype=jnp.float32)
    target = jax.random.uniform(k2, (B, C, H, W), dtype=jnp.float32)

    loss = jax.jit(ssim_loss)(pred, target)
    jax.block_until_ready(loss)

    ref = _ssim_loss_ref(pred, target)
    assert jnp.allclose(loss, ref, atol=1e-5, rtol=1e-5), (loss, ref)

    print("KERNEL_OK")
</pallas_src>

<mosaic_0001>
module attributes {stable_mosaic.version = 11 : i64} {
  func.func @_ssim_partial_kernel(%arg0: i32, %arg1: memref<4x16x16xf32, #tpu.memory_space<vmem>>, %arg2: memref<4x16x16xf32, #tpu.memory_space<vmem>>, %arg3: memref<16x16xf32, #tpu.memory_space<vmem>>, %arg4: memref<4x1x16xf32, #tpu.memory_space<vmem>>, %arg5: memref<20x32x16xf32, #tpu.memory_space<vmem>>) attributes {dimension_semantics = [#tpu.dimension_semantics<parallel>], iteration_bounds = array<i64: 2>, scalar_prefetch = 0 : i64, scratch_operands = 1 : i64, tpu.core_type = #tpu.core_type<tc>, window_params = [{transform_indices = @transform_0, window_bounds = array<i64: 4, 16, 16>}, {transform_indices = @transform_1, window_bounds = array<i64: 4, 16, 16>}, {pipeline_mode = #tpu.pipeline_mode<synchronous>, transform_indices = @transform_2, window_bounds = array<i64: 16, 16>}, {transform_indices = @transform_3, window_bounds = array<i64: 4, 1, 16>}]} {
    %c0 = arith.constant 0 : index
    %c0_0 = arith.constant 0 : index
    %c0_1 = arith.constant 0 : index
    %0 = vector.load %arg1[%c0, %c0_0, %c0_1] : memref<4x16x16xf32, #tpu.memory_space<vmem>>, vector<4x16x16xf32>
    %c0_2 = arith.constant 0 : index
    %c0_3 = arith.constant 0 : index
    %c0_4 = arith.constant 0 : index
    %1 = vector.load %arg2[%c0_2, %c0_3, %c0_4] : memref<4x16x16xf32, #tpu.memory_space<vmem>>, vector<4x16x16xf32>
    %2 = arith.mulf %0, %0 : vector<4x16x16xf32>
    %3 = arith.mulf %1, %1 : vector<4x16x16xf32>
    %4 = arith.mulf %0, %1 : vector<4x16x16xf32>
    %5 = tpu.concatenate %0, %1, %2, %3, %4 in 0 : vector<4x16x16xf32>, vector<4x16x16xf32>, vector<4x16x16xf32>, vector<4x16x16xf32>, vector<4x16x16xf32> -> vector<20x16x16xf32>
    %6 = vector.shape_cast %5 : vector<20x16x16xf32> to vector<320x16xf32>
    %c0_5 = arith.constant 0 : index
    %c0_6 = arith.constant 0 : index
    %7 = vector.load %arg3[%c0_5, %c0_6] : memref<16x16xf32, #tpu.memory_space<vmem>>, vector<16x16xf32>
    %cst = arith.constant dense<0.000000e+00> : vector<320x16xf32>
    %8 = tpu.matmul %6, %7, %cst {dimension_numbers = #tpu.dot_dimension_numbers<[1], [0], [0], [1], [0, 0, 1, 1], [], []>, precision = #tpu.contract_precision<fp32>} : vector<320x16xf32>, vector<16x16xf32>, vector<320x16xf32> -> vector<320x16xf32>
    %9 = vector.shape_cast %8 : vector<320x16xf32> to vector<20x16x16xf32>
    %cst_7 = arith.constant 0.000000e+00 : f32
    %10 = vector.broadcast %cst_7 : f32 to vector<20x8x16xf32>
    %c0_8 = arith.constant 0 : index
    %c0_9 = arith.constant 0 : index
    %c0_10 = arith.constant 0 : index
    %11 = vector.load %arg5[%c0_8, %c0_9, %c0_10] : memref<20x32x16xf32, #tpu.memory_space<vmem>>, vector<20x8x16xf32>
    tpu.vector_store %arg5[%c0_8, %c0_9, %c0_10], %10 {strides = array<i32>} : memref<20x32x16xf32, #tpu.memory_space<vmem>>, vector<20x8x16xf32>,
    %c0_11 = arith.constant 0 : index
    %c24 = arith.constant 24 : index
    %c0_12 = arith.constant 0 : index
    %12 = vector.load %arg5[%c0_11, %c24, %c0_12] : memref<20x32x16xf32, #tpu.memory_space<vmem>>, vector<20x8x16xf32>
    tpu.vector_store %arg5[%c0_11, %c24, %c0_12], %10 {strides = array<i32>} : memref<20x32x16xf32, #tpu.memory_space<vmem>>, vector<20x8x16xf32>,
    %c0_13 = arith.constant 0 : index
    %c8 = arith.constant 8 : index
    %c0_14 = arith.constant 0 : index
    %13 = vector.load %arg5[%c0_13, %c8, %c0_14] : memref<20x32x16xf32, #tpu.memory_space<vmem>>, vector<20x16x16xf32>
    tpu.vector_store %arg5[%c0_13, %c8, %c0_14], %9 {strides = array<i32>} : memref<20x32x16xf32, #tpu.memory_space<vmem>>, vector<20x16x16xf32>,
    %c0_15 = arith.constant 0 : index
    %c3 = arith.constant 3 : index
    %c0_16 = arith.constant 0 : index
    %14 = vector.load %arg5[%c0_15, %c3, %c0_16] : memref<20x32x16xf32, #tpu.memory_space<vmem>>, vector<20x16x16xf32>
    %c0_17 = arith.constant 0 : index
    %c4 = arith.constant 4 : index
    %c0_18 = arith.constant 0 : index
    %15 = vector.load %arg5[%c0_17, %c4, %c0_18] : memref<20x32x16xf32, #tpu.memory_space<vmem>>, vector<20x16x16xf32>
    %16 = arith.addf %14, %15 : vector<20x16x16xf32>
    %c0_19 = arith.constant 0 : index
    %c5 = arith.constant 5 : index
    %c0_20 = arith.constant 0 : index
    %17 = vector.load %arg5[%c0_19, %c5, %c0_20] : memref<20x32x16xf32, #tpu.memory_space<vmem>>, vector<20x16x16xf32>
    %18 = arith.addf %16, %17 : vector<20x16x16xf32>
    %c0_21 = arith.constant 0 : index
    %c6 = arith.constant 6 : index
    %c0_22 = arith.constant 0 : index
    %19 = vector.load %arg5[%c0_21, %c6, %c0_22] : memref<20x32x16xf32, #tpu.memory_space<vmem>>, vector<20x16x16xf32>
    %20 = arith.addf %18, %19 : vector<20x16x16xf32>
    %c0_23 = arith.constant 0 : index
    %c7 = arith.constant 7 : index
    %c0_24 = arith.constant 0 : index
    %21 = vector.load %arg5[%c0_23, %c7, %c0_24] : memref<20x32x16xf32, #tpu.memory_space<vmem>>, vector<20x16x16xf32>
    %22 = arith.addf %20, %21 : vector<20x16x16xf32>
    %c0_25 = arith.constant 0 : index
    %c8_26 = arith.constant 8 : index
    %c0_27 = arith.constant 0 : index
    %23 = vector.load %arg5[%c0_25, %c8_26, %c0_27] : memref<20x32x16xf32, #tpu.memory_space<vmem>>, vector<20x16x16xf32>
    %24 = arith.addf %22, %23 : vector<20x16x16xf32>
    %c0_28 = arith.constant 0 : index
    %c9 = arith.constant 9 : index
    %c0_29 = arith.constant 0 : index
    %25 = vector.load %arg5[%c0_28, %c9, %c0_29] : memref<20x32x16xf32, #tpu.memory_space<vmem>>, vector<20x16x16xf32>
    %26 = arith.addf %24, %25 : vector<20x16x16xf32>
    %c0_30 = arith.constant 0 : index
    %c10 = arith.constant 10 : index
    %c0_31 = arith.constant 0 : index
    %27 = vector.load %arg5[%c0_30, %c10, %c0_31] : memref<20x32x16xf32, #tpu.memory_space<vmem>>, vector<20x16x16xf32>
    %28 = arith.addf %26, %27 : vector<20x16x16xf32>
    %c0_32 = arith.constant 0 : index
    %c11 = arith.constant 11 : index
    %c0_33 = arith.constant 0 : index
    %29 = vector.load %arg5[%c0_32, %c11, %c0_33] : memref<20x32x16xf32, #tpu.memory_space<vmem>>, vector<20x16x16xf32>
    %30 = arith.addf %28, %29 : vector<20x16x16xf32>
    %c0_34 = arith.constant 0 : index
    %c12 = arith.constant 12 : index
    %c0_35 = arith.constant 0 : index
    %31 = vector.load %arg5[%c0_34, %c12, %c0_35] : memref<20x32x16xf32, #tpu.memory_space<vmem>>, vector<20x16x16xf32>
    %32 = arith.addf %30, %31 : vector<20x16x16xf32>
    %c0_36 = arith.constant 0 : index
    %c13 = arith.constant 13 : index
    %c0_37 = arith.constant 0 : index
    %33 = vector.load %arg5[%c0_36, %c13, %c0_37] : memref<20x32x16xf32, #tpu.memory_space<vmem>>, vector<20x16x16xf32>
    %34 = arith.addf %32, %33 : vector<20x16x16xf32>
    %cst_38 = arith.constant 0.00826446246 : f32
    %35 = vector.broadcast %cst_38 : f32 to vector<20x16x16xf32>
    %36 = arith.mulf %34, %35 : vector<20x16x16xf32>
    %37 = vector.extract_strided_slice %36 {offsets = [0, 0, 0], sizes = [4, 16, 16], strides = [1, 1, 1]} : vector<20x16x16xf32> to vector<4x16x16xf32>
    %38 = vector.extract_strided_slice %36 {offsets = [4, 0, 0], sizes = [4, 16, 16], strides = [1, 1, 1]} : vector<20x16x16xf32> to vector<4x16x16xf32>
    %39 = vector.extract_strided_slice %36 {offsets = [8, 0, 0], sizes = [4, 16, 16], strides = [1, 1, 1]} : vector<20x16x16xf32> to vector<4x16x16xf32>
    %40 = vector.extract_strided_slice %36 {offsets = [12, 0, 0], sizes = [4, 16, 16], strides = [1, 1, 1]} : vector<20x16x16xf32> to vector<4x16x16xf32>
    %41 = vector.extract_strided_slice %36 {offsets = [16, 0, 0], sizes = [4, 16, 16], strides = [1, 1, 1]} : vector<20x16x16xf32> to vector<4x16x16xf32>
    %42 = arith.mulf %37, %37 : vector<4x16x16xf32>
    %43 = arith.mulf %38, %38 : vector<4x16x16xf32>
    %44 = arith.mulf %37, %38 : vector<4x16x16xf32>
    %45 = arith.subf %39, %42 : vector<4x16x16xf32>
    %46 = arith.subf %40, %43 : vector<4x16x16xf32>
    %47 = arith.subf %41, %44 : vector<4x16x16xf32>
    %cst_39 = arith.constant 2.000000e+00 : f32
    %48 = vector.broadcast %cst_39 : f32 to vector<4x16x16xf32>
    %49 = arith.mulf %48, %44 : vector<4x16x16xf32>
    %cst_40 = arith.constant 9.99999974E-5 : f32
    %50 = vector.broadcast %cst_40 : f32 to vector<4x16x16xf32>
    %51 = arith.addf %49, %50 : vector<4x16x16xf32>
    %cst_41 = arith.constant 2.000000e+00 : f32
    %52 = vector.broadcast %cst_41 : f32 to vector<4x16x16xf32>
    %53 = arith.mulf %52, %47 : vector<4x16x16xf32>
    %cst_42 = arith.constant 8.99999984E-4 : f32
    %54 = vector.broadcast %cst_42 : f32 to vector<4x16x16xf32>
    %55 = arith.addf %53, %54 : vector<4x16x16xf32>
    %56 = arith.mulf %51, %55 : vector<4x16x16xf32>
    %57 = arith.addf %42, %43 : vector<4x16x16xf32>
    %cst_43 = arith.constant 9.99999974E-5 : f32
    %58 = vector.broadcast %cst_43 : f32 to vector<4x16x16xf32>
    %59 = arith.addf %57, %58 : vector<4x16x16xf32>
    %60 = arith.addf %45, %46 : vector<4x16x16xf32>
    %cst_44 = arith.constant 8.99999984E-4 : f32
    %61 = vector.broadcast %cst_44 : f32 to vector<4x16x16xf32>
    %62 = arith.addf %60, %61 : vector<4x16x16xf32>
    %63 = arith.mulf %59, %62 : vector<4x16x16xf32>
    %64 = tpu.reciprocal %63 {approx = true} : vector<4x16x16xf32> -> vector<4x16x16xf32>
    %65 = arith.mulf %63, %64 : vector<4x16x16xf32>
    %cst_45 = arith.constant 2.000000e+00 : f32
    %66 = vector.broadcast %cst_45 : f32 to vector<4x16x16xf32>
    %67 = arith.subf %66, %65 : vector<4x16x16xf32>
    %68 = arith.mulf %64, %67 : vector<4x16x16xf32>
    %69 = arith.mulf %56, %68 : vector<4x16x16xf32>
    %cst_46 = arith.constant dense<0.000000e+00> : vector<4x16xf32>
    %70 = vector.multi_reduction <add>, %69, %cst_46 [1] : vector<4x16x16xf32> to vector<4x16xf32>
    %71 = vector.shape_cast %70 : vector<4x16xf32> to vector<4x1x16xf32>
    %c0_47 = arith.constant 0 : index
    %c0_48 = arith.constant 0 : index
    %c0_49 = arith.constant 0 : index
    %72 = vector.load %arg4[%c0_47, %c0_48, %c0_49] : memref<4x1x16xf32, #tpu.memory_space<vmem>>, vector<4x1x16xf32>
    tpu.vector_store %arg4[%c0_47, %c0_48, %c0_49], %71 {strides = array<i32>} : memref<4x1x16xf32, #tpu.memory_space<vmem>>, vector<4x1x16xf32>,
    return
  }
  func.func @transform_0(%arg0: i32) -> (i32, i32, i32) {
    %c0_i32 = arith.constant 0 : i32
    %c0_i32_0 = arith.constant 0 : i32
    %c0_i32_1 = arith.constant 0 : i32
    return %arg0, %c0_i32, %c0_i32_0 : i32, i32, i32
  }
  func.func @transform_1(%arg0: i32) -> (i32, i32, i32) {
    %c0_i32 = arith.constant 0 : i32
    %c0_i32_0 = arith.constant 0 : i32
    %c0_i32_1 = arith.constant 0 : i32
    return %arg0, %c0_i32, %c0_i32_0 : i32, i32, i32
  }
  func.func @transform_2(%arg0: i32) -> (i32, i32) {
    %c0_i32 = arith.constant 0 : i32
    %c0_i32_0 = arith.constant 0 : i32
    %c0_i32_1 = arith.constant 0 : i32
    return %c0_i32, %c0_i32_0 : i32, i32
  }
  func.func @transform_3(%arg0: i32) -> (i32, i32, i32) {
    %c0_i32 = arith.constant 0 : i32
    %c0_i32_0 = arith.constant 0 : i32
    %c0_i32_1 = arith.constant 0 : i32
    return %arg0, %c0_i32, %c0_i32_0 : i32, i32, i32
  }
}

</mosaic_0001>

<bundles_post_ra>
// kernel: ssim_loss.1
= control target key start
LH: loop header
LB: loop body
LE: loop exit
PB: predicated region body
PF: predicated region fallthrough
CT: control target
= control target key end

     0   :  { %8 = vsyncpa [#allocation4], 0  ;;  %s6356_s0 = inlined_call_operand.hbm [shape: f32[8,16,16], index: 0, kind: input, shape index: {}]   ;;  %s6357_s1 = inlined_call_operand.hbm [shape: f32[8,16,16], index: 1, kind: input, shape index: {}]   ;;  %s6358_s2 = inlined_call_operand.vmem [shape: f32[16,16], index: 2, kind: input, shape index: {}]   ;;  %s6359_s3 = inlined_call_operand.vmem [shape: f32[8,1,16], index: 3, kind: output, shape index: {}]  }
   0x1   :  { %10 = vsyncpa [#allocation4 + $0x1], 0 }
   0x2   :  { %11 = vsyncpa [#allocation6], 0 }
   0x3   :  { %13 = vsyncpa [#allocation6 + $0x1], 0  ;;  %s4796_s12 = smov 0   ;;  %s4798_s13 = smov 0  }
   0x4   :  { %s4800_s14 = smov 0   ;;  %s4802_s15 = smov 0  }
   0x5 LB: > { %s3726_s16 = sadd.s32 4294967295, %s4769_s15   ;;  %s4816_s17 = sadd.s32 1, %s4769_s15   ;;  %s4769_s15 = sphi %s4802_s15, %s6616_s15   ;;  %s4765_s14 = sphi %s4800_s14, %s6615_s14   ;;  %s4761_s13 = sphi %s4798_s13, %s6614_s13   ;;  %s4757_s12 = sphi %s4796_s12, %s6613_s12  }
   0x6   : > { %s23_s18 = ssub.s32 %s4769_s15, %s4816_s17  ;;  %s26_s19 = sadd.s32 1, %s4765_s14 }
   0x7   : > { %p24_p0 = scmp.eq.s32.totalorder %s23_s18, 0  ;;  %p33_p1 = scmp.ne.s32.totalorder %s4765_s14, %s4761_s13 }
   0x8   : > { %p34_p2 = scmp.eq.s32.totalorder %s4769_s15, 0  ;;  %p39_p3 = scmp.ne.s32.totalorder %s4761_s13, %s4757_s12 }
   0x9   : > { %s4826_s20 = scalar_select %p24_p0, %s4765_s14, %s26_s19  }
   0xa   : > { %p35_p4 = por %p34_p2, %p33_p1  ;;  %p40_p5 = scmp.eq.s32.totalorder %s3726_s16, 0 }
   0xb   : > { %p4619_p6 = scmp.lt.s32.totalorder %s4769_s15, 2  ;;  %s4836_s22 = sand.u32 1, %s4765_s14  }
   0xc   : > { %p4831_p7 = por %p40_p5, %p39_p3  ;;  %s3730_s23 = sshll.u32 %s4836_s22, 6 }
   0xd   : > { %s3745_s24 = sshll.u32 %s4769_s15, 10  ;;  %s143_s28 = scalar_lea.vmem [#allocation3], %s3730_s23 }
   0xe   : > { %s6435_s21 = scalar_select %p4831_p7, 1, 0 }
   0xf   : > { %s4845_s27 = scalar_lea.hbm %s6356_s0, %s3745_s24  ;;  %s151_s29 = sshll.u32 %s143_s28, 4  ;;  %s4849_s29 = int_to_ptr.vmem [resolvable:$true] %s151_s29 }
  0x10   : > { %p4851_p8 = pnand %p4619_p6, %p35_p4  ;;  %s140_s4 = scalar_lea.sflag [#allocation4], %s4836_s22 }
  0x11   : > { %s4671_s5 = scalar_lea.hbm %s4845_s27, 1024  ;;  %s4676_s8 = scalar_lea.hbm %s6356_s0, 2048 }
  0x12   : > { %p4672_p10 = scmp.ne.s32.totalorder %s4845_s27, %s4671_s5  ;;  %p4673_p11 = pneg %p4851_p8 }
  0x13   : > { %p4677_p0 = scmp.lt.u32.totalorder %s4845_s27, %s6356_s0  ;;  %p4678_p1 = scmp.lt.u32.totalorder %s4676_s8, %s4671_s5 }
  0x14   : > { %p4674_p12 = pnand %p4673_p11, %p4672_p10  ;;  %p4680_p3 = scmp.lt.u32.totalorder %s4671_s5, %s4845_s27 }
  0x15   : > { %p4679_p2 = por %p4678_p1, %p4677_p0 }
  0x16   : > { %p4675_p13 = pneg %p4674_p12 }
  0x17   : > { %p4681_p4 = por %p4680_p3, %p4679_p2 }
  0x19   : > { %p4682_p5 = pnand %p4681_p4, %p4675_p13 }
  0x1b   : > { %4685 = shalt.err (!%p4682_p5)
}
  0x1c   : > { %s4686_s11 = scalar_lea.vmem %s4849_s29, 1024  ;;  %s4771_s12 = smov [#allocation3]  }
  0x1d   : > { %p4687_p6 = scmp.ne.s32.totalorder %s4849_s29, %s4686_s11  ;;  %s4691_s18 = sshll.u32 %s4771_s12, 4  ;;  %s4692_s18 = int_to_ptr.vmem [resolvable:$false] %s4691_s18 }
  0x1e   : > { %s4693_s19 = scalar_lea.vmem %s4692_s18, 2048  ;;  %p4694_p9 = scmp.lt.s32.totalorder %s4849_s29, %s4692_s18 }
  0x1f   : > { %p4689_p10 = pnand %p4687_p6, %p4673_p11  ;;  %p4695_p0 = scmp.lt.s32.totalorder %s4693_s19, %s4686_s11 }
  0x21   : > { %p4690_p12 = pneg %p4689_p10  ;;  %p4696_p1 = por %p4695_p0, %p4694_p9 }
  0x23   : > { %p4697_p2 = pnand %p4696_p1, %p4690_p12 }
  0x25   : > { %4700 = shalt.err (!%p4697_p2)
}
  0x26   : > { %s4772_s25 = smov 128   ;;  %s4773_s26 = smov 8  }
  0x27   : > { %4615 = dma.hbm_to_vmem [thread:$0]  (!%p4851_p8), %s4845_s27, 1024, %s4849_s29, %s140_s4, %s4772_s25, %s4772_s25, %s4773_s26  }
  0x28   : > { %p181_p9 = scmp.lt.s32.totalorder %s4769_s15, 3  ;;  %s4893_s6 = scalar_lea.hbm %s6357_s1, %s3745_s24 }
  0x29   : > { %p6437_p13 = scmp.ge.s32.totalorder %s4769_s15, 1  ;;  %s165_s8 = scalar_lea.vmem [#allocation5], %s3730_s23 }
  0x2a   : > { %s173_s9 = sshll.u32 %s165_s8, 4  ;;  %s162_s27 = scalar_lea.sflag [#allocation6], %s4836_s22  ;;  %s4903_s9 = int_to_ptr.vmem [resolvable:$true] %s173_s9 }
  0x2b   : > { %p4897_p3 = pnand %p6437_p13, %p181_p9  ;;  %s4701_s29 = scalar_lea.hbm %s4893_s6, 1024 }
  0x2c   : > { %p4702_p4 = scmp.ne.s32.totalorder %s4893_s6, %s4701_s29  ;;  %s4706_s10 = scalar_lea.hbm %s6357_s1, 2048 }
  0x2d   : > { %p4707_p10 = scmp.lt.u32.totalorder %s4893_s6, %s6357_s1  ;;  %p4708_p12 = scmp.lt.u32.totalorder %s4706_s10, %s4701_s29 }
  0x2e   : > { %p4704_p5 = pnand %p4702_p4, %p4673_p11  ;;  %p4710_p1 = scmp.lt.u32.totalorder %s4701_s29, %s4893_s6 }
  0x2f   : > { %p4709_p0 = por %p4708_p12, %p4707_p10 }
  0x30   : > { %p4705_p6 = pneg %p4704_p5 }
  0x31   : > { %p4711_p2 = por %p4710_p1, %p4709_p0 }
  0x33   : > { %p4712_p9 = pnand %p4711_p2, %p4705_p6 }
  0x35   : > { %4715 = shalt.err (!%p4712_p9)
}
  0x36   : > { %s4716_s23 = scalar_lea.vmem %s4903_s9, 1024  ;;  %s4774_s18 = smov [#allocation5]  }
  0x37   : > { %p4717_p13 = scmp.ne.s32.totalorder %s4903_s9, %s4716_s23  ;;  %s4721_s19 = sshll.u32 %s4774_s18, 4  ;;  %s4722_s19 = int_to_ptr.vmem [resolvable:$false] %s4721_s19 }
  0x38   : > { %s4723_s28 = scalar_lea.vmem %s4722_s19, 2048  ;;  %p4724_p7 = scmp.lt.s32.totalorder %s4903_s9, %s4722_s19 }
  0x39   : > { %p4719_p4 = pnand %p4717_p13, %p4673_p11  ;;  %p4725_p10 = scmp.lt.s32.totalorder %s4723_s28, %s4716_s23 }
  0x3b   : > { %p4720_p5 = pneg %p4719_p4  ;;  %p4726_p12 = por %p4725_p10, %p4724_p7 }
  0x3d   : > { %p4727_p0 = pnand %p4726_p12, %p4720_p5 }
  0x3f   : > { %4730 = shalt.err (!%p4727_p0)
}
  0x40   : > { %4618 = dma.hbm_to_vmem [thread:$0]  (!%p4851_p8), %s4893_s6, 1024, %s4903_s9, %s162_s27, %s4772_s25, %s4772_s25, %s4773_s26  }
  0x41   : > { %185 = sbr.rel (%p4897_p3) target bundleno = 719 (0x2cf), region = 32 }
  0x48   : > { %s187_s5 = sand.u32 1, %s4761_s13   ;;  %p6439_p7 = scmp.ne.s32.totalorder %s6435_s21, 0 }
  0x49   : > { %s3739_s8 = sshll.u32 %s187_s5, 6  ;;  %s188_s29 = scalar_lea.sflag [#allocation4], %s187_s5 }
  0x4a   : > { %s4937_s24 = scalar_lea.vmem [#allocation3], %s3739_s8 }
  0x4b   : > { %4748 = dma.done.wait (%p6439_p7), %s188_s29, 1024  }
  0x4c   : > { %4750 = vsyncadd (%p6439_p7), %s188_s29, 4294966272  ;;  %s197_s22 = scalar_lea.sflag [#allocation6], %s187_s5  ;;  %s4943_s30 = scalar_lea.vmem [#allocation5], %s3739_s8 }
  0x4d   : > { %4752 = dma.done.wait (%p6439_p7), %s197_s22, 1024  }
  0x4e   : > { %4754 = vsyncadd (%p6439_p7), %s197_s22, 4294966272  ;;  %vm276_vm0 = vcmask 130048   ;;  %v274_v0 = vld [vmem:[%s6358_s2] sm:$0xff]  ;;  %v275_v1 = vld [vmem:[%s6358_s2 + $0x8] sm:$0xff]  ;;  %s6289_s21 = sshll.u32 %s3726_s16, 2  ;;  %vm3637_vm1 = vcmask 122880  }
  0x4f   : > { %v4956_v2 = vld [vmem:[%s4937_s24] sm:$0xff]  ;;  %v398_v3 = vand.u32 4294901760, %v274_v0  ;;  %v401_v4 = vand.u32 4294901760, %v275_v1  ;;  %v4961_v6 = vld [vmem:[%s4937_s24 + $0x8] sm:$0xff]  ;;  %v4964_v7 = vld [vmem:[%s4937_s24 + $0x10] sm:$0xff]  ;;  %p230_p8 = scmp.lt.s32.totalorder %s6289_s21, 7 }
  0x50   : > { %v278_v5 = vsel %vm276_vm0, %v4956_v2, 0  ;;  %v4967_v8 = vld [vmem:[%s4937_s24 + $0x18] sm:$0xff]  ;;  %v4971_v9 = vmul.f32 %v4956_v2, %v4956_v2  ;;  %v281_v11 = vsel %vm276_vm0, %v4961_v6, 0  ;;  %v284_v12 = vsel %vm276_vm0, %v4964_v7, 0  ;;  %v4982_v14 = vld [vmem:[%s4937_s24 + $0x20] sm:$0xff]  ;;  %v4993_v19 = vld [vmem:[%s4937_s24 + $0x28] sm:$0xff] }
  0x51   : > { %v4973_v10 = vand.u32 4294901760, %v278_v5  ;;  %v287_v13 = vsel %vm276_vm0, %v4967_v8, 0  ;;  %v4984_v15 = vpack.c.bf16 %v401_v4, %v398_v3  ;;  %v4986_v16 = vand.u32 4294901760, %v281_v11  ;;  %v5034_v40 = vld [vmem:[%s4937_s24 + $0x30] sm:$0xff]  ;;  %v5043_v49 = vld [vmem:[%s4937_s24 + $0x38] sm:$0xff]  ;;  %v5046_v50 = vld [vmem:[%s4943_s30] sm:$0xff] }
  0x52   : > { %v4988_v17 = vand.u32 4294901760, %v284_v12  ;;  %v4990_v18 = vsub.f32 %v274_v0, %v398_v3  ;;  %v4998_v21 = vsub.f32 %v275_v1, %v401_v4  ;;  %v5000_v22 = vand.u32 4294901760, %v287_v13  ;;  %v5049_v51 = vld [vmem:[%s4943_s30 + $0x8] sm:$0xff]  ;;  %v5060_v60 = vld [vmem:[%s4943_s30 + $0x10] sm:$0xff]  ;;  %v5063_v61 = vld [vmem:[%s4943_s30 + $0x18] sm:$0xff]  ;;  %s6618_s21 = smov (!%p230_p8, %s6289_s21), 7 }
  0x53   : > { %v4996_v20 = vsub.f32 %v278_v5, %v4973_v10  ;;  %v290_v23 = vsel %vm276_vm0, %v4982_v14, 0  ;;  %4397 = vmatprep.subr.bf16.mxu0 %v4984_v15  ;;  %4385 = vmatprep.subr.bf16.mxu1 %v4984_v15  ;;  %v5007_v24 = vsub.f32 %v281_v11, %v4986_v16  ;;  %v293_v31 = vsel %vm276_vm0, %v4993_v19, 0  ;;  %v5066_v62 = vld [vmem:[%s4943_s30 + $0x20] sm:$0xff]  ;;  %s6313_s9 = scalar_lea.vmem %s6359_s3, %s6618_s21 }
  0x54   : > { %v5010_v25 = vsub.f32 %v284_v12, %v4988_v17  ;;  %v867_v26 = vand.u32 4294901760, %v4990_v18  ;;  %v5013_v27 = vand.u32 4294901760, %v290_v23  ;;  %4399 = vmatpush3.bf16.msra.mxu0 %v4984_v15  ;;  %4387 = vmatpush3.bf16.msra.mxu1 %v4984_v15  ;;  %v874_v29 = vand.u32 4294901760, %v4998_v21 }
  0x55   : > { %6440 = vst [vmem:[#allocation9_spill] sm:$0xff] %v4996_v20  ;;  %6441 = vst [vmem:[#allocation10_spill] sm:$0xff] %v5007_v24  ;;  %v466_v28 = vand.u32 4294901760, %v4996_v20  ;;  %v5020_v30 = vsub.f32 %v287_v13, %v5000_v22  ;;  %v476_v32 = vand.u32 4294901760, %v5007_v24  ;;  %v5040_v48 = vand.u32 4294901760, %v293_v31 }
  0x56   : > { %6442 = vst [vmem:[#allocation11_spill] sm:$0xff] %v5010_v25  ;;  %v486_v33 = vand.u32 4294901760, %v5010_v25  ;;  %v868_v34 = vsub.f32 %v4990_v18, %v867_v26  ;;  %v5028_v35 = vsub.f32 %v290_v23, %v5013_v27  ;;  %v875_v37 = vsub.f32 %v4998_v21, %v874_v29 }
  0x57   : > { %6443 = vst [vmem:[#allocation12_spill] sm:$0xff] %v5020_v30  ;;  %4196 = vmatprep.mubr.f32.mxu0 %v466_v28  ;;  %v467_v36 = vsub.f32 %v4996_v20, %v466_v28  ;;  %v496_v38 = vand.u32 4294901760, %v5020_v30  ;;  %v4400_v39 = vpack.c.bf16 %v874_v29, %v867_v26  ;;  %v477_v41 = vsub.f32 %v5007_v24, %v476_v32 }
  0x58   : > { %6444 = vst [vmem:[#allocation13_spill] sm:$0xff] %v5028_v35  ;;  %4197 = vmatmul.mubr.f32.vlgmr.msra.gmra.mrb[0].mxu0 %v476_v32  ;;  %v869_v42 = vand.u32 4294901760, %v868_v34  ;;  %v487_v43 = vsub.f32 %v5010_v25, %v486_v33  ;;  %v506_v44 = vand.u32 4294901760, %v5028_v35  ;;  %v876_v46 = vand.u32 4294901760, %v875_v37 }
  0x59   : > { %v468_v45 = vand.u32 4294901760, %v467_v36  ;;  %4199 = vmatprep.mubr.f32.mxu0 %v486_v33  ;;  %4401 = vmatprep.subr.bf16.mxu0 %v4400_v39  ;;  %v497_v47 = vsub.f32 %v5020_v30, %v496_v38  ;;  %v478_v52 = vand.u32 4294901760, %v477_v41  ;;  %v296_v55 = vsel %vm276_vm0, %v5034_v40, 0 }
  0x5a   : > { %4403 = vmatpush3.bf16.msra.mxu0 %v4400_v39  ;;  %v488_v53 = vand.u32 4294901760, %v487_v43  ;;  %v507_v54 = vsub.f32 %v5028_v35, %v506_v44  ;;  %v4388_v56 = vpack.c.bf16 %v876_v46, %v869_v42  ;;  %v5055_v58 = vsub.f32 %v293_v31, %v5040_v48  ;;  %v5109_v39 = vld [vmem:[%s4943_s30 + $0x28] sm:$0xff] }
  0x5b   : > { %4004 = vmatprep.mubr.f32.mxu1 %v468_v45  ;;  %v498_v57 = vand.u32 4294901760, %v497_v47  ;;  %v5057_v59 = vand.u32 4294901760, %v296_v55  ;;  %4405 = vmatprep.subr.bf16.mxu0 %v4984_v15  ;;  %v299_v0 = vsel %vm276_vm0, %v5043_v49, 0  ;;  %v302_v1 = vsel %vm276_vm0, %v5046_v50, 0 }
  0x5c   : > { %6445 = vst [vmem:[#allocation14_spill] sm:$0xff] %v5055_v58  ;;  %4005 = vmatmul.mubr.f32.vlgmr.msra.gmra.mrb[0].mxu1 %v478_v52  ;;  %4200 = vmatmul.mubr.f32.gmra.mrb[2].mxu0 %v496_v38  ;;  %v508_v63 = vand.u32 4294901760, %v507_v54  ;;  %v305_v3 = vsel %vm276_vm0, %v5049_v51, 0  ;;  %v516_v4 = vand.u32 4294901760, %v5055_v58  ;;  %v5079_v11 = vand.u32 4294901760, %v299_v0 }
  0x5d   : > { %4389 = vmatprep.subr.bf16.mxu1 %v4388_v56  ;;  %4007 = vmatprep.mubr.f32.mxu1 %v488_v53  ;;  %v5077_v5 = vsub.f32 %v296_v55, %v5057_v59  ;;  %v5081_v12 = vand.u32 4294901760, %v302_v1  ;;  %v5083_v13 = vand.u32 4294901760, %v305_v3  ;;  %v308_v23 = vsel %vm276_vm0, %v5060_v60, 0  ;;  %v5125_v53 = vld [vmem:[%s4943_s30 + $0x30] sm:$0xff] }
  0x5e   : > { %4391 = vmatpush3.bf16.msra.mxu1 %v4388_v56  ;;  %4202 = vmatprep.mubr.f32.mxu0 %v506_v44  ;;  %v311_v26 = vsel %vm276_vm0, %v5063_v61, 0  ;;  %v314_v28 = vsel %vm276_vm0, %v5066_v62, 0  ;;  %v517_v31 = vsub.f32 %v5055_v58, %v516_v4  ;;  %v5094_v32 = vsub.f32 %v299_v0, %v5079_v11 }
  0x5f   : > { %6446 = vst [vmem:[#allocation15_spill] sm:$0xff] %v5077_v5  ;;  %v526_v29 = vand.u32 4294901760, %v5077_v5  ;;  %v5097_v33 = vsub.f32 %v302_v1, %v5081_v12  ;;  %v5100_v34 = vsub.f32 %v305_v3, %v5083_v13  ;;  %v5102_v36 = vand.u32 4294901760, %v308_v23 }
  0x60   : > { %6447 = vst [vmem:[#allocation16_spill] sm:$0xff] %v5094_v32  ;;  %4008 = vmatmul.mubr.f32.gmra.mrb[2].mxu1 %v498_v57  ;;  %4203 = vmatmul.mubr.f32.gmra.mrb[4].mxu0 %v516_v4  ;;  %v5104_v37 = vand.u32 4294901760, %v311_v26  ;;  %v5106_v38 = vand.u32 4294901760, %v314_v28  ;;  %v518_v41 = vand.u32 4294901760, %v517_v31  ;;  %v536_v42 = vand.u32 4294901760, %v5094_v32  ;;  %v5136_v4 = vld [vmem:[%s4943_s30 + $0x38] sm:$0xff] }
  0x61   : > { %6448 = vst [vmem:[#allocation17_spill] sm:$0xff] %v5097_v33  ;;  %6449 = vst [vmem:[#allocation18_spill] sm:$0xff] %v5100_v34  ;;  %4010 = vmatprep.mubr.f32.mxu1 %v508_v63  ;;  %4205 = vmatprep.mubr.f32.mxu0 %v526_v29  ;;  %v527_v43 = vsub.f32 %v5077_v5, %v526_v29  ;;  %v546_v44 = vand.u32 4294901760, %v5097_v33  ;;  %v556_v45 = vand.u32 4294901760, %v5100_v34  ;;  %v317_v57 = vsel %vm276_vm0, %v5109_v39, 0 }
  0x62   : > { %v5116_v46 = vsub.f32 %v308_v23, %v5102_v36  ;;  %v5119_v47 = vsub.f32 %v311_v26, %v5104_v37  ;;  %v5122_v52 = vsub.f32 %v314_v28, %v5106_v38  ;;  %v537_v55 = vsub.f32 %v5094_v32, %v536_v42 }
  0x63   : > { %v528_v54 = vand.u32 4294901760, %v527_v43  ;;  %v547_v56 = vsub.f32 %v5097_v33, %v546_v44  ;;  %v557_v0 = vsub.f32 %v5100_v34, %v556_v45  ;;  %v5138_v28 = vand.u32 4294901760, %v317_v57 }
  0x64   : > { %6450 = vst [vmem:[#allocation19_spill] sm:$0xff] %v5116_v46  ;;  %6451 = vst [vmem:[#allocation20_spill] sm:$0xff] %v5119_v47  ;;  %4011 = vmatmul.mubr.f32.gmra.mrb[4].mxu1 %v518_v41  ;;  %4206 = vmatmul.mubr.f32.gmra.mrb[6].mxu0 %v536_v42  ;;  %v566_v63 = vand.u32 4294901760, %v5116_v46  ;;  %v576_v1 = vand.u32 4294901760, %v5119_v47  ;;  %v586_v3 = vand.u32 4294901760, %v5122_v52  ;;  %v538_v23 = vand.u32 4294901760, %v537_v55 }
  0x65   : > { %6452 = vst [vmem:[#allocation21_spill] sm:$0xff] %v5122_v52  ;;  %4013 = vmatprep.mubr.f32.mxu1 %v528_v54  ;;  %4208 = vmatprep.mubr.f32.mxu0 %v546_v44  ;;  %v548_v26 = vand.u32 4294901760, %v547_v56  ;;  %v320_v29 = vsel %vm276_vm0, %v5125_v53, 0  ;;  %v558_v31 = vand.u32 4294901760, %v557_v0  ;;  %v5145_v43 = vsub.f32 %v317_v57, %v5138_v28 }
  0x66   : > { %v567_v41 = vsub.f32 %v5116_v46, %v566_v63  ;;  %v577_v42 = vsub.f32 %v5119_v47, %v576_v1  ;;  %v5147_v34 = vand.u32 4294901760, %v320_v29  ;;  %v323_v44 = vsel %vm276_vm0, %v5136_v4, 0 }
  0x67   : > { %6453 = vst [vmem:[#allocation22_spill] sm:$0xff] %v5145_v43  ;;  %v326_v54 = vsel %vm276_vm0, %v4971_v9, 0  ;;  %v587_v0 = vsub.f32 %v5122_v52, %v586_v3  ;;  %v5154_v46 = vand.u32 4294901760, %v323_v44  ;;  %v596_v57 = vand.u32 4294901760, %v5145_v43 }
  0x68   : > { %4014 = vmatmul.mubr.f32.gmra.mrb[6].mxu1 %v538_v23  ;;  %4209 = vmatmul.mubr.f32.gmra.mrb[8].mxu0 %v556_v45  ;;  %v568_v55 = vand.u32 4294901760, %v567_v41  ;;  %v578_v56 = vand.u32 4294901760, %v577_v42  ;;  %v5158_v47 = vsub.f32 %v320_v29, %v5147_v34  ;;  %v5160_v33 = vand.u32 4294901760, %v326_v54 }
  0x69   : > { %4016 = vmatprep.mubr.f32.mxu1 %v548_v26  ;;  %4211 = vmatprep.mubr.f32.mxu0 %v566_v63  ;;  %v251_v9 = vmul.f32 %v4961_v6, %v4961_v6  ;;  %v5165_v45 = vsub.f32 %v323_v44, %v5154_v46  ;;  %v252_v23 = vmul.f32 %v4964_v7, %v4964_v7  ;;  %v588_v35 = vand.u32 4294901760, %v587_v0 }
  0x6a   : > { %6454 = vst [vmem:[#allocation23_spill] sm:$0xff] %v5158_v47  ;;  %v253_v26 = vmul.f32 %v4967_v8, %v4967_v8  ;;  %v254_v63 = vmul.f32 %v4982_v14, %v4982_v14  ;;  %v606_v29 = vand.u32 4294901760, %v5158_v47  ;;  %v597_v41 = vsub.f32 %v5145_v43, %v596_v57 }
  0x6b   : > { %6455 = vst [vmem:[#allocation24_spill] sm:$0xff] %v5165_v45  ;;  %v5176_v42 = vsub.f32 %v326_v54, %v5160_v33  ;;  %v329_v52 = vsel %vm276_vm0, %v251_v9, 0  ;;  %v616_v44 = vand.u32 4294901760, %v5165_v45  ;;  %v332_v5 = vsel %vm276_vm0, %v252_v23, 0 }
  0x6c   : > { %4017 = vmatmul.mubr.f32.gmra.mrb[8].mxu1 %v558_v31  ;;  %4212 = vmatmul.mubr.f32.gmra.mrb[10].mxu0 %v576_v1  ;;  %v5180_v32 = vand.u32 4294901760, %v329_v52  ;;  %v335_v58 = vsel %vm276_vm0, %v253_v26, 0  ;;  %v607_v43 = vsub.f32 %v5158_v47, %v606_v29  ;;  %v5186_v30 = vand.u32 4294901760, %v332_v5 }
  0x6d   : > { %6456 = vst [vmem:[#allocation25_spill] sm:$0xff] %v5176_v42  ;;  %4019 = vmatprep.mubr.f32.mxu1 %v568_v55  ;;  %4214 = vmatprep.mubr.f32.mxu0 %v586_v3  ;;  %v626_v54 = vand.u32 4294901760, %v5176_v42  ;;  %v5191_v1 = vand.u32 4294901760, %v335_v58  ;;  %v338_v9 = vsel %vm276_vm0, %v254_v63, 0  ;;  %v598_v25 = vand.u32 4294901760, %v597_v41 }
  0x6e   : > { %6457 = vst [vmem:[#allocation26_spill] sm:$0xff] %v5186_v30  ;;  %v5189_v31 = vsub.f32 %v329_v52, %v5180_v32  ;;  %v617_v23 = vsub.f32 %v5165_v45, %v616_v44  ;;  %v5196_v55 = vsub.f32 %v332_v5, %v5186_v30  ;;  %v5198_v3 = vand.u32 4294901760, %v338_v9 }
  0x6f   : > { %6459 = vst [vmem:[#allocation28_spill] sm:$0xff] %v5191_v1  ;;  %v627_v26 = vsub.f32 %v5176_v42, %v626_v54  ;;  %v5203_v52 = vsub.f32 %v335_v58, %v5191_v1  ;;  %v255_v63 = vmul.f32 %v4993_v19, %v4993_v19  ;;  %v608_v41 = vand.u32 4294901760, %v607_v43 }
  0x70   : > { %6458 = vst [vmem:[#allocation27_spill] sm:$0xff] %v5189_v31  ;;  %6460 = vst [vmem:[#allocation29_spill] sm:$0xff] %v5196_v55  ;;  %4020 = vmatmul.mubr.f32.gmra.mrb[10].mxu1 %v578_v56  ;;  %4215 = vmatmul.mubr.f32.gmra.mrb[12].mxu0 %v596_v57  ;;  %v636_v0 = vand.u32 4294901760, %v5189_v31  ;;  %v646_v5 = vand.u32 4294901760, %v5196_v55  ;;  %v5209_v45 = vsub.f32 %v338_v9, %v5198_v3 }
  0x71   : > { %6461 = vst [vmem:[#allocation30_spill] sm:$0xff] %v5198_v3  ;;  %6462 = vst [vmem:[#allocation31_spill] sm:$0xff] %v5203_v52  ;;  %4022 = vmatprep.mubr.f32.mxu1 %v588_v35  ;;  %4217 = vmatprep.mubr.f32.mxu0 %v606_v29  ;;  %v256_v56 = vmul.f32 %v5034_v40, %v5034_v40  ;;  %v656_v57 = vand.u32 4294901760, %v5203_v52  ;;  %v341_v42 = vsel %vm276_vm0, %v255_v63, 0  ;;  %v618_v29 = vand.u32 4294901760, %v617_v23 }
  0x72   : > { %6463 = vst [vmem:[#allocation32_spill] sm:$0xff] %v5209_v45  ;;  %v257_v58 = vmul.f32 %v5043_v49, %v5043_v49  ;;  %v637_v47 = vsub.f32 %v5189_v31, %v636_v0  ;;  %v5218_v35 = vand.u32 4294901760, %v341_v42  ;;  %v628_v9 = vand.u32 4294901760, %v627_v26 }
  0x73   : > { %v344_v43 = vsel %vm276_vm0, %v256_v56, 0  ;;  %v647_v63 = vsub.f32 %v5196_v55, %v646_v5  ;;  %v666_v3 = vand.u32 4294901760, %v5209_v45  ;;  %v258_v23 = vmul.f32 %v5046_v50, %v5046_v50 }
  0x74   : > { %6464 = vst [vmem:[#allocation33_spill] sm:$0xff] %v5218_v35  ;;  %4023 = vmatmul.mubr.f32.gmra.mrb[12].mxu1 %v598_v25  ;;  %4218 = vmatmul.mubr.f32.gmra.mrb[14].mxu0 %v616_v44  ;;  %v5221_v24 = vand.u32 4294901760, %v344_v43  ;;  %v347_v20 = vsel %vm276_vm0, %v257_v58, 0  ;;  %v5227_v31 = vsub.f32 %v341_v42, %v5218_v35  ;;  %v657_v25 = vsub.f32 %v5203_v52, %v656_v57 }
  0x75   : > { %4025 = vmatprep.mubr.f32.mxu1 %v608_v41  ;;  %4220 = vmatprep.mubr.f32.mxu0 %v626_v54  ;;  %v5229_v1 = vand.u32 4294901760, %v347_v20  ;;  %v259_v54 = vmul.f32 %v5049_v51, %v5049_v51  ;;  %v638_v26 = vand.u32 4294901760, %v637_v47  ;;  %v260_v42 = vmul.f32 %v5060_v60, %v5060_v60 }
  0x76   : > { %6465 = vst [vmem:[#allocation34_spill] sm:$0xff] %v5221_v24  ;;  %6466 = vst [vmem:[#allocation35_spill] sm:$0xff] %v5227_v31  ;;  %v5233_v44 = vsub.f32 %v344_v43, %v5221_v24  ;;  %v676_v41 = vand.u32 4294901760, %v5227_v31  ;;  %v350_v43 = vsel %vm276_vm0, %v258_v23, 0  ;;  %v261_v55 = vmul.f32 %v5063_v61, %v5063_v61 }
  0x77   : > { %6467 = vst [vmem:[#allocation36_spill] sm:$0xff] %v5229_v1  ;;  %v5241_v56 = vsub.f32 %v347_v20, %v5229_v1  ;;  %v353_v52 = vsel %vm276_vm0, %v259_v54, 0  ;;  %v648_v47 = vand.u32 4294901760, %v647_v63  ;;  %v667_v20 = vsub.f32 %v5209_v45, %v666_v3 }
  0x78   : > { %6468 = vst [vmem:[#allocation37_spill] sm:$0xff] %v5233_v44  ;;  %4026 = vmatmul.mubr.f32.gmra.mrb[14].mxu1 %v618_v29  ;;  %4221 = vmatmul.mubr.f32.gmra.mrb[16].mxu0 %v636_v0  ;;  %v686_v58 = vand.u32 4294901760, %v5233_v44  ;;  %v5251_v1 = vand.u32 4294901760, %v350_v43  ;;  %v5253_v24 = vand.u32 4294901760, %v353_v52  ;;  %v658_v29 = vand.u32 4294901760, %v657_v25 }
  0x79   : > { %6469 = vst [vmem:[#allocation38_spill] sm:$0xff] %v5241_v56  ;;  %4028 = vmatprep.mubr.f32.mxu1 %v628_v9  ;;  %4223 = vmatprep.mubr.f32.mxu0 %v646_v5  ;;  %v356_v0 = vsel %vm276_vm0, %v260_v42, 0  ;;  %v359_v35 = vsel %vm276_vm0, %v261_v55, 0  ;;  %v262_v23 = vmul.f32 %v5066_v62, %v5066_v62  ;;  %v677_v54 = vsub.f32 %v5227_v31, %v676_v41 }
  0x7a   : > { %6470 = vst [vmem:[#allocation39_spill] sm:$0xff] %v5253_v24  ;;  %v696_v9 = vand.u32 4294901760, %v5241_v56  ;;  %v687_v5 = vsub.f32 %v5233_v44, %v686_v58  ;;  %v5263_v63 = vsub.f32 %v350_v43, %v5251_v1  ;;  %v5266_v25 = vsub.f32 %v353_v52, %v5253_v24 }
  0x7b   : > { %v5268_v42 = vand.u32 4294901760, %v356_v0  ;;  %v5270_v55 = vand.u32 4294901760, %v359_v35  ;;  %v362_v45 = vsel %vm276_vm0, %v262_v23, 0  ;;  %v668_v31 = vand.u32 4294901760, %v667_v20 }
  0x7c   : > { %6471 = vst [vmem:[#allocation40_spill] sm:$0xff] %v5263_v63  ;;  %4029 = vmatmul.mubr.f32.gmra.mrb[16].mxu1 %v638_v26  ;;  %4224 = vmatmul.mubr.f32.gmra.mrb[18].mxu0 %v656_v57  ;;  %v706_v30 = vand.u32 4294901760, %v5263_v63  ;;  %v5274_v44 = vand.u32 4294901760, %v362_v45  ;;  %v263_v52 = vmul.f32 %v5109_v39, %v5109_v39  ;;  %v264_v26 = vmul.f32 %v5125_v53, %v5125_v53 }
  0x7d   : > { %6472 = vst [vmem:[#allocation41_spill] sm:$0xff] %v5268_v42  ;;  %6473 = vst [vmem:[#allocation42_spill] sm:$0xff] %v5270_v55  ;;  %4031 = vmatprep.mubr.f32.mxu1 %v648_v47  ;;  %4226 = vmatprep.mubr.f32.mxu0 %v666_v3  ;;  %v5277_v43 = vsub.f32 %v356_v0, %v5268_v42  ;;  %v5280_v57 = vsub.f32 %v359_v35, %v5270_v55  ;;  %v678_v23 = vand.u32 4294901760, %v677_v54 }
  0x7e   : > { %6474 = vst [vmem:[#allocation43_spill] sm:$0xff] %v5274_v44  ;;  %v688_v47 = vand.u32 4294901760, %v687_v5  ;;  %v697_v3 = vsub.f32 %v5241_v56, %v696_v9  ;;  %v265_v20 = vmul.f32 %v5136_v4, %v5136_v4  ;;  %v716_v0 = vand.u32 4294901760, %v5266_v25 }
  0x7f   : > { %6475 = vst [vmem:[#allocation44_spill] sm:$0xff] %v5277_v43  ;;  %6476 = vst [vmem:[#allocation45_spill] sm:$0xff] %v5280_v57  ;;  %v707_v35 = vsub.f32 %v5263_v63, %v706_v30  ;;  %v365_v55 = vsel %vm276_vm0, %v263_v52, 0  ;;  %v368_v42 = vsel %vm276_vm0, %v264_v26, 0  ;;  %v726_v54 = vand.u32 4294901760, %v5277_v43 }
  0x80   : > { %4032 = vmatmul.mubr.f32.gmra.mrb[18].mxu1 %v658_v29  ;;  %4227 = vmatmul.mubr.f32.gmra.mrb[20].mxu0 %v676_v41  ;;  %v736_v5 = vand.u32 4294901760, %v5280_v57  ;;  %v5296_v56 = vsub.f32 %v362_v45, %v5274_v44  ;;  %v5298_v24 = vand.u32 4294901760, %v365_v55  ;;  %v5300_v41 = vand.u32 4294901760, %v368_v42 }
  0x81   : > { %4034 = vmatprep.mubr.f32.mxu1 %v668_v31  ;;  %4229 = vmatprep.mubr.f32.mxu0 %v686_v58  ;;  %v371_v29 = vsel %vm276_vm0, %v265_v20, 0  ;;  %v698_v63 = vand.u32 4294901760, %v697_v3  ;;  %v266_v31 = vmul.f32 %v5046_v50, %v4956_v2  ;;  %v708_v58 = vand.u32 4294901760, %v707_v35 }
  0x82   : > { %6477 = vst [vmem:[#allocation46_spill] sm:$0xff] %v5298_v24  ;;  %v5304_v52 = vsub.f32 %v365_v55, %v5298_v24  ;;  %v5306_v26 = vand.u32 4294901760, %v371_v29  ;;  %v717_v45 = vsub.f32 %v5266_v25, %v716_v0  ;;  %v5312_v44 = vsub.f32 %v368_v42, %v5300_v41 }
  0x83   : > { %v267_v20 = vmul.f32 %v5049_v51, %v4961_v6  ;;  %v727_v55 = vsub.f32 %v5277_v43, %v726_v54  ;;  %v746_v3 = vand.u32 4294901760, %v5296_v56  ;;  %v737_v24 = vsub.f32 %v5280_v57, %v736_v5 }
  0x84   : > { %4035 = vmatmul.mubr.f32.gmra.mrb[20].mxu1 %v678_v23  ;;  %4230 = vmatmul.mubr.f32.gmra.mrb[22].mxu0 %v696_v9  ;;  %v374_v2 = vsel %vm276_vm0, %v266_v31, 0  ;;  %v756_v50 = vand.u32 4294901760, %v5304_v52  ;;  %v268_v23 = vmul.f32 %v5060_v60, %v4964_v7  ;;  %v766_v6 = vand.u32 4294901760, %v5312_v44 }
  0x85   : > { %4037 = vmatprep.mubr.f32.mxu1 %v688_v47  ;;  %4232 = vmatprep.mubr.f32.mxu0 %v706_v30  ;;  %v5321_v9 = vand.u32 4294901760, %v374_v2  ;;  %v377_v42 = vsel %vm276_vm0, %v267_v20, 0  ;;  %v5328_v30 = vsub.f32 %v371_v29, %v5306_v26  ;;  %v269_v47 = vmul.f32 %v5063_v61, %v4967_v8 }
  0x86   : > { %v5330_v51 = vand.u32 4294901760, %v377_v42  ;;  %v718_v35 = vand.u32 4294901760, %v717_v45  ;;  %v380_v20 = vsel %vm276_vm0, %v268_v23, 0  ;;  %v270_v7 = vmul.f32 %v5066_v62, %v4982_v14 }
  0x87   : > { %v5335_v31 = vsub.f32 %v374_v2, %v5321_v9  ;;  %v728_v60 = vand.u32 4294901760, %v727_v55  ;;  %v747_v29 = vsub.f32 %v5296_v56, %v746_v3  ;;  %v5341_v57 = vand.u32 4294901760, %v380_v20 }
  0x88   : > { %4038 = vmatmul.mubr.f32.gmra.mrb[22].mxu1 %v698_v63  ;;  %4233 = vmatmul.mubr.f32.gmra.mrb[24].mxu0 %v716_v0  ;;  %v738_v43 = vand.u32 4294901760, %v737_v24  ;;  %v383_v8 = vsel %vm276_vm0, %v269_v47, 0  ;;  %v386_v61 = vsel %vm276_vm0, %v270_v7, 0  ;;  %v757_v63 = vsub.f32 %v5304_v52, %v756_v50 }
  0x89   : > { %4040 = vmatprep.mubr.f32.mxu1 %v708_v58  ;;  %4235 = vmatprep.mubr.f32.mxu0 %v726_v54  ;;  %v776_v0 = vand.u32 4294901760, %v5328_v30  ;;  %v767_v45 = vsub.f32 %v5312_v44, %v766_v6  ;;  %v5349_v14 = vsub.f32 %v377_v42, %v5330_v51  ;;  %v786_v62 = vand.u32 4294901760, %v5335_v31 }
  0x8a   : > { %v5352_v54 = vand.u32 4294901760, %v383_v8  ;;  %v271_v24 = vmul.f32 %v5109_v39, %v4993_v19  ;;  %v272_v58 = vmul.f32 %v5125_v53, %v5034_v40  ;;  %v748_v55 = vand.u32 4294901760, %v747_v29 }
  0x8b   : > { %v5359_v2 = vsub.f32 %v380_v20, %v5341_v57  ;;  %v5361_v42 = vand.u32 4294901760, %v386_v61  ;;  %v768_v19 = vand.u32 4294901760, %v767_v45  ;;  %v777_v39 = vsub.f32 %v5328_v30, %v776_v0 }
  0x8c   : > { %4041 = vmatmul.mubr.f32.gmra.mrb[24].mxu1 %v718_v35  ;;  %4236 = vmatmul.mubr.f32.gmra.mrb[26].mxu0 %v736_v5  ;;  %v273_v5 = vmul.f32 %v5136_v4, %v5043_v49  ;;  %v389_v23 = vsel %vm276_vm0, %v271_v24, 0  ;;  %v392_v47 = vsel %vm276_vm0, %v272_v58, 0  ;;  %v758_v35 = vand.u32 4294901760, %v757_v63 }
  0x8d   : > { %4043 = vmatprep.mubr.f32.mxu1 %v728_v60  ;;  %4238 = vmatprep.mubr.f32.mxu0 %v746_v3  ;;  %v796_v40 = vand.u32 4294901760, %v5349_v14  ;;  %v787_v53 = vsub.f32 %v5335_v31, %v786_v62  ;;  %v5371_v3 = vsub.f32 %v383_v8, %v5352_v54  ;;  %v5373_v20 = vand.u32 4294901760, %v389_v23 }
  0x8e   : > { %v4392_v49 = vpack.c.bf16 %v4998_v21, %v4990_v18  ;;  %v806_v4 = vand.u32 4294901760, %v5359_v2  ;;  %v5379_v7 = vsub.f32 %v386_v61, %v5361_v42  ;;  %v5381_v60 = vand.u32 4294901760, %v392_v47 }
  0x8f   : > { %v797_v29 = vsub.f32 %v5349_v14, %v796_v40  ;;  %v816_v8 = vand.u32 4294901760, %v5371_v3  ;;  %v5387_v18 = vsub.f32 %v389_v23, %v5373_v20 }
  0x90   : > { %4044 = vmatmul.mubr.f32.gmra.mrb[26].mxu1 %v738_v43  ;;  %4239 = vmatmul.mubr.f32.gmra.mrb[28].mxu0 %v756_v50  ;;  %v395_v43 = vsel %vm276_vm0, %v273_v5, 0  ;;  %v778_v50 = vand.u32 4294901760, %v777_v39  ;;  %v807_v61 = vsub.f32 %v5359_v2, %v806_v4  ;;  %v826_v63 = vand.u32 4294901760, %v5379_v7 }
  0x91   : > { %4046 = vmatprep.mubr.f32.mxu1 %v748_v55  ;;  %4241 = vmatprep.mubr.f32.mxu0 %v766_v6  ;;  %v5389_v21 = vand.u32 4294901760, %v395_v43  ;;  %v788_v6 = vand.u32 4294901760, %v787_v53  ;;  %v5394_v45 = vsub.f32 %v392_v47, %v5381_v60  ;;  %v817_v24 = vsub.f32 %v5371_v3, %v816_v8 }
  0x92   : > { %4393 = vmatprep.subr.bf16.mxu1 %v4392_v49  ;;  %v836_v58 = vand.u32 4294901760, %v5387_v18  ;;  %v827_v5 = vsub.f32 %v5379_v7, %v826_v63 }
  0x93   : > { %v5399_v55 = vsub.f32 %v395_v43, %v5389_v21  ;;  %v846_v23 = vand.u32 4294901760, %v5394_v45  ;;  %v818_v47 = vand.u32 4294901760, %v817_v24  ;;  %v6486_v24 = vld [vmem:[#allocation42_spill] sm:$0xff] }
  0x94   : > { %4047 = vmatmul.mubr.f32.gmra.mrb[28].mxu1 %v758_v35  ;;  %4242 = vmatmul.mubr.f32.gmra.mrb[30].mxu0 %v776_v0  ;;  %v798_v0 = vand.u32 4294901760, %v797_v29  ;;  %v837_v35 = vsub.f32 %v5387_v18, %v836_v58  ;;  %v828_v39 = vand.u32 4294901760, %v827_v5  ;;  %v6480_v29 = vld [vmem:[#allocation30_spill] sm:$0xff]  ;;  %v6489_v5 = vld [vmem:[#allocation9_spill] sm:$0xff] }
  0x95   : > { %4049 = vmatprep.mubr.f32.mxu1 %v768_v19  ;;  %4244 = vmatprep.mubr.f32.mxu0 %v786_v62  ;;  %v808_v62 = vand.u32 4294901760, %v807_v61  ;;  %v856_v19 = vand.u32 4294901760, %v5399_v55  ;;  %v6483_v61 = vld [vmem:[#allocation36_spill] sm:$0xff] }
  0x96   : > { %v838_v53 = vand.u32 4294901760, %v837_v35  ;;  %v6492_v35 = vld [vmem:[#allocation12_spill] sm:$0xff] }
  0x98   : > { %4050 = vmatmul.mubr.f32.gmra.mrb[30].mxu1 %v778_v50  ;;  %4245 = vmatmul.mubr.f32.gmra.mrb[32].mxu0 %v796_v40  ;;  %v847_v40 = vsub.f32 %v5394_v45, %v846_v23 }
  0x99   : > { %4052 = vmatprep.mubr.f32.mxu1 %v788_v6  ;;  %4247 = vmatprep.mubr.f32.mxu0 %v806_v4  ;;  %v857_v4 = vsub.f32 %v5399_v55, %v856_v19  ;;  %v6482_v6 = vld [vmem:[#allocation34_spill] sm:$0xff] }
  0x9a   : > { %v848_v43 = vand.u32 4294901760, %v847_v40  ;;  %v6513_v40 = vld [vmem:[#allocation40_spill] sm:$0xff] }
  0x9b   : > { %v858_v50 = vand.u32 4294901760, %v857_v4  ;;  %v6515_v4 = vld [vmem:[#allocation45_spill] sm:$0xff] }
  0x9c   : > { %4053 = vmatmul.mubr.f32.gmra.mrb[32].mxu1 %v798_v0  ;;  %4248 = vmatmul.mubr.f32.gmra.mrb[34].mxu0 %v816_v8  ;;  %v6481_v8 = vld [vmem:[#allocation33_spill] sm:$0xff] }
  0x9d   : > { %4055 = vmatprep.mubr.f32.mxu1 %v808_v62  ;;  %4250 = vmatprep.mubr.f32.mxu0 %v826_v63  ;;  %v6484_v63 = vld [vmem:[#allocation39_spill] sm:$0xff]  ;;  %v6485_v0 = vld [vmem:[#allocation41_spill] sm:$0xff]  ;;  %v6488_v62 = vld [vmem:[#allocation46_spill] sm:$0xff] }
  0xa0   : > { %4056 = vmatmul.mubr.f32.gmra.mrb[34].mxu1 %v818_v47  ;;  %4251 = vmatmul.mubr.f32.gmra.mrb[36].mxu0 %v836_v58  ;;  %v6487_v58 = vld [vmem:[#allocation43_spill] sm:$0xff] }
  0xa1   : > { %4058 = vmatprep.mubr.f32.mxu1 %v828_v39  ;;  %4253 = vmatprep.mubr.f32.mxu0 %v846_v23  ;;  %v6490_v23 = vld [vmem:[#allocation10_spill] sm:$0xff]  ;;  %v6491_v47 = vld [vmem:[#allocation11_spill] sm:$0xff] }
  0xa2   : > { %v6512_v39 = vld [vmem:[#allocation38_spill] sm:$0xff] }
  0xa4   : > { %4059 = vmatmul.mubr.f32.gmra.mrb[36].mxu1 %v838_v53  ;;  %4254 = vmatmul.mubr.f32.gmra.mrb[38].mxu0 %v856_v19  ;;  %v6511_v19 = vld [vmem:[#allocation37_spill] sm:$0xff]  ;;  %v6514_v53 = vld [vmem:[#allocation44_spill] sm:$0xff] }
  0xa5   : > { %4061 = vmatprep.mubr.f32.mxu1 %v848_v43  ;;  %4260 = vmatprep.mubr.f32.mxu0 %v4973_v10 }
  0xa8   : > { %4062 = vmatmul.mubr.f32.gmra.mrb[38].mxu1 %v858_v50  ;;  %4261 = vmatmul.mubr.f32.vlgmr.msra.gmra.mrb[0].mxu0 %v4986_v16 }
  0xa9   : > { %4068 = vmatprep.mubr.f32.mxu1 %v4973_v10  ;;  %4263 = vmatprep.mubr.f32.mxu0 %v4988_v17 }
  0xaa   : > { %4407 = vmatpush3.bf16.msra.mxu0 %v4984_v15  ;;  %v6478_v15 = vld [vmem:[#allocation26_spill] sm:$0xff] }
  0xac   : > { %4069 = vmatmul.mubr.f32.vlgmr.msra.gmra.mrb[0].mxu1 %v4986_v16  ;;  %4264 = vmatmul.mubr.f32.gmra.mrb[2].mxu0 %v5000_v22 }
  0xad   : > { %4395 = vmatpush3.bf16.msra.mxu1 %v4392_v49  ;;  %4071 = vmatprep.mubr.f32.mxu1 %v4988_v17  ;;  %v6479_v49 = vld [vmem:[#allocation28_spill] sm:$0xff] }
  0xae   : > { %4266 = vmatprep.mubr.f32.mxu0 %v5013_v27 }
  0xb0   : > { %4072 = vmatmul.mubr.f32.gmra.mrb[2].mxu1 %v5000_v22  ;;  %4267 = vmatmul.mubr.f32.gmra.mrb[4].mxu0 %v5040_v48 }
  0xb1   : > { %4074 = vmatprep.mubr.f32.mxu1 %v5013_v27  ;;  %4269 = vmatprep.mubr.f32.mxu0 %v5057_v59 }
  0xb4   : > { %4075 = vmatmul.mubr.f32.gmra.mrb[4].mxu1 %v5040_v48  ;;  %4270 = vmatmul.mubr.f32.gmra.mrb[6].mxu0 %v5079_v11 }
  0xb5   : > { %4077 = vmatprep.mubr.f32.mxu1 %v5057_v59  ;;  %4272 = vmatprep.mubr.f32.mxu0 %v5081_v12 }
  0xb8   : > { %4078 = vmatmul.mubr.f32.gmra.mrb[6].mxu1 %v5079_v11  ;;  %4273 = vmatmul.mubr.f32.gmra.mrb[8].mxu0 %v5083_v13 }
  0xb9   : > { %4080 = vmatprep.mubr.f32.mxu1 %v5081_v12  ;;  %4275 = vmatprep.mubr.f32.mxu0 %v5102_v36 }
  0xbc   : > { %4081 = vmatmul.mubr.f32.gmra.mrb[8].mxu1 %v5083_v13  ;;  %4276 = vmatmul.mubr.f32.gmra.mrb[10].mxu0 %v5104_v37 }
  0xbd   : > { %4083 = vmatprep.mubr.f32.mxu1 %v5102_v36  ;;  %4278 = vmatprep.mubr.f32.mxu0 %v5106_v38 }
  0xc0   : > { %4084 = vmatmul.mubr.f32.gmra.mrb[10].mxu1 %v5104_v37  ;;  %4279 = vmatmul.mubr.f32.gmra.mrb[12].mxu0 %v5138_v28 }
  0xc1   : > { %4086 = vmatprep.mubr.f32.mxu1 %v5106_v38  ;;  %4281 = vmatprep.mubr.f32.mxu0 %v5147_v34 }
  0xc4   : > { %4087 = vmatmul.mubr.f32.gmra.mrb[12].mxu1 %v5138_v28  ;;  %4282 = vmatmul.mubr.f32.gmra.mrb[14].mxu0 %v5154_v46 }
  0xc5   : > { %4089 = vmatprep.mubr.f32.mxu1 %v5147_v34  ;;  %4284 = vmatprep.mubr.f32.mxu0 %v5160_v33 }
  0xc8   : > { %4090 = vmatmul.mubr.f32.gmra.mrb[14].mxu1 %v5154_v46  ;;  %4285 = vmatmul.mubr.f32.gmra.mrb[16].mxu0 %v5180_v32 }
  0xc9   : > { %4092 = vmatprep.mubr.f32.mxu1 %v5160_v33  ;;  %4287 = vmatprep.mubr.f32.mxu0 %v6478_v15 }
  0xcc   : > { %4093 = vmatmul.mubr.f32.gmra.mrb[16].mxu1 %v5180_v32  ;;  %4288 = vmatmul.mubr.f32.gmra.mrb[18].mxu0 %v6479_v49 }
  0xcd   : > { %4095 = vmatprep.mubr.f32.mxu1 %v6478_v15  ;;  %4290 = vmatprep.mubr.f32.mxu0 %v6480_v29 }
  0xd0   : > { %4096 = vmatmul.mubr.f32.gmra.mrb[18].mxu1 %v6479_v49  ;;  %4291 = vmatmul.mubr.f32.gmra.mrb[20].mxu0 %v6481_v8 }
  0xd1   : > { %4098 = vmatprep.mubr.f32.mxu1 %v6480_v29  ;;  %4293 = vmatprep.mubr.f32.mxu0 %v6482_v6 }
  0xd4   : > { %4099 = vmatmul.mubr.f32.gmra.mrb[20].mxu1 %v6481_v8  ;;  %4294 = vmatmul.mubr.f32.gmra.mrb[22].mxu0 %v6483_v61 }
  0xd5   : > { %4101 = vmatprep.mubr.f32.mxu1 %v6482_v6  ;;  %4296 = vmatprep.mubr.f32.mxu0 %v5251_v1 }
  0xd8   : > { %4102 = vmatmul.mubr.f32.gmra.mrb[22].mxu1 %v6483_v61  ;;  %4297 = vmatmul.mubr.f32.gmra.mrb[24].mxu0 %v6484_v63 }
  0xd9   : > { %4104 = vmatprep.mubr.f32.mxu1 %v5251_v1  ;;  %4299 = vmatprep.mubr.f32.mxu0 %v6485_v0 }
  0xdc   : > { %4105 = vmatmul.mubr.f32.gmra.mrb[24].mxu1 %v6484_v63  ;;  %4300 = vmatmul.mubr.f32.gmra.mrb[26].mxu0 %v6486_v24 }
  0xdd   : > { %4107 = vmatprep.mubr.f32.mxu1 %v6485_v0  ;;  %4302 = vmatprep.mubr.f32.mxu0 %v6487_v58 }
  0xe0   : > { %4108 = vmatmul.mubr.f32.gmra.mrb[26].mxu1 %v6486_v24  ;;  %4303 = vmatmul.mubr.f32.gmra.mrb[28].mxu0 %v6488_v62 }
  0xe1   : > { %4110 = vmatprep.mubr.f32.mxu1 %v6487_v58  ;;  %4305 = vmatprep.mubr.f32.mxu0 %v5300_v41 }
  0xe4   : > { %4111 = vmatmul.mubr.f32.gmra.mrb[28].mxu1 %v6488_v62  ;;  %4306 = vmatmul.mubr.f32.gmra.mrb[30].mxu0 %v5306_v26 }
  0xe5   : > { %4113 = vmatprep.mubr.f32.mxu1 %v5300_v41  ;;  %4308 = vmatprep.mubr.f32.mxu0 %v5321_v9 }
  0xe8   : > { %4114 = vmatmul.mubr.f32.gmra.mrb[30].mxu1 %v5306_v26  ;;  %4309 = vmatmul.mubr.f32.gmra.mrb[32].mxu0 %v5330_v51 }
  0xe9   : > { %4116 = vmatprep.mubr.f32.mxu1 %v5321_v9  ;;  %4311 = vmatprep.mubr.f32.mxu0 %v5341_v57 }
  0xec   : > { %4117 = vmatmul.mubr.f32.gmra.mrb[32].mxu1 %v5330_v51  ;;  %4312 = vmatmul.mubr.f32.gmra.mrb[34].mxu0 %v5352_v54 }
  0xed   : > { %4119 = vmatprep.mubr.f32.mxu1 %v5341_v57  ;;  %4314 = vmatprep.mubr.f32.mxu0 %v5361_v42 }
  0xf0   : > { %4120 = vmatmul.mubr.f32.gmra.mrb[34].mxu1 %v5352_v54  ;;  %4315 = vmatmul.mubr.f32.gmra.mrb[36].mxu0 %v5373_v20 }
  0xf1   : > { %4122 = vmatprep.mubr.f32.mxu1 %v5361_v42  ;;  %4317 = vmatprep.mubr.f32.mxu0 %v5381_v60 }
  0xf4   : > { %4123 = vmatmul.mubr.f32.gmra.mrb[36].mxu1 %v5373_v20  ;;  %4318 = vmatmul.mubr.f32.gmra.mrb[38].mxu0 %v5389_v21 }
  0xf5   : > { %4125 = vmatprep.mubr.f32.mxu1 %v5381_v60  ;;  %4324 = vmatprep.mubr.f32.mxu0 %v4973_v10  ;;  %v6493_v10 = vld [vmem:[#allocation13_spill] sm:$0xff] }
  0xf8   : > { %4126 = vmatmul.mubr.f32.gmra.mrb[38].mxu1 %v5389_v21  ;;  %4325 = vmatmul.mubr.f32.vlgmr.msra.gmra.mrb[0].mxu0 %v4986_v16  ;;  %v6494_v16 = vld [vmem:[#allocation14_spill] sm:$0xff] }
  0xf9   : > { %4132 = vmatprep.mubr.f32.mxu1 %v6489_v5  ;;  %4327 = vmatprep.mubr.f32.mxu0 %v4988_v17  ;;  %v6495_v17 = vld [vmem:[#allocation15_spill] sm:$0xff] }
  0xfc   : > { %4133 = vmatmul.mubr.f32.vlgmr.msra.gmra.mrb[0].mxu1 %v6490_v23  ;;  %4328 = vmatmul.mubr.f32.gmra.mrb[2].mxu0 %v5000_v22  ;;  %v6496_v22 = vld [vmem:[#allocation16_spill] sm:$0xff] }
  0xfd   : > { %4135 = vmatprep.mubr.f32.mxu1 %v6491_v47  ;;  %4330 = vmatprep.mubr.f32.mxu0 %v5013_v27  ;;  %v6497_v27 = vld [vmem:[#allocation17_spill] sm:$0xff] }
 0x100   : > { %4136 = vmatmul.mubr.f32.gmra.mrb[2].mxu1 %v6492_v35  ;;  %4331 = vmatmul.mubr.f32.gmra.mrb[4].mxu0 %v5040_v48  ;;  %v6498_v48 = vld [vmem:[#allocation18_spill] sm:$0xff] }
 0x101   : > { %4138 = vmatprep.mubr.f32.mxu1 %v6493_v10  ;;  %4333 = vmatprep.mubr.f32.mxu0 %v5057_v59  ;;  %v6499_v59 = vld [vmem:[#allocation19_spill] sm:$0xff] }
 0x104   : > { %4139 = vmatmul.mubr.f32.gmra.mrb[4].mxu1 %v6494_v16  ;;  %4334 = vmatmul.mubr.f32.gmra.mrb[6].mxu0 %v5079_v11  ;;  %v6500_v11 = vld [vmem:[#allocation20_spill] sm:$0xff] }
 0x105   : > { %4141 = vmatprep.mubr.f32.mxu1 %v6495_v17  ;;  %4336 = vmatprep.mubr.f32.mxu0 %v5081_v12  ;;  %v6501_v12 = vld [vmem:[#allocation21_spill] sm:$0xff] }
 0x108   : > { %4142 = vmatmul.mubr.f32.gmra.mrb[6].mxu1 %v6496_v22  ;;  %4337 = vmatmul.mubr.f32.gmra.mrb[8].mxu0 %v5083_v13  ;;  %v6502_v13 = vld [vmem:[#allocation22_spill] sm:$0xff] }
 0x109   : > { %4144 = vmatprep.mubr.f32.mxu1 %v6497_v27  ;;  %4339 = vmatprep.mubr.f32.mxu0 %v5102_v36  ;;  %v6503_v36 = vld [vmem:[#allocation23_spill] sm:$0xff] }
 0x10c   : > { %4145 = vmatmul.mubr.f32.gmra.mrb[8].mxu1 %v6498_v48  ;;  %4340 = vmatmul.mubr.f32.gmra.mrb[10].mxu0 %v5104_v37  ;;  %v6504_v37 = vld [vmem:[#allocation24_spill] sm:$0xff] }
 0x10d   : > { %4147 = vmatprep.mubr.f32.mxu1 %v6499_v59  ;;  %4342 = vmatprep.mubr.f32.mxu0 %v5106_v38  ;;  %v6505_v38 = vld [vmem:[#allocation25_spill] sm:$0xff] }
 0x110   : > { %4148 = vmatmul.mubr.f32.gmra.mrb[10].mxu1 %v6500_v11  ;;  %4343 = vmatmul.mubr.f32.gmra.mrb[12].mxu0 %v5138_v28  ;;  %v6506_v28 = vld [vmem:[#allocation27_spill] sm:$0xff] }
 0x111   : > { %4150 = vmatprep.mubr.f32.mxu1 %v6501_v12  ;;  %4345 = vmatprep.mubr.f32.mxu0 %v5147_v34  ;;  %v6507_v34 = vld [vmem:[#allocation29_spill] sm:$0xff] }
 0x114   : > { %4151 = vmatmul.mubr.f32.gmra.mrb[12].mxu1 %v6502_v13  ;;  %4346 = vmatmul.mubr.f32.gmra.mrb[14].mxu0 %v5154_v46  ;;  %v6508_v46 = vld [vmem:[#allocation31_spill] sm:$0xff] }
 0x115   : > { %4153 = vmatprep.mubr.f32.mxu1 %v6503_v36  ;;  %4348 = vmatprep.mubr.f32.mxu0 %v5160_v33  ;;  %v6509_v33 = vld [vmem:[#allocation32_spill] sm:$0xff] }
 0x118   : > { %4154 = vmatmul.mubr.f32.gmra.mrb[14].mxu1 %v6504_v37  ;;  %4349 = vmatmul.mubr.f32.gmra.mrb[16].mxu0 %v5180_v32  ;;  %v6510_v32 = vld [vmem:[#allocation35_spill] sm:$0xff] }
 0x119   : > { %4156 = vmatprep.mubr.f32.mxu1 %v6505_v38  ;;  %4351 = vmatprep.mubr.f32.mxu0 %v6478_v15 }
 0x11c   : > { %4157 = vmatmul.mubr.f32.gmra.mrb[16].mxu1 %v6506_v28  ;;  %4352 = vmatmul.mubr.f32.gmra.mrb[18].mxu0 %v6479_v49 }
 0x11d   : > { %4159 = vmatprep.mubr.f32.mxu1 %v6507_v34  ;;  %4354 = vmatprep.mubr.f32.mxu0 %v6480_v29 }
 0x120   : > { %4160 = vmatmul.mubr.f32.gmra.mrb[18].mxu1 %v6508_v46  ;;  %4355 = vmatmul.mubr.f32.gmra.mrb[20].mxu0 %v6481_v8 }
 0x121   : > { %4162 = vmatprep.mubr.f32.mxu1 %v6509_v33  ;;  %4357 = vmatprep.mubr.f32.mxu0 %v6482_v6 }
 0x124   : > { %4163 = vmatmul.mubr.f32.gmra.mrb[20].mxu1 %v6510_v32  ;;  %4358 = vmatmul.mubr.f32.gmra.mrb[22].mxu0 %v6483_v61 }
 0x125   : > { %4165 = vmatprep.mubr.f32.mxu1 %v6511_v19  ;;  %4360 = vmatprep.mubr.f32.mxu0 %v5251_v1  ;;  %v4775_v1 = vmov 0.0  }
 0x126   : > { %2553 = vst.msk [vmem:[#allocation2 + $0x18] sm:$0xff] %vm276_vm0, %v4775_v1  ;;  %2533 = vst.msk [vmem:[#allocation2] sm:$0xff] %vm276_vm0, %v4775_v1 }
 0x127   : > { %2534 = vst.msk [vmem:[#allocation2 + $0x20] sm:$0xff] %vm276_vm0, %v4775_v1  ;;  %2535 = vst.msk [vmem:[#allocation2 + $0x40] sm:$0xff] %vm276_vm0, %v4775_v1 }
 0x128   : > { %4166 = vmatmul.mubr.f32.gmra.mrb[22].mxu1 %v6512_v39  ;;  %4361 = vmatmul.mubr.f32.gmra.mrb[24].mxu0 %v6484_v63  ;;  %2536 = vst.msk [vmem:[#allocation2 + $0x60] sm:$0xff] %vm276_vm0, %v4775_v1  ;;  %2537 = vst.msk [vmem:[#allocation2 + $0x80] sm:$0xff] %vm276_vm0, %v4775_v1 }
 0x129   : > { %4168 = vmatprep.mubr.f32.mxu1 %v6513_v40  ;;  %4363 = vmatprep.mubr.f32.mxu0 %v6485_v0  ;;  %2538 = vst.msk [vmem:[#allocation2 + $0xa0] sm:$0xff] %vm276_vm0, %v4775_v1  ;;  %2539 = vst.msk [vmem:[#allocation2 + $0xc0] sm:$0xff] %vm276_vm0, %v4775_v1 }
 0x12a   : > { %2540 = vst.msk [vmem:[#allocation2 + $0xe0] sm:$0xff] %vm276_vm0, %v4775_v1  ;;  %2541 = vst.msk [vmem:[#allocation2 + $0x100] sm:$0xff] %vm276_vm0, %v4775_v1 }
 0x12b   : > { %2542 = vst.msk [vmem:[#allocation2 + $0x120] sm:$0xff] %vm276_vm0, %v4775_v1  ;;  %2543 = vst.msk [vmem:[#allocation2 + $0x140] sm:$0xff] %vm276_vm0, %v4775_v1 }
 0x12c   : > { %4169 = vmatmul.mubr.f32.gmra.mrb[24].mxu1 %v5266_v25  ;;  %4364 = vmatmul.mubr.f32.gmra.mrb[26].mxu0 %v6486_v24  ;;  %2544 = vst.msk [vmem:[#allocation2 + $0x160] sm:$0xff] %vm276_vm0, %v4775_v1  ;;  %2545 = vst.msk [vmem:[#allocation2 + $0x180] sm:$0xff] %vm276_vm0, %v4775_v1 }
 0x12d   : > { %4171 = vmatprep.mubr.f32.mxu1 %v6514_v53  ;;  %4366 = vmatprep.mubr.f32.mxu0 %v6487_v58  ;;  %2546 = vst.msk [vmem:[#allocation2 + $0x1a0] sm:$0xff] %vm276_vm0, %v4775_v1  ;;  %2547 = vst.msk [vmem:[#allocation2 + $0x1c0] sm:$0xff] %vm276_vm0, %v4775_v1 }
 0x12e   : > { %2548 = vst.msk [vmem:[#allocation2 + $0x1e0] sm:$0xff] %vm276_vm0, %v4775_v1  ;;  %2549 = vst.msk [vmem:[#allocation2 + $0x200] sm:$0xff] %vm276_vm0, %v4775_v1 }
 0x12f   : > { %2550 = vst.msk [vmem:[#allocation2 + $0x220] sm:$0xff] %vm276_vm0, %v4775_v1  ;;  %2551 = vst.msk [vmem:[#allocation2 + $0x240] sm:$0xff] %vm276_vm0, %v4775_v1 }
 0x130   : > { %4172 = vmatmul.mubr.f32.gmra.mrb[26].mxu1 %v6515_v4  ;;  %4367 = vmatmul.mubr.f32.gmra.mrb[28].mxu0 %v6488_v62  ;;  %2552 = vst.msk [vmem:[#allocation2 + $0x260] sm:$0xff] %vm276_vm0, %v4775_v1  ;;  %2554 = vst.msk [vmem:[#allocation2 + $0x38] sm:$0xff] %vm276_vm0, %v4775_v1 }
 0x131   : > { %4174 = vmatprep.mubr.f32.mxu1 %v5296_v56  ;;  %4369 = vmatprep.mubr.f32.mxu0 %v5300_v41  ;;  %2555 = vst.msk [vmem:[#allocation2 + $0x58] sm:$0xff] %vm276_vm0, %v4775_v1  ;;  %2556 = vst.msk [vmem:[#allocation2 + $0x78] sm:$0xff] %vm276_vm0, %v4775_v1 }
 0x132   : > { %2557 = vst.msk [vmem:[#allocation2 + $0x98] sm:$0xff] %vm276_vm0, %v4775_v1  ;;  %2558 = vst.msk [vmem:[#allocation2 + $0xb8] sm:$0xff] %vm276_vm0, %v4775_v1 }
 0x133   : > { %2559 = vst.msk [vmem:[#allocation2 + $0xd8] sm:$0xff] %vm276_vm0, %v4775_v1  ;;  %2560 = vst.msk [vmem:[#allocation2 + $0xf8] sm:$0xff] %vm276_vm0, %v4775_v1 }
 0x134   : > { %4175 = vmatmul.mubr.f32.gmra.mrb[28].mxu1 %v5304_v52  ;;  %4370 = vmatmul.mubr.f32.gmra.mrb[30].mxu0 %v5306_v26  ;;  %2561 = vst.msk [vmem:[#allocation2 + $0x118] sm:$0xff] %vm276_vm0, %v4775_v1  ;;  %2562 = vst.msk [vmem:[#allocation2 + $0x138] sm:$0xff] %vm276_vm0, %v4775_v1 }
 0x135   : > { %4177 = vmatprep.mubr.f32.mxu1 %v5312_v44  ;;  %4372 = vmatprep.mubr.f32.mxu0 %v5321_v9  ;;  %2563 = vst.msk [vmem:[#allocation2 + $0x158] sm:$0xff] %vm276_vm0, %v4775_v1  ;;  %2564 = vst.msk [vmem:[#allocation2 + $0x178] sm:$0xff] %vm276_vm0, %v4775_v1 }
 0x136   : > { %2565 = vst.msk [vmem:[#allocation2 + $0x198] sm:$0xff] %vm276_vm0, %v4775_v1  ;;  %2566 = vst.msk [vmem:[#allocation2 + $0x1b8] sm:$0xff] %vm276_vm0, %v4775_v1 }
 0x137   : > { %2567 = vst.msk [vmem:[#allocation2 + $0x1d8] sm:$0xff] %vm276_vm0, %v4775_v1  ;;  %2568 = vst.msk [vmem:[#allocation2 + $0x1f8] sm:$0xff] %vm276_vm0, %v4775_v1 }
 0x138   : > { %4178 = vmatmul.mubr.f32.gmra.mrb[30].mxu1 %v5328_v30  ;;  %4373 = vmatmul.mubr.f32.gmra.mrb[32].mxu0 %v5330_v51  ;;  %2569 = vst.msk [vmem:[#allocation2 + $0x218] sm:$0xff] %vm276_vm0, %v4775_v1  ;;  %2570 = vst.msk [vmem:[#allocation2 + $0x238] sm:$0xff] %vm276_vm0, %v4775_v1 }
 0x139   : > { %4180 = vmatprep.mubr.f32.mxu1 %v5335_v31  ;;  %4375 = vmatprep.mubr.f32.mxu0 %v5341_v57  ;;  %2571 = vst.msk [vmem:[#allocation2 + $0x258] sm:$0xff] %vm276_vm0, %v4775_v1  ;;  %2572 = vst.msk [vmem:[#allocation2 + $0x278] sm:$0xff] %vm276_vm0, %v4775_v1 }
 0x13c   : > { %4181 = vmatmul.mubr.f32.gmra.mrb[32].mxu1 %v5349_v14  ;;  %4376 = vmatmul.mubr.f32.gmra.mrb[34].mxu0 %v5352_v54 }
 0x13d   : > { %4183 = vmatprep.mubr.f32.mxu1 %v5359_v2  ;;  %4378 = vmatprep.mubr.f32.mxu0 %v5361_v42 }
 0x140   : > { %4184 = vmatmul.mubr.f32.gmra.mrb[34].mxu1 %v5371_v3  ;;  %4379 = vmatmul.mubr.f32.gmra.mrb[36].mxu0 %v5373_v20 }
 0x141   : > { %4186 = vmatprep.mubr.f32.mxu1 %v5379_v7  ;;  %4381 = vmatprep.mubr.f32.mxu0 %v5381_v60 }
 0x144   : > { %4187 = vmatmul.mubr.f32.gmra.mrb[36].mxu1 %v5387_v18  ;;  %4382 = vmatmul.mubr.f32.gmra.mrb[38].mxu0 %v5389_v21 }
 0x145   : > { %4189 = vmatprep.mubr.f32.mxu1 %v5394_v45 }
 0x148   : > { %4190 = vmatmul.mubr.f32.gmra.mrb[38].mxu1 %v5399_v55 }
 0x1cb   : > { %v4326_v44 = vpop.f32.mrb[0].mxu0 }
 0x1cc   : > { %v2295_v56 = vpop.f32.mrb[1].mxu0 }
 0x1cf   : > { %v4134_v25 = vpop.f32.mrb[0].mxu1  ;;  %v4329_v57 = vpop.f32.mrb[2].mxu0 }
 0x1d0   : > { %v4408_v41 = vadd.f32 %v4326_v44, %v4134_v25  ;;  %v1251_v52 = vpop.f32.mrb[1].mxu1  ;;  %v2307_v26 = vpop.f32.mrb[3].mxu0 }
 0x1d1   : > { %v4409_v9 = vadd.f32 %v2295_v56, %v1251_v52 }
 0x1d2   : > { %2574 = vst.msk [vmem:[#allocation2 + $0x10] sm:$0xff] %vm276_vm0, %v4408_v41 }
 0x1d3   : > { %2573 = vst.msk [vmem:[#allocation2 + $0x8] sm:$0xff] %vm276_vm0, %v4409_v9  ;;  %v4137_v30 = vpop.f32.mrb[2].mxu1  ;;  %v4332_v51 = vpop.f32.mrb[4].mxu0 }
 0x1d4   : > { %v4410_v31 = vadd.f32 %v4329_v57, %v4137_v30  ;;  %v1265_v14 = vpop.f32.mrb[3].mxu1  ;;  %v2319_v54 = vpop.f32.mrb[5].mxu0 }
 0x1d5   : > { %v4411_v2 = vadd.f32 %v2307_v26, %v1265_v14 }
 0x1d6   : > { %2576 = vst.msk [vmem:[#allocation2 + $0x30] sm:$0xff] %vm276_vm0, %v4410_v31 }
 0x1d7   : > { %2575 = vst.msk [vmem:[#allocation2 + $0x28] sm:$0xff] %vm276_vm0, %v4411_v2  ;;  %v4140_v42 = vpop.f32.mrb[4].mxu1  ;;  %v4335_v3 = vpop.f32.mrb[6].mxu0 }
 0x1d8   : > { %v4412_v20 = vadd.f32 %v4332_v51, %v4140_v42  ;;  %v1279_v7 = vpop.f32.mrb[5].mxu1  ;;  %v2331_v60 = vpop.f32.mrb[7].mxu0 }
 0x1d9   : > { %v4413_v18 = vadd.f32 %v2319_v54, %v1279_v7 }
 0x1da   : > { %2578 = vst.msk [vmem:[#allocation2 + $0x50] sm:$0xff] %vm276_vm0, %v4412_v20  ;;  %v2613_v49 = vld [vmem:[#allocation2 + $0x3] sm:$0xff]  ;;  %v5616_v61 = vld [vmem:[#allocation2 + $0xb] sm:$0xff] }
 0x1db   : > { %2577 = vst.msk [vmem:[#allocation2 + $0x48] sm:$0xff] %vm276_vm0, %v4413_v18  ;;  %v4143_v21 = vpop.f32.mrb[6].mxu1  ;;  %v4338_v45 = vpop.f32.mrb[8].mxu0  ;;  %v2653_v29 = vld [vmem:[#allocation2 + $0x4] sm:$0xff]  ;;  %v5618_v63 = vld [vmem:[#allocation2 + $0xc] sm:$0xff] }
 0x1dc   : > { %v4414_v55 = vadd.f32 %v4335_v3, %v4143_v21  ;;  %v1293_v43 = vpop.f32.mrb[7].mxu1  ;;  %v2343_v50 = vpop.f32.mrb[9].mxu0  ;;  %v2693_v5 = vadd.f32 %v2653_v29, %v2613_v49  ;;  %v2694_v23 = vadd.f32 %v5618_v63, %v5616_v61  ;;  %v2733_v10 = vld [vmem:[#allocation2 + $0x5] sm:$0xff]  ;;  %v5628_v13 = vld [vmem:[#allocation2 + $0xd] sm:$0xff] }
 0x1dd   : > { %v4415_v15 = vadd.f32 %v2331_v60, %v1293_v43  ;;  %v2813_v53 = vld [vmem:[#allocation2 + $0x6] sm:$0xff]  ;;  %v2814_v4 = vld [vmem:[#allocation2 + $0xe] sm:$0xff] }
 0x1de   : > { %2580 = vst.msk [vmem:[#allocation2 + $0x70] sm:$0xff] %vm276_vm0, %v4414_v55  ;;  %v2615_v16 = vld [vmem:[#allocation2 + $0x23] sm:$0xff]  ;;  %v5624_v48 = vld [vmem:[#allocation2 + $0x2b] sm:$0xff]  ;;  %v2773_v36 = vadd.f32 %v2733_v10, %v2693_v5  ;;  %v2774_v37 = vadd.f32 %v5628_v13, %v2694_v23 }
 0x1df   : > { %2579 = vst.msk [vmem:[#allocation2 + $0x68] sm:$0xff] %vm276_vm0, %v4415_v15  ;;  %v4146_v8 = vpop.f32.mrb[8].mxu1  ;;  %v4341_v6 = vpop.f32.mrb[10].mxu0  ;;  %v2655_v59 = vld [vmem:[#allocation2 + $0x24] sm:$0xff]  ;;  %v5626_v11 = vld [vmem:[#allocation2 + $0x2c] sm:$0xff] }
 0x1e0   : > { %v4416_v0 = vadd.f32 %v4338_v45, %v4146_v8  ;;  %v1307_v24 = vpop.f32.mrb[9].mxu1  ;;  %v2355_v58 = vpop.f32.mrb[11].mxu0  ;;  %v2695_v46 = vadd.f32 %v2655_v59, %v2615_v16  ;;  %v2696_v33 = vadd.f32 %v5626_v11, %v5624_v48  ;;  %v2853_v1 = vadd.f32 %v2813_v53, %v2773_v36  ;;  %v2735_v44 = vld [vmem:[#allocation2 + $0x25] sm:$0xff]  ;;  %v5636_v41 = vld [vmem:[#allocation2 + $0x2d] sm:$0xff] }
 0x1e1   : > { %v4417_v62 = vadd.f32 %v2343_v50, %v1307_v24  ;;  %v2854_v57 = vadd.f32 %v2814_v4, %v2774_v37  ;;  %v2893_v42 = vld [vmem:[#allocation2 + $0x7] sm:$0xff]  ;;  %v2894_v3 = vld [vmem:[#allocation2 + $0xf] sm:$0xff] }
 0x1e2   : > { %2582 = vst.msk [vmem:[#allocation2 + $0x90] sm:$0xff] %vm276_vm0, %v4416_v0  ;;  %v2617_v38 = vld [vmem:[#allocation2 + $0x43] sm:$0xff]  ;;  %v5638_v52 = vld [vmem:[#allocation2 + $0x4b] sm:$0xff]  ;;  %v2775_v51 = vadd.f32 %v2735_v44, %v2695_v46  ;;  %v2776_v31 = vadd.f32 %v5636_v41, %v2696_v33  ;;  %v2933_v7 = vadd.f32 %v2893_v42, %v2853_v1 }
 0x1e3   : > { %2581 = vst.msk [vmem:[#allocation2 + $0x88] sm:$0xff] %vm276_vm0, %v4417_v62  ;;  %v4149_v47 = vpop.f32.mrb[10].mxu1  ;;  %v4344_v35 = vpop.f32.mrb[12].mxu0  ;;  %v2657_v32 = vld [vmem:[#allocation2 + $0x44] sm:$0xff]  ;;  %v5640_v26 = vld [vmem:[#allocation2 + $0x4c] sm:$0xff]  ;;  %v2934_v50 = vadd.f32 %v2894_v3, %v2854_v57 }
 0x1e4   : > { %v4418_v17 = vadd.f32 %v4341_v6, %v4149_v47  ;;  %v1321_v22 = vpop.f32.mrb[11].mxu1  ;;  %v2367_v27 = vpop.f32.mrb[13].mxu0  ;;  %v2697_v56 = vadd.f32 %v2657_v32, %v2617_v38  ;;  %v2737_v20 = vld [vmem:[#allocation2 + $0x45] sm:$0xff]  ;;  %v2698_v60 = vadd.f32 %v5640_v26, %v5638_v52  ;;  %v2816_v49 = vld [vmem:[#allocation2 + $0x2e] sm:$0xff] }
 0x1e5   : > { %v4419_v12 = vadd.f32 %v2355_v58, %v1321_v22  ;;  %v2815_v15 = vld [vmem:[#allocation2 + $0x26] sm:$0xff]  ;;  %v2856_v24 = vadd.f32 %v2816_v49, %v2776_v31  ;;  %v2974_v16 = vld [vmem:[#allocation2 + $0x10] sm:$0xff] }
 0x1e6   : > { %2584 = vst.msk [vmem:[#allocation2 + $0xb0] sm:$0xff] %vm276_vm0, %v4418_v17  ;;  %v2777_v18 = vadd.f32 %v2737_v20, %v2697_v56  ;;  %v2619_v21 = vld [vmem:[#allocation2 + $0x63] sm:$0xff]  ;;  %v5646_v45 = vld [vmem:[#allocation2 + $0x6b] sm:$0xff]  ;;  %v2855_v0 = vadd.f32 %v2815_v15, %v2775_v51 }
 0x1e7   : > { %2583 = vst.msk [vmem:[#allocation2 + $0xa8] sm:$0xff] %vm276_vm0, %v4419_v12  ;;  %v4152_v28 = vpop.f32.mrb[12].mxu1  ;;  %v4347_v34 = vpop.f32.mrb[14].mxu0  ;;  %v2659_v55 = vld [vmem:[#allocation2 + $0x64] sm:$0xff]  ;;  %v5649_v29 = vld [vmem:[#allocation2 + $0x6c] sm:$0xff]  ;;  %v3014_v12 = vadd.f32 %v2974_v16, %v2934_v50 }
 0x1e8   : > { %v4420_v19 = vadd.f32 %v4344_v35, %v4152_v28  ;;  %v1335_v39 = vpop.f32.mrb[13].mxu1  ;;  %v2379_v40 = vpop.f32.mrb[15].mxu0  ;;  %v2699_v58 = vadd.f32 %v2659_v55, %v2619_v21  ;;  %v2973_v5 = vld [vmem:[#allocation2 + $0x8] sm:$0xff]  ;;  %v2700_v35 = vadd.f32 %v5649_v29, %v5646_v45  ;;  %v3054_v31 = vld [vmem:[#allocation2 + $0x11] sm:$0xff] }
 0x1e9   : > { %v4421_v25 = vadd.f32 %v2367_v27, %v1335_v39  ;;  %v5654_v23 = vld [vmem:[#allocation2 + $0x4d] sm:$0xff]  ;;  %v3013_v17 = vadd.f32 %v2973_v5, %v2933_v7  ;;  %v2739_v28 = vld [vmem:[#allocation2 + $0x65] sm:$0xff]  ;;  %v3094_v7 = vadd.f32 %v3054_v31, %v3014_v12 }
 0x1ea   : > { %2586 = vst.msk [vmem:[#allocation2 + $0xd0] sm:$0xff] %vm276_vm0, %v4420_v19  ;;  %v2817_v47 = vld [vmem:[#allocation2 + $0x46] sm:$0xff]  ;;  %v2778_v27 = vadd.f32 %v5654_v23, %v2698_v60  ;;  %v2896_v37 = vld [vmem:[#allocation2 + $0x2f] sm:$0xff]  ;;  %v2779_v39 = vadd.f32 %v2739_v28, %v2699_v58 }
 0x1eb   : > { %v4155_v9 = vpop.f32.mrb[14].mxu1  ;;  %v4350_v30 = vpop.f32.mrb[16].mxu0  ;;  %2585 = vst.msk [vmem:[#allocation2 + $0xc8] sm:$0xff] %vm276_vm0, %v4421_v25  ;;  %v2895_v22 = vld [vmem:[#allocation2 + $0x27] sm:$0xff]  ;;  %v2857_v59 = vadd.f32 %v2817_v47, %v2777_v18  ;;  %v2936_v32 = vadd.f32 %v2896_v37, %v2856_v24  ;;  %v3134_v55 = vld [vmem:[#allocation2 + $0x12] sm:$0xff] }
 0x1ec   : > { %v4422_v14 = vadd.f32 %v4347_v34, %v4155_v9  ;;  %v1349_v54 = vpop.f32.mrb[15].mxu1  ;;  %v2391_v2 = vpop.f32.mrb[17].mxu0  ;;  %v3053_v36 = vld [vmem:[#allocation2 + $0x9] sm:$0xff]  ;;  %v2935_v33 = vadd.f32 %v2895_v22, %v2855_v0 }
 0x1ed   : > { %v4423_v43 = vadd.f32 %v2379_v40, %v1349_v54  ;;  %v2818_v38 = vld [vmem:[#allocation2 + $0x4e] sm:$0xff]  ;;  %v2621_v40 = vld [vmem:[#allocation2 + $0x83] sm:$0xff] }
 0x1ee   : > { %2588 = vst.msk [vmem:[#allocation2 + $0xf0] sm:$0xff] %vm276_vm0, %v4422_v14  ;;  %v5663_v19 = vld [vmem:[#allocation2 + $0x6d] sm:$0xff]  ;;  %v2661_v57 = vld [vmem:[#allocation2 + $0x84] sm:$0xff]  ;;  %v3093_v14 = vadd.f32 %v3053_v36, %v3013_v17  ;;  %v2858_v42 = vadd.f32 %v2818_v38, %v2778_v27 }
 0x1ef   : > { %v4158_v8 = vpop.f32.mrb[16].mxu1  ;;  %v5651_v6 = vpop.f32.mrb[18].mxu0  ;;  %2587 = vst.msk [vmem:[#allocation2 + $0xe8] sm:$0xff] %vm276_vm0, %v4423_v43  ;;  %v5665_v53 = vld [vmem:[#allocation2 + $0x8b] sm:$0xff]  ;;  %v2780_v25 = vadd.f32 %v5663_v19, %v2700_v35  ;;  %v2701_v20 = vadd.f32 %v2661_v57, %v2621_v40 }
 0x1f0   : > { %v1363_v62 = vpop.f32.mrb[17].mxu1  ;;  %v5658_v10 = vpop.f32.mrb[19].mxu0  ;;  %v4424_v4 = vadd.f32 %v4350_v30, %v4158_v8  ;;  %v2897_v56 = vld [vmem:[#allocation2 + $0x47] sm:$0xff]  ;;  %v2976_v54 = vld [vmem:[#allocation2 + $0x30] sm:$0xff] }
 0x1f1   : > { %v5670_v9 = vld [vmem:[#allocation2 + $0x8c] sm:$0xff]  ;;  %v4425_v51 = vadd.f32 %v2391_v2, %v1363_v62  ;;  %v2937_v3 = vadd.f32 %v2897_v56, %v2857_v59  ;;  %v3016_v50 = vadd.f32 %v2976_v54, %v2936_v32 }
 0x1f2   : > { %2590 = vst.msk [vmem:[#allocation2 + $0x110] sm:$0xff] %vm276_vm0, %v4424_v4  ;;  %v2975_v30 = vld [vmem:[#allocation2 + $0x28] sm:$0xff]  ;;  %v2702_v18 = vadd.f32 %v5670_v9, %v5665_v53  ;;  %v3056_v62 = vld [vmem:[#allocation2 + $0x31] sm:$0xff] }
 0x1f3   : > { %v4161_v34 = vpop.f32.mrb[18].mxu1  ;;  %v5661_v46 = vpop.f32.mrb[20].mxu0  ;;  %v2819_v60 = vld [vmem:[#allocation2 + $0x66] sm:$0xff]  ;;  %2589 = vst.msk [vmem:[#allocation2 + $0x108] sm:$0xff] %vm276_vm0, %v4425_v51  ;;  %v3015_v2 = vadd.f32 %v2975_v30, %v2935_v33  ;;  %v2820_v15 = vld [vmem:[#allocation2 + $0x6e] sm:$0xff] }
 0x1f4   : > { %v1377_v1 = vpop.f32.mrb[19].mxu1  ;;  %v5667_v44 = vpop.f32.mrb[21].mxu0  ;;  %v2741_v21 = vld [vmem:[#allocation2 + $0x85] sm:$0xff]  ;;  %v2859_v49 = vadd.f32 %v2819_v60, %v2779_v39  ;;  %v5676_v8 = vld [vmem:[#allocation2 + $0x8d] sm:$0xff]  ;;  %v2860_v16 = vadd.f32 %v2820_v15, %v2780_v25  ;;  %v3174_v39 = vadd.f32 %v3134_v55, %v3094_v7  ;;  %v4426_v57 = vadd.f32 %v5651_v6, %v4161_v34 }
 0x1f5   : > { %v3133_v43 = vld [vmem:[#allocation2 + $0xa] sm:$0xff]  ;;  %v2781_v0 = vadd.f32 %v2741_v21, %v2701_v20  ;;  %v2782_v17 = vadd.f32 %v5676_v8, %v2702_v18  ;;  %v4427_v51 = vadd.f32 %v5658_v10, %v1377_v1  ;;  %v3213_v55 = vld [vmem:[#allocation2 + $0x13] sm:$0xff] }
 0x1f6   : > { %v3055_v5 = vld [vmem:[#allocation2 + $0x29] sm:$0xff]  ;;  %v3173_v12 = vadd.f32 %v3133_v43, %v3093_v14  ;;  %v3136_v6 = vld [vmem:[#allocation2 + $0x32] sm:$0xff]  ;;  %2592 = vst.msk [vmem:[#allocation2 + $0x130] sm:$0xff] %vm276_vm0, %v4426_v57 }
 0x1f7   : > { %v5678_v24 = vpop.f32.mrb[20].mxu1  ;;  %v5680_v58 = vpop.f32.mrb[22].mxu0  ;;  %v2898_v47 = vld [vmem:[#allocation2 + $0x4f] sm:$0xff]  ;;  %v2821_v22 = vld [vmem:[#allocation2 + $0x86] sm:$0xff]  ;;  %v3095_v14 = vadd.f32 %v3055_v5, %v3015_v2  ;;  %2591 = vst.msk [vmem:[#allocation2 + $0x128] sm:$0xff] %vm276_vm0, %v4427_v51 }
 0x1f8   : > { %v2977_v35 = vld [vmem:[#allocation2 + $0x48] sm:$0xff]  ;;  %v5683_v27 = vpop.f32.mrb[21].mxu1  ;;  %v5685_v59 = vpop.f32.mrb[23].mxu0  ;;  %v2938_v36 = vadd.f32 %v2898_v47, %v2858_v42  ;;  %v2861_v33 = vadd.f32 %v2821_v22, %v2781_v0  ;;  %v3096_v42 = vadd.f32 %v3056_v62, %v3016_v50  ;;  %v2978_v10 = vld [vmem:[#allocation2 + $0x50] sm:$0xff]  ;;  %v3233_v22 = vadd.f32 %v3173_v12, %v5616_v61 }
 0x1f9   : > { %v3017_v37 = vadd.f32 %v2977_v35, %v2937_v3  ;;  %v2899_v38 = vld [vmem:[#allocation2 + $0x67] sm:$0xff]  ;;  %v2900_v3 = vld [vmem:[#allocation2 + $0x6f] sm:$0xff] }
 0x1fa   : > { %v2822_v28 = vld [vmem:[#allocation2 + $0x8e] sm:$0xff]  ;;  %v2623_v4 = vld [vmem:[#allocation2 + $0xa3] sm:$0xff]  ;;  %v2939_v20 = vadd.f32 %v2899_v38, %v2859_v49  ;;  %v2940_v43 = vadd.f32 %v2900_v3, %v2860_v16  ;;  %v3018_v49 = vadd.f32 %v2978_v10, %v2938_v36  ;;  %v3234_v36 = vadd.f32 %v3213_v55, %v3174_v39 }
 0x1fb   : > { %v2901_v32 = vld [vmem:[#allocation2 + $0x87] sm:$0xff]  ;;  %v2862_v40 = vadd.f32 %v2822_v28, %v2782_v17  ;;  %v5691_v31 = vpop.f32.mrb[22].mxu1  ;;  %v5693_v54 = vpop.f32.mrb[24].mxu0  ;;  %v2902_v30 = vld [vmem:[#allocation2 + $0x8f] sm:$0xff]  ;;  %v3176_v51 = vadd.f32 %v3136_v6, %v3096_v42  ;;  %v4428_v39 = vadd.f32 %v5661_v46, %v5678_v24 }
 0x1fc   : > { %v5687_v56 = vld [vmem:[#allocation2 + $0xab] sm:$0xff]  ;;  %v2941_v60 = vadd.f32 %v2901_v32, %v2861_v33  ;;  %v5697_v18 = vpop.f32.mrb[23].mxu1  ;;  %v5699_v21 = vpop.f32.mrb[25].mxu0 }
 0x1fd   : > { %v2663_v25 = vld [vmem:[#allocation2 + $0xa4] sm:$0xff]  ;;  %v5695_v7 = vld [vmem:[#allocation2 + $0xac] sm:$0xff]  ;;  %v2942_v15 = vadd.f32 %v2902_v30, %v2862_v40  ;;  %2594 = vst.msk [vmem:[#allocation2 + $0x150] sm:$0xff] %vm276_vm0, %v4428_v39 }
 0x1fe   : > { %v3135_v34 = vld [vmem:[#allocation2 + $0x2a] sm:$0xff]  ;;  %v2703_v2 = vadd.f32 %v2663_v25, %v2623_v4  ;;  %v2704_v50 = vadd.f32 %v5695_v7, %v5687_v56  ;;  %v3142_v39 = vld [vmem:[#allocation2 + $0x92] sm:$0xff] }
 0x1ff   : > { %v3057_v1 = vld [vmem:[#allocation2 + $0x49] sm:$0xff]  ;;  %v3058_v16 = vld [vmem:[#allocation2 + $0x51] sm:$0xff]  ;;  %v5709_v25 = vpop.f32.mrb[24].mxu1  ;;  %v5711_v57 = vpop.f32.mrb[26].mxu0 }
 0x200   : > { %v2981_v0 = vld [vmem:[#allocation2 + $0x88] sm:$0xff]  ;;  %v3097_v62 = vadd.f32 %v3057_v1, %v3017_v37  ;;  %v2982_v5 = vld [vmem:[#allocation2 + $0x90] sm:$0xff]  ;;  %v3175_v37 = vadd.f32 %v3135_v34, %v3095_v14  ;;  %v5713_v12 = vpop.f32.mrb[25].mxu1  ;;  %v5715_v1 = vpop.f32.mrb[27].mxu0  ;;  %v3098_v14 = vadd.f32 %v3058_v16, %v3018_v49  ;;  %v3293_v49 = vadd.f32 %v3233_v22, %v5618_v63 }
 0x201   : > { %v3021_v47 = vadd.f32 %v2981_v0, %v2941_v60  ;;  %v2743_v35 = vld [vmem:[#allocation2 + $0xa5] sm:$0xff]  ;;  %v5705_v17 = vld [vmem:[#allocation2 + $0xad] sm:$0xff]  ;;  %v3022_v32 = vadd.f32 %v2982_v5, %v2942_v15  ;;  %6516 = vst [vmem:[#allocation26_spill] sm:$0xff] %v5715_v1 }
 0x202   : > { %v3137_v38 = vld [vmem:[#allocation2 + $0x4a] sm:$0xff]  ;;  %v2783_v40 = vadd.f32 %v2743_v35, %v2703_v2  ;;  %v2784_v4 = vadd.f32 %v5705_v17, %v2704_v50 }
 0x203   : > { %v2980_v28 = vld [vmem:[#allocation2 + $0x70] sm:$0xff]  ;;  %v2979_v33 = vld [vmem:[#allocation2 + $0x68] sm:$0xff]  ;;  %v3177_v42 = vadd.f32 %v3137_v38, %v3097_v62  ;;  %v5726_v46 = vpop.f32.mrb[26].mxu1  ;;  %v5728_v24 = vpop.f32.mrb[28].mxu0 }
 0x204   : > { %v3019_v3 = vadd.f32 %v2979_v33, %v2939_v20  ;;  %v3062_v30 = vld [vmem:[#allocation2 + $0x91] sm:$0xff]  ;;  %v3061_v60 = vld [vmem:[#allocation2 + $0x89] sm:$0xff]  ;;  %v3020_v15 = vadd.f32 %v2980_v28, %v2940_v43  ;;  %v4429_v33 = vadd.f32 %v5667_v44, %v5683_v27  ;;  %v5737_v63 = vpop.f32.mrb[27].mxu1  ;;  %v5739_v22 = vpop.f32.mrb[29].mxu0 }
 0x205   : > { %v2823_v10 = vld [vmem:[#allocation2 + $0xa6] sm:$0xff]  ;;  %v2824_v61 = vld [vmem:[#allocation2 + $0xae] sm:$0xff]  ;;  %v3101_v20 = vadd.f32 %v3061_v60, %v3021_v47 }
 0x206   : > { %v2863_v0 = vadd.f32 %v2823_v10, %v2783_v40  ;;  %v2864_v2 = vadd.f32 %v2824_v61, %v2784_v4  ;;  %v2903_v50 = vld [vmem:[#allocation2 + $0xa7] sm:$0xff]  ;;  %v2904_v55 = vld [vmem:[#allocation2 + $0xaf] sm:$0xff]  ;;  %v3102_v4 = vadd.f32 %v3062_v30, %v3022_v32  ;;  %2593 = vst.msk [vmem:[#allocation2 + $0x148] sm:$0xff] %vm276_vm0, %v4429_v33  ;;  %v3235_v32 = vadd.f32 %v3175_v37, %v5624_v48 }
 0x207   : > { %v2625_v5 = vld [vmem:[#allocation2 + $0xc3] sm:$0xff]  ;;  %v5717_v35 = vld [vmem:[#allocation2 + $0xcb] sm:$0xff]  ;;  %v3273_v43 = vld [vmem:[#allocation2 + $0x14] sm:$0xff]  ;;  %v3237_v48 = vadd.f32 %v3177_v42, %v5638_v52  ;;  %v4431_v52 = vadd.f32 %v5685_v59, %v5697_v18 }
 0x208   : > { %v2665_v6 = vld [vmem:[#allocation2 + $0xc4] sm:$0xff]  ;;  %v5721_v34 = vld [vmem:[#allocation2 + $0xcc] sm:$0xff]  ;;  %v2943_v10 = vadd.f32 %v2903_v50, %v2863_v0  ;;  %v2944_v61 = vadd.f32 %v2904_v55, %v2864_v2  ;;  %v3294_v62 = vadd.f32 %v3273_v43, %v3234_v36  ;;  %v3333_v59 = vld [vmem:[#allocation2 + $0x15] sm:$0xff] }
 0x209   : > { %v3214_v28 = vld [vmem:[#allocation2 + $0x33] sm:$0xff]  ;;  %v3059_v40 = vld [vmem:[#allocation2 + $0x69] sm:$0xff]  ;;  %v2705_v1 = vadd.f32 %v2665_v6, %v2625_v5  ;;  %v2706_v44 = vadd.f32 %v5721_v34, %v5717_v35  ;;  %2595 = vst.msk [vmem:[#allocation2 + $0x168] sm:$0xff] %vm276_vm0, %v4431_v52  ;;  %v3297_v18 = vadd.f32 %v3237_v48, %v5640_v26 }
 0x20a   : > { %v3060_v47 = vld [vmem:[#allocation2 + $0x71] sm:$0xff]  ;;  %v3099_v16 = vadd.f32 %v3059_v40, %v3019_v3  ;;  %v2983_v38 = vld [vmem:[#allocation2 + $0xa8] sm:$0xff]  ;;  %v3236_v36 = vadd.f32 %v3214_v28, %v3176_v51 }
 0x20b   : > { %v2745_v27 = vld [vmem:[#allocation2 + $0xc5] sm:$0xff]  ;;  %v3138_v30 = vld [vmem:[#allocation2 + $0x52] sm:$0xff]  ;;  %v3100_v60 = vadd.f32 %v3060_v47, %v3020_v15  ;;  %v3023_v2 = vadd.f32 %v2983_v38, %v2943_v10  ;;  %v3182_v15 = vadd.f32 %v3142_v39, %v3102_v4  ;;  %v5745_v38 = vpop.f32.mrb[30].mxu0 }
 0x20c   : > { %v3141_v0 = vld [vmem:[#allocation2 + $0x8a] sm:$0xff]  ;;  %v2785_v5 = vadd.f32 %v2745_v27, %v2705_v1  ;;  %v3178_v3 = vadd.f32 %v3138_v30, %v3098_v14  ;;  %v5743_v1 = vpop.f32.mrb[28].mxu1  ;;  %v3140_v27 = vld [vmem:[#allocation2 + $0x72] sm:$0xff]  ;;  %v5753_v4 = vpop.f32.mrb[31].mxu0  ;;  %v3295_v30 = vadd.f32 %v3235_v32, %v5626_v11 }
 0x20d   : > { %v5735_v50 = vld [vmem:[#allocation2 + $0xcd] sm:$0xff]  ;;  %v3181_v55 = vadd.f32 %v3141_v0, %v3101_v20  ;;  %v5751_v42 = vpop.f32.mrb[29].mxu1  ;;  %v3180_v0 = vadd.f32 %v3140_v27, %v3100_v60  ;;  %v2627_v52 = vld [vmem:[#allocation2 + $0xe3] sm:$0xff] }
 0x20e   : > { %v2984_v6 = vld [vmem:[#allocation2 + $0xb0] sm:$0xff]  ;;  %v2786_v33 = vadd.f32 %v5735_v50, %v2706_v44  ;;  %v2825_v43 = vld [vmem:[#allocation2 + $0xc6] sm:$0xff]  ;;  %v4430_v44 = vadd.f32 %v5680_v58, %v5691_v31  ;;  %v5761_v60 = vpop.f32.mrb[30].mxu1  ;;  %v3355_v26 = vadd.f32 %v3295_v30, %v5636_v41 }
 0x20f   : > { %v3139_v37 = vld [vmem:[#allocation2 + $0x6a] sm:$0xff]  ;;  %v3024_v40 = vadd.f32 %v2984_v6, %v2944_v61  ;;  %v2865_v47 = vadd.f32 %v2825_v43, %v2785_v5  ;;  %v3274_v61 = vld [vmem:[#allocation2 + $0x34] sm:$0xff]  ;;  %v3241_v43 = vadd.f32 %v3181_v55, %v5665_v53  ;;  %v5766_v27 = vpop.f32.mrb[31].mxu1 }
 0x210   : > { %v3063_v10 = vld [vmem:[#allocation2 + $0xa9] sm:$0xff]  ;;  %v3179_v51 = vadd.f32 %v3139_v37, %v3099_v16  ;;  %v3353_v16 = vadd.f32 %v3293_v49, %v5628_v13  ;;  %v3217_v6 = vld [vmem:[#allocation2 + $0x93] sm:$0xff]  ;;  %2596 = vst.msk [vmem:[#allocation2 + $0x170] sm:$0xff] %vm276_vm0, %v4430_v44 }
 0x211   : > { %v3103_v14 = vadd.f32 %v3063_v10, %v3023_v2  ;;  %v2826_v28 = vld [vmem:[#allocation2 + $0xce] sm:$0xff]  ;;  %v3296_v2 = vadd.f32 %v3274_v61, %v3236_v36  ;;  %v3242_v37 = vadd.f32 %v3217_v6, %v3182_v15  ;;  %v3357_v61 = vadd.f32 %v3297_v18, %v5654_v23  ;;  %v2667_v41 = vld [vmem:[#allocation2 + $0xe4] sm:$0xff] }
 0x212   : > { %v2905_v20 = vld [vmem:[#allocation2 + $0xc7] sm:$0xff]  ;;  %v2866_v5 = vadd.f32 %v2826_v28, %v2786_v33  ;;  %v3064_v58 = vld [vmem:[#allocation2 + $0xb1] sm:$0xff]  ;;  %v3354_v33 = vadd.f32 %v3333_v59, %v3294_v62  ;;  %v3239_v36 = vadd.f32 %v3179_v51, %v5646_v45  ;;  %v5771_v62 = vmul.f32 0.008264462, %v3353_v16 }
 0x213   : > { %v2945_v39 = vadd.f32 %v2905_v20, %v2865_v47  ;;  %v3215_v31 = vld [vmem:[#allocation2 + $0x53] sm:$0xff]  ;;  %v3104_v11 = vadd.f32 %v3064_v58, %v3024_v40  ;;  %v3143_v32 = vld [vmem:[#allocation2 + $0xaa] sm:$0xff]  ;;  %v5764_v47 = vpop.f32.mrb[32].mxu0  ;;  %v3301_v51 = vadd.f32 %v3241_v43, %v5670_v9  ;;  %v5787_v18 = vmul.f32 0.008264462, %v3355_v26 }
 0x214   : > { %v3238_v13 = vadd.f32 %v3215_v31, %v3178_v3  ;;  %v3216_v49 = vld [vmem:[#allocation2 + $0x73] sm:$0xff]  ;;  %v3183_v53 = vadd.f32 %v3143_v32, %v3103_v14  ;;  %v2985_v10 = vld [vmem:[#allocation2 + $0xc8] sm:$0xff]  ;;  %6517 = vst [vmem:[#allocation28_spill] sm:$0xff] %v5764_v47  ;;  %v5769_v44 = vpop.f32.mrb[33].mxu0  ;;  %v3299_v9 = vadd.f32 %v3239_v36, %v5649_v29 }
 0x215   : > { %v2906_v55 = vld [vmem:[#allocation2 + $0xcf] sm:$0xff]  ;;  %v3240_v15 = vadd.f32 %v3216_v49, %v3180_v0  ;;  %v3025_v20 = vadd.f32 %v2985_v10, %v2945_v39  ;;  %6518 = vst [vmem:[#allocation30_spill] sm:$0xff] %v5769_v44  ;;  %v5779_v0 = vpop.f32.mrb[32].mxu1  ;;  %v5783_v39 = vmul.f32 0.008264462, %v3354_v33  ;;  %v3361_v33 = vadd.f32 %v3301_v51, %v5676_v8 }
 0x216   : > { %v3334_v28 = vld [vmem:[#allocation2 + $0x35] sm:$0xff]  ;;  %v2946_v40 = vadd.f32 %v2906_v55, %v2866_v5  ;;  %v5775_v59 = vld [vmem:[#allocation2 + $0xeb] sm:$0xff]  ;;  %6519 = vst [vmem:[#allocation33_spill] sm:$0xff] %v5779_v0  ;;  %v5781_v5 = vpop.f32.mrb[34].mxu0  ;;  %v3243_v43 = vadd.f32 %v3183_v53, %v5687_v56  ;;  %v5794_v36 = vpop.f32.mrb[33].mxu1  ;;  %v5804_v8 = vmul.f32 %v5771_v62, %v5771_v62 }
 0x217   : > { %v3275_v48 = vld [vmem:[#allocation2 + $0x54] sm:$0xff]  ;;  %v3356_v3 = vadd.f32 %v3334_v28, %v3296_v2  ;;  %v5777_v30 = vld [vmem:[#allocation2 + $0xec] sm:$0xff]  ;;  %6520 = vst [vmem:[#allocation34_spill] sm:$0xff] %v5781_v5  ;;  %6521 = vst [vmem:[#allocation36_spill] sm:$0xff] %v5794_v36  ;;  %v5796_v56 = vmul.f32 0.008264462, %v3357_v61 }
 0x218   : > { %v3277_v45 = vld [vmem:[#allocation2 + $0x94] sm:$0xff]  ;;  %v3298_v16 = vadd.f32 %v3275_v48, %v3238_v13  ;;  %v3065_v31 = vld [vmem:[#allocation2 + $0xc9] sm:$0xff]  ;;  %v2707_v13 = vadd.f32 %v2667_v41, %v2627_v52  ;;  %v2708_v29 = vadd.f32 %v5777_v30, %v5775_v59  ;;  %6524 = vst [vmem:[#allocation42_spill] sm:$0xff] %v5804_v8  ;;  %v3303_v51 = vadd.f32 %v3243_v43, %v5695_v7 }
 0x219   : > { %v3144_v14 = vld [vmem:[#allocation2 + $0xb2] sm:$0xff]  ;;  %v3302_v6 = vadd.f32 %v3277_v45, %v3242_v37  ;;  %v3105_v32 = vadd.f32 %v3065_v31, %v3025_v20  ;;  %v5789_v49 = vmul.f32 0.008264462, %v3356_v3  ;;  %v5800_v20 = vpop.f32.mrb[34].mxu1  ;;  %v3359_v45 = vadd.f32 %v3299_v9, %v5663_v19  ;;  %v2629_v52 = vld [vmem:[#allocation2 + $0x103] sm:$0xff] }
 0x21a   : > { %v3184_v58 = vadd.f32 %v3144_v14, %v3104_v11  ;;  %v3276_v2 = vld [vmem:[#allocation2 + $0x74] sm:$0xff]  ;;  %6523 = vst [vmem:[#allocation41_spill] sm:$0xff] %v5800_v20  ;;  %v3145_v14 = vld [vmem:[#allocation2 + $0xca] sm:$0xff]  ;;  %v5822_v7 = vmul.f32 %v5787_v18, %v5787_v18  ;;  %v3401_v9 = vmul.f32 0.008264462, %v3361_v33  ;;  %v5837_v33 = vmul.f32 %v5796_v56, %v5796_v56 }
 0x21b   : > { %v2986_v23 = vld [vmem:[#allocation2 + $0xd0] sm:$0xff]  ;;  %v3300_v37 = vadd.f32 %v3276_v2, %v3240_v15  ;;  %v2669_v61 = vld [vmem:[#allocation2 + $0x104] sm:$0xff]  ;;  %v3185_v31 = vadd.f32 %v3145_v14, %v3105_v32 }
 0x21c   : > { %v3026_v11 = vadd.f32 %v2986_v23, %v2946_v40  ;;  %v3335_v55 = vld [vmem:[#allocation2 + $0x55] sm:$0xff]  ;;  %v5798_v40 = vpop.f32.mrb[35].mxu0  ;;  %6529 = vst [vmem:[#allocation11_spill] sm:$0xff] %v5822_v7  ;;  %v2749_v20 = vld [vmem:[#allocation2 + $0x105] sm:$0xff] }
 0x21d   : > { %v3337_v10 = vld [vmem:[#allocation2 + $0x95] sm:$0xff]  ;;  %6522 = vst [vmem:[#allocation39_spill] sm:$0xff] %v5798_v40  ;;  %v3358_v3 = vadd.f32 %v3335_v55, %v3298_v16  ;;  %v5808_v41 = vpop.f32.mrb[36].mxu0  ;;  %v5816_v16 = vld [vmem:[#allocation2 + $0xed] sm:$0xff]  ;;  %v3245_v5 = vadd.f32 %v3185_v31, %v5717_v35 }
 0x21e   : > { %v3218_v28 = vld [vmem:[#allocation2 + $0xb3] sm:$0xff]  ;;  %v3362_v26 = vadd.f32 %v3337_v10, %v3302_v6  ;;  %6525 = vst [vmem:[#allocation43_spill] sm:$0xff] %v5808_v41  ;;  %v5810_v6 = vpop.f32.mrb[35].mxu1  ;;  %v2747_v10 = vld [vmem:[#allocation2 + $0xe5] sm:$0xff]  ;;  %v5818_v19 = vpop.f32.mrb[37].mxu0 }
 0x21f   : > { %v3336_v53 = vld [vmem:[#allocation2 + $0x75] sm:$0xff]  ;;  %v3244_v48 = vadd.f32 %v3218_v28, %v3184_v58  ;;  %6526 = vst [vmem:[#allocation46_spill] sm:$0xff] %v5810_v6  ;;  %v5814_v58 = vmul.f32 %v5783_v39, %v5783_v39  ;;  %6528 = vst [vmem:[#allocation10_spill] sm:$0xff] %v5818_v19  ;;  %v2787_v55 = vadd.f32 %v2747_v10, %v2707_v13  ;;  %v5825_v41 = vld [vmem:[#allocation2 + $0x10b] sm:$0xff]  ;;  %v5839_v13 = vmul.f32 0.008264462, %v3359_v45 }
 0x220   : > { %v3066_v15 = vld [vmem:[#allocation2 + $0xd1] sm:$0xff]  ;;  %v3360_v2 = vadd.f32 %v3336_v53, %v3300_v37  ;;  %v2788_v28 = vadd.f32 %v5816_v16, %v2708_v29  ;;  %v5831_v37 = vmul.f32 %v5789_v49, %v5789_v49  ;;  %v2709_v53 = vadd.f32 %v2669_v61, %v2629_v52  ;;  %v2827_v10 = vld [vmem:[#allocation2 + $0xe6] sm:$0xff]  ;;  %v5847_v61 = vpop.f32.mrb[36].mxu1 }
 0x221   : > { %6527 = vst [vmem:[#allocation9_spill] sm:$0xff] %v5814_v58  ;;  %v3106_v23 = vadd.f32 %v3066_v15, %v3026_v11  ;;  %v3278_v43 = vld [vmem:[#allocation2 + $0xb4] sm:$0xff]  ;;  %v5827_v40 = vld [vmem:[#allocation2 + $0x10c] sm:$0xff]  ;;  %v3402_v11 = vmul.f32 0.008264462, %v3362_v26  ;;  %6531 = vst [vmem:[#allocation13_spill] sm:$0xff] %v5839_v13  ;;  %v3363_v29 = vadd.f32 %v3303_v51, %v5705_v17  ;;  %v5852_v45 = vmul.f32 %v3401_v9, %v5771_v62 }
 0x222   : > { %6530 = vst [vmem:[#allocation12_spill] sm:$0xff] %v5827_v40  ;;  %v3304_v32 = vadd.f32 %v3278_v43, %v3244_v48  ;;  %v5833_v15 = vmul.f32 0.008264462, %v3358_v3  ;;  %v3146_v14 = vld [vmem:[#allocation2 + $0xd2] sm:$0xff]  ;;  %v5842_v19 = vmul.f32 0.008264462, %v3360_v2  ;;  %v2710_v48 = vadd.f32 %v5827_v40, %v5825_v41 }
 0x223   : > { %v3186_v6 = vadd.f32 %v3146_v14, %v3106_v23  ;;  %v2828_v26 = vld [vmem:[#allocation2 + $0xee] sm:$0xff]  ;;  %v2631_v3 = vld [vmem:[#allocation2 + $0x123] sm:$0xff]  ;;  %6533 = vst [vmem:[#allocation15_spill] sm:$0xff] %v5847_v61  ;;  %v5849_v43 = vmul.f32 %v3401_v9, %v3401_v9  ;;  %6535 = vst [vmem:[#allocation17_spill] sm:$0xff] %v5852_v45  ;;  %v2867_v51 = vadd.f32 %v2827_v10, %v2787_v55  ;;  %v5854_v23 = vpop.f32.mrb[38].mxu0  ;;  %v5856_v35 = vpop.f32.mrb[37].mxu1 }
 0x224   : > { %6532 = vst [vmem:[#allocation14_spill] sm:$0xff] %v5842_v19  ;;  %v2671_v52 = vld [vmem:[#allocation2 + $0x124] sm:$0xff]  ;;  %v3338_v17 = vld [vmem:[#allocation2 + $0xb5] sm:$0xff]  ;;  %v2868_v2 = vadd.f32 %v2828_v26, %v2788_v28  ;;  %6536 = vst [vmem:[#allocation18_spill] sm:$0xff] %v5854_v23  ;;  %v5858_v31 = vmul.f32 %v3402_v11, %v3402_v11  ;;  %v5861_v14 = vmul.f32 %v3402_v11, %v5783_v39  ;;  %v5863_v36 = vpop.f32.mrb[39].mxu0  ;;  %v5865_v47 = vpop.f32.mrb[38].mxu1 }
 0x225   : > { %6534 = vst [vmem:[#allocation16_spill] sm:$0xff] %v5849_v43  ;;  %6537 = vst [vmem:[#allocation19_spill] sm:$0xff] %v5856_v35  ;;  %v3364_v44 = vadd.f32 %v3338_v17, %v3304_v32  ;;  %v2789_v61 = vadd.f32 %v2749_v20, %v2709_v53  ;;  %v5869_v62 = vmul.f32 %v5833_v15, %v5833_v15  ;;  %v3403_v55 = vmul.f32 0.008264462, %v3363_v29  ;;  %v3219_v28 = vld [vmem:[#allocation2 + $0xd3] sm:$0xff]  ;;  %v2907_v10 = vld [vmem:[#allocation2 + $0xe7] sm:$0xff] }
 0x226   : > { %6538 = vst [vmem:[#allocation20_spill] sm:$0xff] %v5858_v31  ;;  %6539 = vst [vmem:[#allocation21_spill] sm:$0xff] %v5861_v14  ;;  %v5873_v9 = vmul.f32 %v5839_v13, %v5839_v13  ;;  %v5875_v26 = vld [vmem:[#allocation2 + $0x10d] sm:$0xff]  ;;  %v2711_v39 = vadd.f32 %v2671_v52, %v2631_v3  ;;  %v5877_v11 = vpop.f32.mrb[39].mxu1  ;;  %v5881_v20 = vmul.f32 %v5842_v19, %v5842_v19  ;;  %v2633_v19 = vld [vmem:[#allocation2 + $0x143] sm:$0xff] }
 0x227   : > { %6540 = vst [vmem:[#allocation22_spill] sm:$0xff] %v5863_v36  ;;  %6541 = vst [vmem:[#allocation23_spill] sm:$0xff] %v5865_v47  ;;  %v3246_v32 = vadd.f32 %v3219_v28, %v3186_v6  ;;  %v3305_v53 = vadd.f32 %v3245_v5, %v5721_v34  ;;  %v2908_v17 = vld [vmem:[#allocation2 + $0xef] sm:$0xff]  ;;  %v3521_v3 = vadd.f32 %v5849_v43, %v5804_v8  ;;  %v3482_v6 = vmul.f32 2.0, %v5861_v14  ;;  %v2751_v23 = vld [vmem:[#allocation2 + $0x125] sm:$0xff] }
 0x228   : > { %6542 = vst [vmem:[#allocation24_spill] sm:$0xff] %v5869_v62  ;;  %6543 = vst [vmem:[#allocation25_spill] sm:$0xff] %v5873_v9  ;;  %v2790_v62 = vadd.f32 %v5875_v26, %v2710_v48  ;;  %v5885_v13 = vld [vmem:[#allocation2 + $0x12b] sm:$0xff]  ;;  %v3481_v9 = vmul.f32 2.0, %v5852_v45  ;;  %v2947_v52 = vadd.f32 %v2907_v10, %v2867_v51  ;;  %v2948_v36 = vadd.f32 %v2908_v17, %v2868_v2  ;;  %v3279_v48 = vld [vmem:[#allocation2 + $0xd4] sm:$0xff] }
 0x229   : > { %6544 = vst [vmem:[#allocation27_spill] sm:$0xff] %v5875_v26  ;;  %6545 = vst [vmem:[#allocation29_spill] sm:$0xff] %v5877_v11  ;;  %v5887_v29 = vld [vmem:[#allocation2 + $0x12c] sm:$0xff]  ;;  %v3522_v34 = vadd.f32 %v5858_v31, %v5814_v58  ;;  %v3404_v5 = vmul.f32 0.008264462, %v3364_v44  ;;  %v5895_v47 = vmul.f32 %v3403_v55, %v3403_v55  ;;  %v5898_v45 = vmul.f32 %v3403_v55, %v5787_v18 }
 0x22a   : > { %6546 = vst [vmem:[#allocation31_spill] sm:$0xff] %v5881_v20  ;;  %6547 = vst [vmem:[#allocation32_spill] sm:$0xff] %v5887_v29  ;;  %v2829_v11 = vld [vmem:[#allocation2 + $0x106] sm:$0xff]  ;;  %v2988_v28 = vld [vmem:[#allocation2 + $0xf0] sm:$0xff]  ;;  %v2712_v2 = vadd.f32 %v5887_v29, %v5885_v13  ;;  %v2791_v10 = vadd.f32 %v2751_v23, %v2711_v39  ;;  %v3306_v31 = vadd.f32 %v3279_v48, %v3246_v32  ;;  %v5910_v23 = vadd.f32 0.0001, %v3481_v9 }
 0x22b   : > { %v2673_v20 = vld [vmem:[#allocation2 + $0x144] sm:$0xff]  ;;  %v2869_v26 = vadd.f32 %v2829_v11, %v2789_v61  ;;  %6548 = vst [vmem:[#allocation35_spill] sm:$0xff] %v5895_v47  ;;  %6549 = vst [vmem:[#allocation37_spill] sm:$0xff] %v5898_v45  ;;  %v2830_v51 = vld [vmem:[#allocation2 + $0x10e] sm:$0xff]  ;;  %v3365_v44 = vadd.f32 %v3305_v53, %v5735_v50  ;;  %v3028_v55 = vadd.f32 %v2988_v28, %v2948_v36  ;;  %v5912_v39 = vadd.f32 0.0001, %v3521_v3 }
 0x22c   : > { %v5902_v17 = vld [vmem:[#allocation2 + $0x14b] sm:$0xff]  ;;  %v2870_v61 = vadd.f32 %v2830_v51, %v2790_v62  ;;  %v2713_v8 = vadd.f32 %v2673_v20, %v2633_v19  ;;  %6551 = vst [vmem:[#allocation40_spill] sm:$0xff] %v5910_v23  ;;  %v5916_v62 = vmul.f32 %v3404_v5, %v3404_v5  ;;  %v5919_v53 = vmul.f32 %v3404_v5, %v5789_v49  ;;  %v3339_v3 = vld [vmem:[#allocation2 + $0xd5] sm:$0xff] }
 0x22d   : > { %v5904_v14 = vld [vmem:[#allocation2 + $0x14c] sm:$0xff]  ;;  %6552 = vst [vmem:[#allocation44_spill] sm:$0xff] %v5912_v39  ;;  %v3483_v36 = vmul.f32 2.0, %v5898_v45  ;;  %v3523_v9 = vadd.f32 %v5895_v47, %v5822_v7  ;;  %v3366_v51 = vadd.f32 %v3339_v3, %v3306_v31 }
 0x22e   : > { %6550 = vst [vmem:[#allocation38_spill] sm:$0xff] %v5904_v14  ;;  %v2987_v43 = vld [vmem:[#allocation2 + $0xe8] sm:$0xff]  ;;  %v2714_v50 = vadd.f32 %v5904_v14, %v5902_v17  ;;  %6553 = vst [vmem:[#allocation45_spill] sm:$0xff] %v5916_v62  ;;  %v2990_v5 = vld [vmem:[#allocation2 + $0x110] sm:$0xff] }
 0x22f   : > { %v5907_v11 = vld [vmem:[#allocation2 + $0x12d] sm:$0xff]  ;;  %v3027_v18 = vadd.f32 %v2987_v43, %v2947_v52  ;;  %6554 = vst [vmem:[#allocation47_spill] sm:$0xff] %v5919_v53  ;;  %v5932_v31 = vadd.f32 0.0001, %v3483_v36  ;;  %v5942_v3 = vmul.f32 0.008264462, %v3366_v51 }
 0x230   : > { %v2831_v58 = vld [vmem:[#allocation2 + $0x126] sm:$0xff]  ;;  %v2792_v0 = vadd.f32 %v5907_v11, %v2712_v2  ;;  %v2832_v32 = vld [vmem:[#allocation2 + $0x12e] sm:$0xff]  ;;  %v3405_v2 = vmul.f32 0.008264462, %v3365_v44 }
 0x231   : > { %v2909_v35 = vld [vmem:[#allocation2 + $0x107] sm:$0xff]  ;;  %v2871_v29 = vadd.f32 %v2831_v58, %v2791_v10  ;;  %v2910_v19 = vld [vmem:[#allocation2 + $0x10f] sm:$0xff]  ;;  %6556 = vst [vmem:[#allocation49_spill] sm:$0xff] %v5932_v31 }
 0x232   : > { %v2949_v40 = vadd.f32 %v2909_v35, %v2869_v26  ;;  %v2872_v43 = vadd.f32 %v2832_v32, %v2792_v0  ;;  %v2911_v20 = vld [vmem:[#allocation2 + $0x127] sm:$0xff]  ;;  %v3068_v35 = vld [vmem:[#allocation2 + $0xf1] sm:$0xff]  ;;  %v2950_v52 = vadd.f32 %v2910_v19, %v2870_v61  ;;  %v5926_v0 = vadd.f32 0.0001, %v3482_v6 }
 0x233   : > { %v2753_v58 = vld [vmem:[#allocation2 + $0x145] sm:$0xff]  ;;  %v2951_v48 = vadd.f32 %v2911_v20, %v2871_v29  ;;  %v3108_v49 = vadd.f32 %v3068_v35, %v3028_v55  ;;  %v5924_v45 = vld [vmem:[#allocation2 + $0x14d] sm:$0xff]  ;;  %v5928_v32 = vadd.f32 0.0001, %v3522_v34  ;;  %v3524_v29 = vadd.f32 %v5916_v62, %v5831_v37 }
 0x234   : > { %v3067_v26 = vld [vmem:[#allocation2 + $0xe9] sm:$0xff]  ;;  %v2793_v28 = vadd.f32 %v2753_v58, %v2713_v8  ;;  %6555 = vst [vmem:[#allocation48_spill] sm:$0xff] %v5926_v0  ;;  %v3148_v39 = vld [vmem:[#allocation2 + $0xf2] sm:$0xff]  ;;  %v2794_v61 = vadd.f32 %v5924_v45, %v2714_v50  ;;  %v3484_v8 = vmul.f32 2.0, %v5919_v53  ;;  %v5936_v19 = vadd.f32 0.0001, %v3523_v9 }
 0x235   : > { %v3107_v10 = vadd.f32 %v3067_v26, %v3027_v18  ;;  %v2989_v23 = vld [vmem:[#allocation2 + $0x108] sm:$0xff]  ;;  %v3030_v20 = vadd.f32 %v2990_v5, %v2950_v52  ;;  %v5945_v36 = vmul.f32 %v3405_v2, %v5796_v56  ;;  %v3070_v9 = vld [vmem:[#allocation2 + $0x111] sm:$0xff]  ;;  %v5949_v5 = vmul.f32 %v3405_v2, %v3405_v2 }
 0x236   : > { %v3029_v47 = vadd.f32 %v2989_v23, %v2949_v40  ;;  %v2912_v7 = vld [vmem:[#allocation2 + $0x12f] sm:$0xff]  ;;  %v2833_v18 = vld [vmem:[#allocation2 + $0x146] sm:$0xff]  ;;  %6557 = vst [vmem:[#allocation50_spill] sm:$0xff] %v5936_v19 }
 0x237   : > { %v2991_v14 = vld [vmem:[#allocation2 + $0x128] sm:$0xff]  ;;  %v2952_v44 = vadd.f32 %v2912_v7, %v2872_v43  ;;  %v2873_v23 = vadd.f32 %v2833_v18, %v2793_v28  ;;  %v3188_v7 = vadd.f32 %v3148_v39, %v3108_v49  ;;  %v2992_v0 = vld [vmem:[#allocation2 + $0x130] sm:$0xff]  ;;  %v5947_v28 = vadd.f32 0.0001, %v3484_v8 }
 0x238   : > { %v2635_v55 = vld [vmem:[#allocation2 + $0x163] sm:$0xff]  ;;  %v3031_v40 = vadd.f32 %v2991_v14, %v2951_v48  ;;  %v5938_v58 = vld [vmem:[#allocation2 + $0x16b] sm:$0xff]  ;;  %v5959_v8 = vmul.f32 %v5942_v3, %v5833_v15  ;;  %v3220_v2 = vld [vmem:[#allocation2 + $0xf3] sm:$0xff] }
 0x239   : > { %v2675_v6 = vld [vmem:[#allocation2 + $0x164] sm:$0xff]  ;;  %v5940_v50 = vld [vmem:[#allocation2 + $0x16c] sm:$0xff]  ;;  %v3032_v51 = vadd.f32 %v2992_v0, %v2952_v44 }
 0x23a   : > { %v3147_v34 = vld [vmem:[#allocation2 + $0xea] sm:$0xff]  ;;  %v2715_v48 = vadd.f32 %v2675_v6, %v2635_v55  ;;  %v2716_v56 = vadd.f32 %v5940_v50, %v5938_v58  ;;  %v3485_v6 = vmul.f32 2.0, %v5945_v36 }
 0x23b   : > { %v3187_v35 = vadd.f32 %v3147_v34, %v3107_v10  ;;  %v3069_v43 = vld [vmem:[#allocation2 + $0x109] sm:$0xff]  ;;  %v3110_v10 = vadd.f32 %v3070_v9, %v3030_v20  ;;  %v3248_v20 = vadd.f32 %v3220_v2, %v3188_v7 }
 0x23c   : > { %v2834_v26 = vld [vmem:[#allocation2 + $0x14e] sm:$0xff]  ;;  %v3109_v53 = vadd.f32 %v3069_v43, %v3029_v47  ;;  %v2755_v39 = vld [vmem:[#allocation2 + $0x165] sm:$0xff] }
 0x23d   : > { %v2913_v31 = vld [vmem:[#allocation2 + $0x147] sm:$0xff]  ;;  %v2874_v52 = vadd.f32 %v2834_v26, %v2794_v61  ;;  %v2914_v19 = vld [vmem:[#allocation2 + $0x14f] sm:$0xff]  ;;  %v2795_v47 = vadd.f32 %v2755_v39, %v2715_v48  ;;  %v5955_v61 = vadd.f32 0.0001, %v3524_v29  ;;  %v3247_v0 = vadd.f32 %v3187_v35, %v5775_v59 }
 0x23e   : > { %v2953_v14 = vadd.f32 %v2913_v31, %v2873_v23  ;;  %v3071_v18 = vld [vmem:[#allocation2 + $0x129] sm:$0xff]  ;;  %v3150_v29 = vld [vmem:[#allocation2 + $0x112] sm:$0xff]  ;;  %v4432_v48 = vadd.f32 %v5693_v54, %v5709_v25  ;;  %v4433_v59 = vadd.f32 %v5699_v21, %v5713_v12  ;;  %v3525_v35 = vadd.f32 %v5949_v5, %v5837_v33 }
 0x23f   : > { %v3111_v49 = vadd.f32 %v3071_v18, %v3031_v40  ;;  %v2954_v34 = vadd.f32 %v2914_v19, %v2874_v52  ;;  %v5953_v62 = vld [vmem:[#allocation2 + $0x16d] sm:$0xff]  ;;  %v3190_v18 = vadd.f32 %v3150_v29, %v3110_v10  ;;  %v4434_v54 = vadd.f32 %v5711_v57, %v5726_v46 }
 0x240   : > { %v3149_v31 = vld [vmem:[#allocation2 + $0x10a] sm:$0xff]  ;;  %v2796_v55 = vadd.f32 %v5953_v62, %v2716_v56  ;;  %v3280_v39 = vld [vmem:[#allocation2 + $0xf4] sm:$0xff]  ;;  %2598 = vst.msk [vmem:[#allocation2 + $0x190] sm:$0xff] %vm276_vm0, %v4432_v48  ;;  %2597 = vst.msk [vmem:[#allocation2 + $0x188] sm:$0xff] %vm276_vm0, %v4433_v59  ;;  %v5977_v12 = vadd.f32 0.0001, %v3485_v6  ;;  %v4436_v57 = vadd.f32 %v5728_v24, %v5743_v1  ;;  %v4437_v46 = vadd.f32 %v5739_v22, %v5751_v42 }
 0x241   : > { %v2993_v44 = vld [vmem:[#allocation2 + $0x148] sm:$0xff]  ;;  %v3189_v19 = vadd.f32 %v3149_v31, %v3109_v53  ;;  %v3072_v40 = vld [vmem:[#allocation2 + $0x131] sm:$0xff]  ;;  %v3308_v10 = vadd.f32 %v3280_v39, %v3248_v20  ;;  %2600 = vst.msk [vmem:[#allocation2 + $0x1b0] sm:$0xff] %vm276_vm0, %v4434_v54  ;;  %v4438_v24 = vadd.f32 %v5745_v38, %v5761_v60  ;;  %v4439_v22 = vadd.f32 %v5753_v4, %v5766_v27  ;;  %v6565_v27 = vld [vmem:[#allocation41_spill] sm:$0xff] }
 0x242   : > { %v2994_v23 = vld [vmem:[#allocation2 + $0x150] sm:$0xff]  ;;  %v3033_v43 = vadd.f32 %v2993_v44, %v2953_v14  ;;  %v3112_v26 = vadd.f32 %v3072_v40, %v3032_v51  ;;  %v2835_v15 = vld [vmem:[#allocation2 + $0x166] sm:$0xff]  ;;  %v3307_v14 = vadd.f32 %v3247_v0, %v5777_v30  ;;  %2602 = vst.msk [vmem:[#allocation2 + $0x1d0] sm:$0xff] %vm276_vm0, %v4436_v57  ;;  %2601 = vst.msk [vmem:[#allocation2 + $0x1c8] sm:$0xff] %vm276_vm0, %v4437_v46 }
 0x243   : > { %v3151_v9 = vld [vmem:[#allocation2 + $0x12a] sm:$0xff]  ;;  %v3034_v52 = vadd.f32 %v2994_v23, %v2954_v34  ;;  %v2875_v56 = vadd.f32 %v2835_v15, %v2795_v47  ;;  %v3152_v34 = vld [vmem:[#allocation2 + $0x132] sm:$0xff]  ;;  %v6561_v15 = vld [vmem:[#allocation33_spill] sm:$0xff]  ;;  %2604 = vst.msk [vmem:[#allocation2 + $0x1f0] sm:$0xff] %vm276_vm0, %v4438_v24 }
 0x244   : > { %v3191_v7 = vadd.f32 %v3151_v9, %v3111_v49  ;;  %v2836_v53 = vld [vmem:[#allocation2 + $0x16e] sm:$0xff]  ;;  %v3249_v49 = vadd.f32 %v3189_v19, %v5825_v41  ;;  %v3192_v31 = vadd.f32 %v3152_v34, %v3112_v26  ;;  %v3367_v23 = vadd.f32 %v3307_v14, %v5816_v16  ;;  %v6560_v42 = vld [vmem:[#allocation12_spill] sm:$0xff]  ;;  %2603 = vst.msk [vmem:[#allocation2 + $0x1e8] sm:$0xff] %vm276_vm0, %v4439_v22  ;;  %v6577_v22 = vld [vmem:[#allocation29_spill] sm:$0xff] }
 0x245   : > { %v3073_v51 = vld [vmem:[#allocation2 + $0x149] sm:$0xff]  ;;  %v2876_v2 = vadd.f32 %v2836_v53, %v2796_v55  ;;  %v3074_v47 = vld [vmem:[#allocation2 + $0x151] sm:$0xff] }
 0x246   : > { %v6558_v21 = vld [vmem:[#allocation26_spill] sm:$0xff]  ;;  %v3113_v30 = vadd.f32 %v3073_v51, %v3033_v43  ;;  %v3221_v0 = vld [vmem:[#allocation2 + $0x113] sm:$0xff]  ;;  %v3114_v44 = vadd.f32 %v3074_v47, %v3034_v52  ;;  %v3251_v6 = vadd.f32 %v3191_v7, %v5885_v13  ;;  %v3309_v13 = vadd.f32 %v3249_v49, %v6560_v42 }
 0x247   : > { %v4435_v25 = vadd.f32 %v6558_v21, %v5737_v63  ;;  %6559 = vst [vmem:[#allocation26_spill] sm:$0xff] %v5977_v12  ;;  %v2915_v55 = vld [vmem:[#allocation2 + $0x167] sm:$0xff]  ;;  %v5986_v63 = vadd.f32 0.0001, %v3525_v35  ;;  %v3250_v41 = vadd.f32 %v3221_v0, %v3190_v18  ;;  %v2916_v20 = vld [vmem:[#allocation2 + $0x16f] sm:$0xff]  ;;  %v6562_v16 = vld [vmem:[#allocation28_spill] sm:$0xff] }
 0x248   : > { %v2955_v19 = vadd.f32 %v2915_v55, %v2875_v56  ;;  %v3340_v40 = vld [vmem:[#allocation2 + $0xf5] sm:$0xff]  ;;  %v3153_v43 = vld [vmem:[#allocation2 + $0x14a] sm:$0xff]  ;;  %v2956_v29 = vadd.f32 %v2916_v20, %v2876_v2  ;;  %v4440_v48 = vadd.f32 %v6562_v16, %v6561_v15  ;;  %v3486_v20 = vmul.f32 2.0, %v5959_v8 }
 0x249   : > { %2599 = vst.msk [vmem:[#allocation2 + $0x1a8] sm:$0xff] %vm276_vm0, %v4435_v25  ;;  %v3368_v1 = vadd.f32 %v3340_v40, %v3308_v10  ;;  %v3222_v26 = vld [vmem:[#allocation2 + $0x133] sm:$0xff]  ;;  %v3193_v52 = vadd.f32 %v3153_v43, %v3113_v30  ;;  %v2995_v7 = vld [vmem:[#allocation2 + $0x168] sm:$0xff] }
 0x24a   : > { %v3154_v9 = vld [vmem:[#allocation2 + $0x152] sm:$0xff]  ;;  %v3252_v35 = vadd.f32 %v3222_v26, %v3192_v31  ;;  %v6564_v60 = vld [vmem:[#allocation30_spill] sm:$0xff]  ;;  %v3035_v54 = vadd.f32 %v2995_v7, %v2955_v19  ;;  %2606 = vst.msk [vmem:[#allocation2 + $0x210] sm:$0xff] %vm276_vm0, %v4440_v48  ;;  %v6018_v19 = vmul.f32 0.008264462, %v3367_v23 }
 0x24b   : > { %v3281_v59 = vld [vmem:[#allocation2 + $0x114] sm:$0xff]  ;;  %v3194_v18 = vadd.f32 %v3154_v9, %v3114_v44  ;;  %v6566_v53 = vld [vmem:[#allocation34_spill] sm:$0xff]  ;;  %v3253_v40 = vadd.f32 %v3193_v52, %v5902_v17  ;;  %v6034_v17 = vmul.f32 %v5942_v3, %v5942_v3  ;;  %v6036_v52 = vmul.f32 0.008264462, %v3368_v1 }
 0x24c   : > { %v6563_v38 = vld [vmem:[#allocation36_spill] sm:$0xff]  ;;  %v4442_v56 = vadd.f32 %v6566_v53, %v6565_v27  ;;  %v3310_v39 = vadd.f32 %v3281_v59, %v3250_v41  ;;  %v2996_v2 = vld [vmem:[#allocation2 + $0x170] sm:$0xff]  ;;  %v6568_v21 = vld [vmem:[#allocation46_spill] sm:$0xff]  ;;  %6576 = vst [vmem:[#allocation12_spill] sm:$0xff] %v6018_v19  ;;  %v6044_v3 = vadd.f32 0.0001, %v3486_v20  ;;  %v6048_v1 = vmul.f32 %v6018_v19, %v6018_v19 }
 0x24d   : > { %v4441_v4 = vadd.f32 %v6564_v60, %v6563_v38  ;;  %v6567_v14 = vld [vmem:[#allocation32_spill] sm:$0xff]  ;;  %v6569_v25 = vld [vmem:[#allocation39_spill] sm:$0xff]  ;;  %v3036_v47 = vadd.f32 %v2996_v2, %v2956_v29  ;;  %v6573_v55 = vld [vmem:[#allocation10_spill] sm:$0xff]  ;;  %6580 = vst [vmem:[#allocation33_spill] sm:$0xff] %v6036_v52 }
 0x24e   : > { %v3311_v51 = vadd.f32 %v3251_v6, %v6567_v14  ;;  %v4443_v10 = vadd.f32 %v6569_v25, %v6568_v21  ;;  %v3282_v49 = vld [vmem:[#allocation2 + $0x134] sm:$0xff]  ;;  %2608 = vst.msk [vmem:[#allocation2 + $0x230] sm:$0xff] %vm276_vm0, %v4442_v56  ;;  %v6575_v41 = vld [vmem:[#allocation18_spill] sm:$0xff]  ;;  %6581 = vst [vmem:[#allocation28_spill] sm:$0xff] %v6044_v3 }
 0x24f   : > { %v3223_v34 = vld [vmem:[#allocation2 + $0x153] sm:$0xff]  ;;  %2605 = vst.msk [vmem:[#allocation2 + $0x208] sm:$0xff] %vm276_vm0, %v4441_v4  ;;  %v2637_v43 = vld [vmem:[#allocation2 + $0x183] sm:$0xff]  ;;  %v6021_v29 = vld [vmem:[#allocation2 + $0x18b] sm:$0xff]  ;;  %v3312_v48 = vadd.f32 %v3282_v49, %v3252_v35 }
 0x250   : > { %v6570_v30 = vld [vmem:[#allocation15_spill] sm:$0xff]  ;;  %v2677_v24 = vld [vmem:[#allocation2 + $0x184] sm:$0xff]  ;;  %2607 = vst.msk [vmem:[#allocation2 + $0x228] sm:$0xff] %vm276_vm0, %v4443_v10  ;;  %v3254_v59 = vadd.f32 %v3223_v34, %v3194_v18  ;;  %v3371_v4 = vadd.f32 %v3311_v51, %v5907_v11 }
 0x251   : > { %v6571_v0 = vld [vmem:[#allocation43_spill] sm:$0xff]  ;;  %v6578_v42 = vld [vmem:[#allocation22_spill] sm:$0xff]  ;;  %v2717_v23 = vadd.f32 %v2677_v24, %v2637_v43 }
 0x252   : > { %v4444_v31 = vadd.f32 %v6571_v0, %v6570_v30  ;;  %v6572_v44 = vld [vmem:[#allocation19_spill] sm:$0xff]  ;;  %v4447_v26 = vadd.f32 %v6578_v42, %v6577_v22  ;;  %v2757_v18 = vld [vmem:[#allocation2 + $0x185] sm:$0xff] }
 0x253   : > { %v4445_v57 = vadd.f32 %v6573_v55, %v6572_v44  ;;  %v6574_v46 = vld [vmem:[#allocation23_spill] sm:$0xff]  ;;  %v2797_v14 = vadd.f32 %v2757_v18, %v2717_v23  ;;  %v6582_v21 = vld [vmem:[#allocation38_spill] sm:$0xff]  ;;  %v6060_v55 = vmul.f32 %v6036_v52, %v6036_v52 }
 0x254   : > { %v4446_v6 = vadd.f32 %v6575_v41, %v6574_v46  ;;  %v3341_v9 = vld [vmem:[#allocation2 + $0x115] sm:$0xff]  ;;  %v6027_v7 = vld [vmem:[#allocation2 + $0x18c] sm:$0xff]  ;;  %2610 = vst.msk [vmem:[#allocation2 + $0x250] sm:$0xff] %vm276_vm0, %v4444_v31  ;;  %2611 = vst.msk [vmem:[#allocation2 + $0x268] sm:$0xff] %vm276_vm0, %v4447_v26  ;;  %v3313_v25 = vadd.f32 %v3253_v40, %v6582_v21  ;;  %v6066_v40 = vmul.f32 0.008264462, %v3371_v4 }
 0x255   : > { %v6579_v15 = vld [vmem:[#allocation27_spill] sm:$0xff]  ;;  %2609 = vst.msk [vmem:[#allocation2 + $0x248] sm:$0xff] %vm276_vm0, %v4445_v57  ;;  %v3370_v38 = vadd.f32 %v3341_v9, %v3310_v39  ;;  %v2718_v35 = vadd.f32 %v6027_v7, %v6021_v29  ;;  %v2837_v49 = vld [vmem:[#allocation2 + $0x186] sm:$0xff]  ;;  %v6583_v31 = vld [vmem:[#allocation24_spill] sm:$0xff] }
 0x256   : > { %v3369_v16 = vadd.f32 %v3309_v13, %v6579_v15  ;;  %2612 = vst.msk [vmem:[#allocation2 + $0x270] sm:$0xff] %vm276_vm0, %v4446_v6  ;;  %v3076_v60 = vld [vmem:[#allocation2 + $0x171] sm:$0xff]  ;;  %v3075_v13 = vld [vmem:[#allocation2 + $0x169] sm:$0xff]  ;;  %v2877_v0 = vadd.f32 %v2837_v49, %v2797_v14  ;;  %v6056_v44 = vadd.f32 %v6034_v17, %v6583_v31 }
 0x257   : > { %v3115_v27 = vadd.f32 %v3075_v13, %v3035_v54  ;;  %v3116_v53 = vadd.f32 %v3076_v60, %v3036_v47  ;;  %v6042_v56 = vld [vmem:[#allocation2 + $0x18d] sm:$0xff]  ;;  %v3342_v39 = vld [vmem:[#allocation2 + $0x135] sm:$0xff]  ;;  %v6062_v57 = vmul.f32 0.008264462, %v3370_v38  ;;  %v2639_v6 = vld [vmem:[#allocation2 + $0x1a3] sm:$0xff] }
 0x258   : > { %v3283_v2 = vld [vmem:[#allocation2 + $0x154] sm:$0xff]  ;;  %v2798_v10 = vadd.f32 %v6042_v56, %v2718_v35  ;;  %v6052_v34 = vmul.f32 0.008264462, %v3369_v16  ;;  %v3372_v11 = vadd.f32 %v3342_v39, %v3312_v48  ;;  %v3155_v47 = vld [vmem:[#allocation2 + $0x16a] sm:$0xff]  ;;  %v3373_v16 = vadd.f32 %v3313_v25, %v5924_v45  ;;  %v6584_v60 = vld [vmem:[#allocation25_spill] sm:$0xff] }
 0x259   : > { %v3314_v51 = vadd.f32 %v3283_v2, %v3254_v59  ;;  %v3156_v54 = vld [vmem:[#allocation2 + $0x172] sm:$0xff]  ;;  %v2917_v41 = vld [vmem:[#allocation2 + $0x187] sm:$0xff]  ;;  %v3195_v43 = vadd.f32 %v3155_v47, %v3115_v27  ;;  %v6075_v13 = vadd.f32 %v6048_v1, %v6584_v60 }
 0x25a   : > { %v2838_v30 = vld [vmem:[#allocation2 + $0x18e] sm:$0xff]  ;;  %v3196_v24 = vadd.f32 %v3156_v54, %v3116_v53  ;;  %v2957_v42 = vadd.f32 %v2917_v41, %v2877_v0  ;;  %v2679_v26 = vld [vmem:[#allocation2 + $0x1a4] sm:$0xff]  ;;  %v6077_v35 = vmul.f32 0.008264462, %v3372_v11 }
 0x25b   : > { %v2878_v46 = vadd.f32 %v2838_v30, %v2798_v10  ;;  %v6064_v20 = vld [vmem:[#allocation2 + $0x1ab] sm:$0xff]  ;;  %v3343_v15 = vld [vmem:[#allocation2 + $0x155] sm:$0xff]  ;;  %v2719_v23 = vadd.f32 %v2679_v26, %v2639_v6  ;;  %v6586_v47 = vld [vmem:[#allocation9_spill] sm:$0xff] }
 0x25c   : > { %v2918_v22 = vld [vmem:[#allocation2 + $0x18f] sm:$0xff]  ;;  %v3374_v18 = vadd.f32 %v3343_v15, %v3314_v51  ;;  %v2759_v53 = vld [vmem:[#allocation2 + $0x1a5] sm:$0xff]  ;;  %v3255_v51 = vadd.f32 %v3195_v43, %v5938_v58 }
 0x25d   : > { %v6068_v9 = vld [vmem:[#allocation2 + $0x1ac] sm:$0xff]  ;;  %v2958_v48 = vadd.f32 %v2918_v22, %v2878_v46  ;;  %v2799_v49 = vadd.f32 %v2759_v53, %v2719_v23  ;;  %v3344_v45 = vld [vmem:[#allocation2 + $0x175] sm:$0xff] }
 0x25e   : > { %v2997_v59 = vld [vmem:[#allocation2 + $0x188] sm:$0xff]  ;;  %v2720_v38 = vadd.f32 %v6068_v9, %v6064_v20  ;;  %v2998_v4 = vld [vmem:[#allocation2 + $0x190] sm:$0xff]  ;;  %v6093_v43 = vmul.f32 0.008264462, %v3374_v18 }
 0x25f   : > { %v3037_v27 = vadd.f32 %v2997_v59, %v2957_v42  ;;  %v6079_v14 = vld [vmem:[#allocation2 + $0x1ad] sm:$0xff]  ;;  %v3038_v25 = vadd.f32 %v2998_v4, %v2958_v48  ;;  %v6087_v42 = vmul.f32 0.008264462, %v3373_v16  ;;  %v2641_v4 = vld [vmem:[#allocation2 + $0x1c3] sm:$0xff] }
 0x260   : > { %v6585_v39 = vld [vmem:[#allocation42_spill] sm:$0xff]  ;;  %v3224_v2 = vld [vmem:[#allocation2 + $0x173] sm:$0xff]  ;;  %v2800_v54 = vadd.f32 %v6079_v14, %v2720_v38 }
 0x261   : > { %v3078_v21 = vld [vmem:[#allocation2 + $0x191] sm:$0xff]  ;;  %v3077_v10 = vld [vmem:[#allocation2 + $0x189] sm:$0xff]  ;;  %v3256_v30 = vadd.f32 %v3224_v2, %v3196_v24 }
 0x262   : > { %v3158_v0 = vld [vmem:[#allocation2 + $0x192] sm:$0xff]  ;;  %v3117_v46 = vadd.f32 %v3077_v10, %v3037_v27  ;;  %v3157_v41 = vld [vmem:[#allocation2 + $0x18a] sm:$0xff]  ;;  %v3118_v26 = vadd.f32 %v3078_v21, %v3038_v25 }
 0x263   : > { %v2839_v6 = vld [vmem:[#allocation2 + $0x1a6] sm:$0xff]  ;;  %v2840_v22 = vld [vmem:[#allocation2 + $0x1ae] sm:$0xff] }
 0x264   : > { %v2879_v15 = vadd.f32 %v2839_v6, %v2799_v49  ;;  %v2880_v48 = vadd.f32 %v2840_v22, %v2800_v54  ;;  %v2919_v59 = vld [vmem:[#allocation2 + $0x1a7] sm:$0xff]  ;;  %v2920_v23 = vld [vmem:[#allocation2 + $0x1af] sm:$0xff]  ;;  %v3197_v24 = vadd.f32 %v3157_v41, %v3117_v46  ;;  %v3198_v10 = vadd.f32 %v3158_v0, %v3118_v26 }
 0x265   : > { %v6587_v38 = vld [vmem:[#allocation11_spill] sm:$0xff]  ;;  %v2681_v2 = vld [vmem:[#allocation2 + $0x1c4] sm:$0xff]  ;;  %v3315_v22 = vadd.f32 %v3255_v51, %v5940_v50  ;;  %v3461_v50 = vsub.f32 %v6087_v42, %v5837_v33 }
 0x266   : > { %v6095_v27 = vld [vmem:[#allocation2 + $0x1cb] sm:$0xff]  ;;  %v3284_v21 = vld [vmem:[#allocation2 + $0x174] sm:$0xff]  ;;  %v2959_v49 = vadd.f32 %v2919_v59, %v2879_v15  ;;  %v2960_v54 = vadd.f32 %v2920_v23, %v2880_v48  ;;  %v2721_v6 = vadd.f32 %v2681_v2, %v2641_v4  ;;  %v3257_v11 = vadd.f32 %v3197_v24, %v6021_v29 }
 0x267   : > { %v6097_v16 = vld [vmem:[#allocation2 + $0x1cc] sm:$0xff]  ;;  %v3316_v53 = vadd.f32 %v3284_v21, %v3256_v30  ;;  %v3285_v3 = vld [vmem:[#allocation2 + $0x194] sm:$0xff] }
 0x268   : > { %v3225_v25 = vld [vmem:[#allocation2 + $0x193] sm:$0xff]  ;;  %v2999_v18 = vld [vmem:[#allocation2 + $0x1a8] sm:$0xff]  ;;  %v2722_v46 = vadd.f32 %v6097_v16, %v6095_v27  ;;  %v3317_v30 = vadd.f32 %v3257_v11, %v6027_v7 }
 0x269   : > { %v3000_v58 = vld [vmem:[#allocation2 + $0x1b0] sm:$0xff]  ;;  %v2761_v41 = vld [vmem:[#allocation2 + $0x1c5] sm:$0xff]  ;;  %v3258_v52 = vadd.f32 %v3225_v25, %v3198_v10  ;;  %v3039_v12 = vadd.f32 %v2999_v18, %v2959_v49 }
 0x26a   : > { %v3080_v19 = vld [vmem:[#allocation2 + $0x1b1] sm:$0xff]  ;;  %v3040_v0 = vadd.f32 %v3000_v58, %v2960_v54  ;;  %v2801_v15 = vadd.f32 %v2761_v41, %v2721_v6  ;;  %v3079_v59 = vld [vmem:[#allocation2 + $0x1a9] sm:$0xff]  ;;  %v6112_v54 = vadd.f32 %v3315_v22, %v5953_v62  ;;  %v6114_v6 = vadd.f32 %v3344_v45, %v3316_v53 }
 0x26b   : > { %v6103_v26 = vld [vmem:[#allocation2 + $0x1cd] sm:$0xff]  ;;  %v3345_v51 = vld [vmem:[#allocation2 + $0x195] sm:$0xff]  ;;  %v3318_v24 = vadd.f32 %v3285_v3, %v3258_v52  ;;  %v3119_v2 = vadd.f32 %v3079_v59, %v3039_v12  ;;  %v3377_v18 = vadd.f32 %v3317_v30, %v6042_v56  ;;  %v2643_v11 = vld [vmem:[#allocation2 + $0x1e3] sm:$0xff] }
 0x26c   : > { %v3160_v48 = vld [vmem:[#allocation2 + $0x1b2] sm:$0xff]  ;;  %v2802_v23 = vadd.f32 %v6103_v26, %v2722_v46  ;;  %v2841_v4 = vld [vmem:[#allocation2 + $0x1c6] sm:$0xff]  ;;  %v3120_v58 = vadd.f32 %v3080_v19, %v3040_v0 }
 0x26d   : > { %v3159_v21 = vld [vmem:[#allocation2 + $0x1aa] sm:$0xff]  ;;  %v2881_v10 = vadd.f32 %v2841_v4, %v2801_v15  ;;  %v3378_v29 = vadd.f32 %v3345_v51, %v3318_v24  ;;  %v3417_v15 = vmul.f32 0.008264462, %v3377_v18  ;;  %v3226_v59 = vld [vmem:[#allocation2 + $0x1b3] sm:$0xff] }
 0x26e   : > { %v2842_v25 = vld [vmem:[#allocation2 + $0x1ce] sm:$0xff]  ;;  %v2683_v46 = vld [vmem:[#allocation2 + $0x1e4] sm:$0xff]  ;;  %v3199_v52 = vadd.f32 %v3159_v21, %v3119_v2  ;;  %v3200_v12 = vadd.f32 %v3160_v48, %v3120_v58  ;;  %v6588_v2 = vld [vmem:[#allocation16_spill] sm:$0xff] }
 0x26f   : > { %v2921_v49 = vld [vmem:[#allocation2 + $0x1c7] sm:$0xff]  ;;  %v2882_v7 = vadd.f32 %v2842_v25, %v2802_v23  ;;  %v2922_v19 = vld [vmem:[#allocation2 + $0x1cf] sm:$0xff]  ;;  %v2723_v45 = vadd.f32 %v2683_v46, %v2643_v11  ;;  %v3418_v53 = vmul.f32 0.008264462, %v3378_v29  ;;  %v3465_v58 = vsub.f32 %v3417_v15, %v6588_v2 }
 0x270   : > { %v6117_v41 = vld [vmem:[#allocation2 + $0x1eb] sm:$0xff]  ;;  %v2961_v3 = vadd.f32 %v2921_v49, %v2881_v10  ;;  %v3259_v30 = vadd.f32 %v3199_v52, %v6064_v20  ;;  %v3260_v23 = vadd.f32 %v3226_v59, %v3200_v12  ;;  %v3286_v21 = vld [vmem:[#allocation2 + $0x1b4] sm:$0xff] }
 0x271   : > { %v6119_v0 = vld [vmem:[#allocation2 + $0x1ec] sm:$0xff]  ;;  %v2962_v62 = vadd.f32 %v2922_v19, %v2882_v7  ;;  %v6589_v7 = vld [vmem:[#allocation20_spill] sm:$0xff] }
 0x272   : > { %v3001_v22 = vld [vmem:[#allocation2 + $0x1c8] sm:$0xff]  ;;  %v2724_v56 = vadd.f32 %v6119_v0, %v6117_v41  ;;  %v3002_v4 = vld [vmem:[#allocation2 + $0x1d0] sm:$0xff]  ;;  %v3466_v11 = vsub.f32 %v3418_v53, %v6589_v7  ;;  %v3319_v29 = vadd.f32 %v3259_v30, %v6068_v9  ;;  %v3320_v46 = vadd.f32 %v3286_v21, %v3260_v23 }
 0x273   : > { %v3041_v51 = vadd.f32 %v3001_v22, %v2961_v3  ;;  %v2763_v24 = vld [vmem:[#allocation2 + $0x1e5] sm:$0xff]  ;;  %v6124_v48 = vld [vmem:[#allocation2 + $0x1ed] sm:$0xff]  ;;  %v3042_v25 = vadd.f32 %v3002_v4, %v2962_v62  ;;  %v6590_v3 = vsub.f32 %v6052_v34, %v6585_v39  ;;  %v3346_v15 = vld [vmem:[#allocation2 + $0x1b5] sm:$0xff] }
 0x274   : > { %v3081_v10 = vld [vmem:[#allocation2 + $0x1c9] sm:$0xff]  ;;  %v2803_v49 = vadd.f32 %v2763_v24, %v2723_v45  ;;  %v2804_v18 = vadd.f32 %v6124_v48, %v2724_v56  ;;  %v3082_v20 = vld [vmem:[#allocation2 + $0x1d1] sm:$0xff]  ;;  %v6591_v56 = vsub.f32 %v6062_v57, %v6586_v47  ;;  %v3379_v9 = vadd.f32 %v3319_v29, %v6079_v14 }
 0x275   : > { %v3121_v52 = vadd.f32 %v3081_v10, %v3041_v51  ;;  %v2843_v12 = vld [vmem:[#allocation2 + $0x1e6] sm:$0xff]  ;;  %v2844_v19 = vld [vmem:[#allocation2 + $0x1ee] sm:$0xff]  ;;  %v3537_v59 = vadd.f32 %v3465_v58, %v6590_v3  ;;  %v3122_v22 = vadd.f32 %v3082_v20, %v3042_v25  ;;  %v3380_v30 = vadd.f32 %v3346_v15, %v3320_v46  ;;  %v6592_v47 = vld [vmem:[#allocation44_spill] sm:$0xff] }
 0x276   : > { %v3161_v62 = vld [vmem:[#allocation2 + $0x1ca] sm:$0xff]  ;;  %v2883_v4 = vadd.f32 %v2843_v12, %v2803_v49  ;;  %v2884_v45 = vadd.f32 %v2844_v19, %v2804_v18  ;;  %v3538_v53 = vadd.f32 %v3466_v11, %v6591_v56  ;;  %v3162_v23 = vld [vmem:[#allocation2 + $0x1d2] sm:$0xff]  ;;  %v3419_v18 = vmul.f32 0.008264462, %v3379_v9  ;;  %v6594_v15 = vld [vmem:[#allocation45_spill] sm:$0xff] }
 0x277   : > { %v3201_v51 = vadd.f32 %v3161_v62, %v3121_v52  ;;  %v2923_v24 = vld [vmem:[#allocation2 + $0x1e7] sm:$0xff]  ;;  %v2924_v2 = vld [vmem:[#allocation2 + $0x1ef] sm:$0xff]  ;;  %v3545_v21 = vadd.f32 0.0009, %v3537_v59  ;;  %v3202_v34 = vadd.f32 %v3162_v23, %v3122_v22  ;;  %v3420_v20 = vmul.f32 0.008264462, %v3380_v30 }
 0x278   : > { %v3227_v10 = vld [vmem:[#allocation2 + $0x1d3] sm:$0xff]  ;;  %v2963_v58 = vadd.f32 %v2923_v24, %v2883_v4  ;;  %v2964_v25 = vadd.f32 %v2924_v2, %v2884_v45  ;;  %v3003_v7 = vld [vmem:[#allocation2 + $0x1e8] sm:$0xff]  ;;  %v3546_v49 = vadd.f32 0.0009, %v3538_v53 }
 0x279   : > { %v3004_v39 = vld [vmem:[#allocation2 + $0x1f0] sm:$0xff]  ;;  %v3261_v57 = vadd.f32 %v3201_v51, %v6095_v27  ;;  %v6139_v11 = vmul.f32 %v3545_v21, %v6592_v47  ;;  %v3262_v29 = vadd.f32 %v3227_v10, %v3202_v34  ;;  %v3468_v22 = vsub.f32 %v3420_v20, %v6594_v15  ;;  %v2645_v45 = vld [vmem:[#allocation2 + $0x203] sm:$0xff] }
 0x27a   : > { %v3287_v14 = vld [vmem:[#allocation2 + $0x1d4] sm:$0xff]  ;;  %v3043_v52 = vadd.f32 %v3003_v7, %v2963_v58  ;;  %v3044_v12 = vadd.f32 %v3004_v39, %v2964_v25  ;;  %v6142_v19 = vmul.f32 %v3546_v49, %v5928_v32  ;;  %v3083_v4 = vld [vmem:[#allocation2 + $0x1e9] sm:$0xff]  ;;  %v6595_v32 = vsub.f32 %v6066_v40, %v6587_v38 }
 0x27b   : > { %v3084_v46 = vld [vmem:[#allocation2 + $0x1f1] sm:$0xff]  ;;  %v3321_v62 = vadd.f32 %v3261_v57, %v6097_v16  ;;  %v2685_v27 = vld [vmem:[#allocation2 + $0x204] sm:$0xff]  ;;  %4655 = vrcp.f32 %v6139_v11  ;;  %v3322_v56 = vadd.f32 %v3287_v14, %v3262_v29  ;;  %v6596_v16 = vsub.f32 %v6077_v35, %v5831_v37 }
 0x27c   : > { %v6593_v3 = vld [vmem:[#allocation35_spill] sm:$0xff]  ;;  %v3123_v53 = vadd.f32 %v3083_v4, %v3043_v52  ;;  %v3124_v9 = vadd.f32 %v3084_v46, %v3044_v12  ;;  %4657 = vrcp.f32 %v6142_v19  ;;  %v2725_v49 = vadd.f32 %v2685_v27, %v2645_v45  ;;  %v6597_v46 = vld [vmem:[#allocation50_spill] sm:$0xff] }
 0x27d   : > { %v3467_v59 = vsub.f32 %v3419_v18, %v6593_v3  ;;  %v6148_v30 = vld [vmem:[#allocation2 + $0x20b] sm:$0xff]  ;;  %v3540_v24 = vadd.f32 %v3468_v22, %v6596_v16  ;;  %v3347_v2 = vld [vmem:[#allocation2 + $0x1d5] sm:$0xff]  ;;  %v3381_v21 = vadd.f32 %v3321_v62, %v6103_v26  ;;  %v2647_v22 = vld [vmem:[#allocation2 + $0x223] sm:$0xff] }
 0x27e   : > { %v6150_v23 = vld [vmem:[#allocation2 + $0x20c] sm:$0xff]  ;;  %v3382_v39 = vadd.f32 %v3347_v2, %v3322_v56  ;;  %v3288_v37 = vld [vmem:[#allocation2 + $0x1f4] sm:$0xff]  ;;  %v2687_v62 = vld [vmem:[#allocation2 + $0x224] sm:$0xff] }
 0x27f   : > { %v3539_v51 = vadd.f32 %v3467_v59, %v6595_v32  ;;  %v3164_v10 = vld [vmem:[#allocation2 + $0x1f2] sm:$0xff]  ;;  %v3163_v34 = vld [vmem:[#allocation2 + $0x1ea] sm:$0xff]  ;;  %v3548_v57 = vadd.f32 0.0009, %v3540_v24  ;;  %v3421_v47 = vmul.f32 0.008264462, %v3381_v21  ;;  %v2726_v40 = vadd.f32 %v6150_v23, %v6148_v30 }
 0x280   : > { %v3228_v58 = vld [vmem:[#allocation2 + $0x1f3] sm:$0xff]  ;;  %v3203_v25 = vadd.f32 %v3163_v34, %v3123_v53  ;;  %v3204_v7 = vadd.f32 %v3164_v10, %v3124_v9  ;;  %v2765_v18 = vld [vmem:[#allocation2 + $0x205] sm:$0xff]  ;;  %v3422_v38 = vmul.f32 0.008264462, %v3382_v39  ;;  %v3416_v39 = vmul.f32 0.008264462, %v6114_v6 }
 0x281   : > { %v3547_v20 = vadd.f32 0.0009, %v3539_v51  ;;  %v6163_v26 = vld [vmem:[#allocation2 + $0x20d] sm:$0xff]  ;;  %v2805_v29 = vadd.f32 %v2765_v18, %v2725_v49  ;;  %v6169_v12 = vmul.f32 %v3548_v57, %v5955_v61  ;;  %v3469_v3 = vsub.f32 %v3421_v47, %v5949_v5  ;;  %v3348_v32 = vld [vmem:[#allocation2 + $0x1f5] sm:$0xff]  ;;  %v2767_v57 = vld [vmem:[#allocation2 + $0x225] sm:$0xff] }
 0x282   : > { %v3263_v35 = vadd.f32 %v3203_v25, %v6117_v41  ;;  %v3264_v14 = vadd.f32 %v3228_v58, %v3204_v7  ;;  %v2806_v59 = vadd.f32 %v6163_v26, %v2726_v40  ;;  %v2845_v15 = vld [vmem:[#allocation2 + $0x206] sm:$0xff]  ;;  %v3470_v4 = vsub.f32 %v3422_v38, %v6034_v17  ;;  %v2846_v27 = vld [vmem:[#allocation2 + $0x20e] sm:$0xff] }
 0x283   : > { %v6166_v52 = vmul.f32 %v3547_v20, %v6597_v46  ;;  %v2885_v56 = vadd.f32 %v2845_v15, %v2805_v29  ;;  %v6598_v53 = vld [vmem:[#allocation31_spill] sm:$0xff]  ;;  %v3415_v61 = vmul.f32 0.008264462, %v6112_v54  ;;  %v3541_v5 = vadd.f32 %v3469_v3, %v3461_v50  ;;  %v2925_v16 = vld [vmem:[#allocation2 + $0x207] sm:$0xff] }
 0x284   : > { %v3323_v41 = vadd.f32 %v3263_v35, %v6119_v0  ;;  %v3324_v45 = vadd.f32 %v3288_v37, %v3264_v14  ;;  %v3528_v9 = vadd.f32 %v6060_v55, %v6598_v53  ;;  %v2886_v51 = vadd.f32 %v2846_v27, %v2806_v59  ;;  %v2926_v21 = vld [vmem:[#allocation2 + $0x20f] sm:$0xff]  ;;  %v2847_v27 = vld [vmem:[#allocation2 + $0x226] sm:$0xff] }
 0x285   : > { %v6599_v17 = vsub.f32 %v6093_v43, %v6583_v31  ;;  %v6185_v10 = vld [vmem:[#allocation2 + $0x22b] sm:$0xff]  ;;  %v2727_v54 = vadd.f32 %v2687_v62, %v2647_v22  ;;  %4659 = vrcp.f32 %v6166_v52  ;;  %v2965_v42 = vadd.f32 %v2925_v16, %v2885_v56  ;;  %v6191_v25 = vpop.eup %4655  ;;  %v2649_v56 = vld [vmem:[#allocation2 + $0x243] sm:$0xff] }
 0x286   : > { %v3383_v0 = vadd.f32 %v3323_v41, %v6124_v48  ;;  %v3384_v2 = vadd.f32 %v3348_v32, %v3324_v45  ;;  %v6187_v34 = vld [vmem:[#allocation2 + $0x22c] sm:$0xff]  ;;  %v2966_v50 = vadd.f32 %v2926_v21, %v2886_v51  ;;  %4661 = vrcp.f32 %v6169_v12  ;;  %v6194_v7 = vpop.eup %4657 }
 0x287   : > { %v3542_v24 = vadd.f32 %v3470_v4, %v6599_v17  ;;  %v3006_v33 = vld [vmem:[#allocation2 + $0x210] sm:$0xff]  ;;  %v3005_v58 = vld [vmem:[#allocation2 + $0x208] sm:$0xff]  ;;  %v3549_v31 = vadd.f32 0.0009, %v3541_v5  ;;  %v2728_v6 = vadd.f32 %v6187_v34, %v6185_v10  ;;  %v3463_v47 = vsub.f32 %v3415_v61, %v6584_v60 }
 0x288   : > { %v3423_v43 = vmul.f32 0.008264462, %v3383_v0  ;;  %v3424_v48 = vmul.f32 0.008264462, %v3384_v2  ;;  %v3045_v18 = vadd.f32 %v3005_v58, %v2965_v42  ;;  %v3046_v20 = vadd.f32 %v3006_v33, %v2966_v50  ;;  %v3086_v37 = vld [vmem:[#allocation2 + $0x211] sm:$0xff]  ;;  %v3085_v35 = vld [vmem:[#allocation2 + $0x209] sm:$0xff] }
 0x289   : > { %v3550_v49 = vadd.f32 0.0009, %v3542_v24  ;;  %v2807_v14 = vadd.f32 %v2767_v57, %v2727_v54  ;;  %v3534_v29 = vadd.f32 0.0001, %v6056_v44  ;;  %v3569_v46 = vmul.f32 %v6191_v25, %v6139_v11  ;;  %v3166_v62 = vld [vmem:[#allocation2 + $0x212] sm:$0xff]  ;;  %v2689_v61 = vld [vmem:[#allocation2 + $0x244] sm:$0xff] }
 0x28a   : > { %v3471_v40 = vsub.f32 %v3423_v43, %v6048_v1  ;;  %v3472_v38 = vsub.f32 %v3424_v48, %v6060_v55  ;;  %v3125_v3 = vadd.f32 %v3085_v35, %v3045_v18  ;;  %v3126_v59 = vadd.f32 %v3086_v37, %v3046_v20  ;;  %v3165_v55 = vld [vmem:[#allocation2 + $0x20a] sm:$0xff]  ;;  %v3349_v18 = vld [vmem:[#allocation2 + $0x215] sm:$0xff] }
 0x28b   : > { %v3535_v15 = vadd.f32 0.0001, %v6075_v13  ;;  %v3464_v22 = vsub.f32 %v3416_v39, %v6598_v53  ;;  %v6207_v60 = vmul.f32 %v3549_v31, %v5986_v63  ;;  %v6209_v4 = vld [vmem:[#allocation2 + $0x22d] sm:$0xff]  ;;  %v6211_v41 = vmul.f32 %v3550_v49, %v3534_v29 }
 0x28c   : > { %v3543_v1 = vadd.f32 %v3471_v40, %v3463_v47  ;;  %v3205_v44 = vadd.f32 %v3165_v55, %v3125_v3  ;;  %v3206_v45 = vadd.f32 %v3166_v62, %v3126_v59  ;;  %v2808_v11 = vadd.f32 %v6209_v4, %v2728_v6  ;;  %v3229_v53 = vld [vmem:[#allocation2 + $0x213] sm:$0xff]  ;;  %v2927_v2 = vld [vmem:[#allocation2 + $0x227] sm:$0xff] }
 0x28d   : > { %v3536_v13 = vadd.f32 0.0001, %v3528_v9  ;;  %v3544_v5 = vadd.f32 %v3472_v38, %v3464_v22  ;;  %v6216_v63 = vmul.f32 %v6194_v7, %v6142_v19  ;;  %v2848_v32 = vld [vmem:[#allocation2 + $0x22e] sm:$0xff]  ;;  %v2887_v51 = vadd.f32 %v2847_v27, %v2807_v14  ;;  %v2769_v14 = vld [vmem:[#allocation2 + $0x245] sm:$0xff] }
 0x28e   : > { %v3577_v16 = vsub.f32 2.0, %v3569_v46  ;;  %v3265_v17 = vadd.f32 %v3205_v44, %v6148_v30  ;;  %v3266_v24 = vadd.f32 %v3229_v53, %v3206_v45  ;;  %v2888_v0 = vadd.f32 %v2848_v32, %v2808_v11  ;;  %v6219_v21 = vld [vmem:[#allocation2 + $0x24b] sm:$0xff]  ;;  %v3289_v39 = vld [vmem:[#allocation2 + $0x214] sm:$0xff] }
 0x28f   : > { %v6221_v54 = vld [vmem:[#allocation2 + $0x24c] sm:$0xff]  ;;  %4663 = vrcp.f32 %v6207_v60  ;;  %v3551_v9 = vadd.f32 0.0009, %v3543_v1  ;;  %v2967_v42 = vadd.f32 %v2927_v2, %v2887_v51  ;;  %v2729_v19 = vadd.f32 %v2689_v61, %v2649_v56  ;;  %v6224_v50 = vpop.eup %4659 }
 0x290   : > { %v2928_v33 = vld [vmem:[#allocation2 + $0x22f] sm:$0xff]  ;;  %4665 = vrcp.f32 %v6211_v41  ;;  %v3325_v30 = vadd.f32 %v3265_v17, %v6150_v23  ;;  %v3326_v58 = vadd.f32 %v3289_v39, %v3266_v24  ;;  %v6228_v48 = vpop.eup %4661  ;;  %v3552_v49 = vadd.f32 0.0009, %v3544_v5  ;;  %v2849_v45 = vld [vmem:[#allocation2 + $0x246] sm:$0xff] }
 0x291   : > { %v2968_v31 = vadd.f32 %v2928_v33, %v2888_v0  ;;  %v3007_v43 = vld [vmem:[#allocation2 + $0x228] sm:$0xff]  ;;  %v3578_v20 = vsub.f32 2.0, %v6216_v63  ;;  %v3008_v6 = vld [vmem:[#allocation2 + $0x230] sm:$0xff]  ;;  %v2730_v47 = vadd.f32 %v6221_v54, %v6219_v21  ;;  %v6235_v37 = vmul.f32 %v6191_v25, %v3577_v16  ;;  %v6600_v5 = vld [vmem:[#allocation17_spill] sm:$0xff] }
 0x292   : > { %v3047_v57 = vadd.f32 %v3007_v43, %v2967_v42  ;;  %v3385_v40 = vadd.f32 %v3325_v30, %v6163_v26  ;;  %v3386_v38 = vadd.f32 %v3349_v18, %v3326_v58  ;;  %v3087_v35 = vld [vmem:[#allocation2 + $0x229] sm:$0xff]  ;;  %v3571_v29 = vmul.f32 %v6224_v50, %v6166_v52  ;;  %v3088_v3 = vld [vmem:[#allocation2 + $0x231] sm:$0xff]  ;;  %v6601_v63 = vld [vmem:[#allocation21_spill] sm:$0xff] }
 0x293   : > { %v3048_v23 = vadd.f32 %v3008_v6, %v2968_v31  ;;  %v6239_v46 = vmul.f32 %v3551_v9, %v3535_v15  ;;  %v6241_v22 = vld [vmem:[#allocation2 + $0x24d] sm:$0xff]  ;;  %v2809_v1 = vadd.f32 %v2769_v14, %v2729_v19  ;;  %v6244_v11 = vmul.f32 %v3552_v49, %v3536_v13  ;;  %v2651_v30 = vld [vmem:[#allocation2 + $0x263] sm:$0xff] }
 0x294   : > { %v3127_v59 = vadd.f32 %v3087_v35, %v3047_v57  ;;  %v3425_v62 = vmul.f32 0.008264462, %v3385_v40  ;;  %v3426_v55 = vmul.f32 0.008264462, %v3386_v38  ;;  %v3167_v44 = vld [vmem:[#allocation2 + $0x22a] sm:$0xff]  ;;  %v2810_v25 = vadd.f32 %v6241_v22, %v2730_v47  ;;  %v3168_v27 = vld [vmem:[#allocation2 + $0x232] sm:$0xff] }
 0x295   : > { %v3128_v26 = vadd.f32 %v3088_v3, %v3048_v23  ;;  %v6248_v52 = vmul.f32 %v6228_v48, %v6169_v12  ;;  %v2850_v15 = vld [vmem:[#allocation2 + $0x24e] sm:$0xff]  ;;  %v2889_v61 = vadd.f32 %v2849_v45, %v2809_v1  ;;  %v3579_v24 = vsub.f32 2.0, %v3571_v29  ;;  %v2691_v58 = vld [vmem:[#allocation2 + $0x264] sm:$0xff]  ;;  %v6602_v1 = vld [vmem:[#allocation40_spill] sm:$0xff] }
 0x296   : > { %v3207_v56 = vadd.f32 %v3167_v44, %v3127_v59  ;;  %v3473_v53 = vsub.f32 %v3425_v62, %v6600_v5  ;;  %v3474_v32 = vsub.f32 %v3426_v55, %v6601_v63  ;;  %v2890_v16 = vadd.f32 %v2850_v15, %v2810_v25  ;;  %v2929_v17 = vld [vmem:[#allocation2 + $0x247] sm:$0xff]  ;;  %v3230_v13 = vld [vmem:[#allocation2 + $0x233] sm:$0xff] }
 0x297   : > { %v3208_v51 = vadd.f32 %v3168_v27, %v3128_v26  ;;  %4667 = vrcp.f32 %v6239_v46  ;;  %v2930_v2 = vld [vmem:[#allocation2 + $0x24f] sm:$0xff]  ;;  %v2969_v9 = vadd.f32 %v2929_v17, %v2889_v61  ;;  %v3586_v43 = vmul.f32 %v6194_v7, %v3578_v20  ;;  %v6603_v55 = vld [vmem:[#allocation48_spill] sm:$0xff] }
 0x298   : > { %v3267_v0 = vadd.f32 %v3207_v56, %v6185_v10  ;;  %v3497_v39 = vmul.f32 2.0, %v3473_v53  ;;  %v3498_v12 = vmul.f32 2.0, %v3474_v32  ;;  %v2970_v42 = vadd.f32 %v2930_v2, %v2890_v16  ;;  %v3009_v19 = vld [vmem:[#allocation2 + $0x248] sm:$0xff]  ;;  %v3290_v49 = vld [vmem:[#allocation2 + $0x234] sm:$0xff] }
 0x299   : > { %v3268_v33 = vadd.f32 %v3230_v13, %v3208_v51  ;;  %v6254_v31 = vpop.eup %4663  ;;  %4669 = vrcp.f32 %v6244_v11  ;;  %v3010_v6 = vld [vmem:[#allocation2 + $0x250] sm:$0xff]  ;;  %v3049_v10 = vadd.f32 %v3009_v19, %v2969_v9  ;;  %v3580_v7 = vsub.f32 2.0, %v6248_v52  ;;  %v2771_v51 = vld [vmem:[#allocation2 + $0x265] sm:$0xff] }
 0x29a   : > { %v3327_v18 = vadd.f32 %v3267_v0, %v6187_v34  ;;  %v3089_v57 = vld [vmem:[#allocation2 + $0x249] sm:$0xff]  ;;  %v6259_v47 = vpop.eup %4665  ;;  %v3505_v40 = vadd.f32 0.0009, %v3497_v39  ;;  %v3506_v38 = vadd.f32 0.0009, %v3498_v12  ;;  %v3050_v35 = vadd.f32 %v3010_v6, %v2970_v42  ;;  %v3350_v3 = vld [vmem:[#allocation2 + $0x235] sm:$0xff] }
 0x29b   : > { %v3328_v23 = vadd.f32 %v3290_v49, %v3268_v33  ;;  %v6261_v14 = vld [vmem:[#allocation2 + $0x26b] sm:$0xff]  ;;  %v3129_v20 = vadd.f32 %v3089_v57, %v3049_v10  ;;  %v2731_v34 = vadd.f32 %v2691_v58, %v2651_v30  ;;  %v3587_v25 = vmul.f32 %v6224_v50, %v3579_v24  ;;  %v6604_v50 = vld [vmem:[#allocation37_spill] sm:$0xff]  ;;  %v3291_v6 = vld [vmem:[#allocation2 + $0x254] sm:$0xff] }
 0x29c   : > { %v6263_v29 = vld [vmem:[#allocation2 + $0x26c] sm:$0xff]  ;;  %v3387_v59 = vadd.f32 %v3327_v18, %v6209_v4  ;;  %v3513_v62 = vmul.f32 %v3505_v40, %v6602_v1  ;;  %v3514_v26 = vmul.f32 %v3506_v38, %v6603_v55  ;;  %v6274_v4 = vmul.f32 %v6254_v31, %v6207_v60  ;;  %v6606_v55 = vld [vmem:[#allocation49_spill] sm:$0xff] }
 0x29d   : > { %v3388_v44 = vadd.f32 %v3350_v3, %v3328_v23  ;;  %v3090_v45 = vld [vmem:[#allocation2 + $0x251] sm:$0xff]  ;;  %v2732_v5 = vadd.f32 %v6263_v29, %v6261_v14  ;;  %v2811_v0 = vadd.f32 %v2771_v51, %v2731_v34  ;;  %v2851_v58 = vld [vmem:[#allocation2 + $0x266] sm:$0xff]  ;;  %v3588_v18 = vmul.f32 %v6228_v48, %v3580_v7 }
 0x29e   : > { %v3169_v27 = vld [vmem:[#allocation2 + $0x24a] sm:$0xff]  ;;  %v3427_v56 = vmul.f32 0.008264462, %v3387_v59  ;;  %v3130_v15 = vadd.f32 %v3090_v45, %v3050_v35  ;;  %v3593_v52 = vmul.f32 %v6235_v37, %v3513_v62  ;;  %v3594_v53 = vmul.f32 %v3586_v43, %v3514_v26  ;;  %v3170_v32 = vld [vmem:[#allocation2 + $0x252] sm:$0xff] }
 0x29f   : > { %v3209_v61 = vadd.f32 %v3169_v27, %v3129_v20  ;;  %v3428_v63 = vmul.f32 0.008264462, %v3388_v44  ;;  %v6279_v13 = vld [vmem:[#allocation2 + $0x26d] sm:$0xff]  ;;  %v2891_v10 = vadd.f32 %v2851_v58, %v2811_v0  ;;  %v3574_v1 = vmul.f32 %v6259_v47, %v6211_v41 }
 0x2a0   : > { %v3475_v16 = vsub.f32 %v3427_v56, %v6604_v50  ;;  %v3210_v17 = vadd.f32 %v3170_v32, %v3130_v15  ;;  %v3601_v2 = vsel %vm276_vm0, %v3593_v52, 0.0  ;;  %v3602_v60 = vsel %vm276_vm0, %v3594_v53, 0.0  ;;  %v6605_v9 = vld [vmem:[#allocation47_spill] sm:$0xff]  ;;  %v2931_v59 = vld [vmem:[#allocation2 + $0x267] sm:$0xff] }
 0x2a1   : > { %v3269_v24 = vadd.f32 %v3209_v61, %v6219_v21  ;;  %v3476_v39 = vsub.f32 %v3428_v63, %v6605_v9  ;;  %v3231_v37 = vld [vmem:[#allocation2 + $0x253] sm:$0xff]  ;;  %v2812_v12 = vadd.f32 %v6279_v13, %v2732_v5  ;;  %v6285_v33 = vpop.eup %4667  ;;  %v3603_v42 = vadd.f32 %v3602_v60, %v3601_v2  ;;  %v3011_v56 = vld [vmem:[#allocation2 + $0x268] sm:$0xff] }
 0x2a2   : > { %v3499_v19 = vmul.f32 2.0, %v3475_v16  ;;  %v3270_v21 = vadd.f32 %v3231_v37, %v3210_v17  ;;  %v2852_v43 = vld [vmem:[#allocation2 + $0x26e] sm:$0xff]  ;;  %v2971_v62 = vadd.f32 %v2931_v59, %v2891_v10  ;;  %v3582_v16 = vsub.f32 2.0, %v3574_v1  ;;  %v6611_v59 = vld [vmem:[#allocation33_spill] sm:$0xff]  ;;  %v6612_v1 = vld [vmem:[#allocation28_spill] sm:$0xff] }
 0x2a3   : > { %v3329_v30 = vadd.f32 %v3269_v24, %v6221_v54  ;;  %v3500_v49 = vmul.f32 2.0, %v3476_v39  ;;  %v2892_v57 = vadd.f32 %v2852_v43, %v2812_v12  ;;  %v6293_v40 = vpop.eup %4669  ;;  %v3604_v38 = vrot.slane %v3603_v42, 4  ;;  %v2932_v20 = vld [vmem:[#allocation2 + $0x26f] sm:$0xff] }
 0x2a4   : > { %v3507_v23 = vadd.f32 0.0009, %v3499_v19  ;;  %v3330_v35 = vadd.f32 %v3291_v6, %v3270_v21  ;;  %v3351_v54 = vld [vmem:[#allocation2 + $0x255] sm:$0xff]  ;;  %v3051_v61 = vadd.f32 %v3011_v56, %v2971_v62  ;;  %v3091_v51 = vld [vmem:[#allocation2 + $0x269] sm:$0xff] }
 0x2a5   : > { %v3389_v3 = vadd.f32 %v3329_v30, %v6241_v22  ;;  %v3508_v34 = vadd.f32 0.0009, %v3500_v49  ;;  %v2972_v48 = vadd.f32 %v2932_v20, %v2892_v57  ;;  %v3605_v7 = vadd.f32 %v3604_v38, %v3603_v42  ;;  %v3012_v27 = vld [vmem:[#allocation2 + $0x270] sm:$0xff]  ;;  %v6607_v6 = vld [vmem:[#allocation26_spill] sm:$0xff]  ;;  %v6608_v38 = vld [vmem:[#allocation13_spill] sm:$0xff] }
 0x2a6   : > { %v3515_v26 = vmul.f32 %v3507_v23, %v6606_v55  ;;  %v3390_v44 = vadd.f32 %v3351_v54, %v3330_v35  ;;  %v3581_v22 = vsub.f32 2.0, %v6274_v4  ;;  %v3092_v32 = vld [vmem:[#allocation2 + $0x271] sm:$0xff]  ;;  %v3131_v17 = vadd.f32 %v3091_v51, %v3051_v61 }
 0x2a7   : > { %v3429_v45 = vmul.f32 0.008264462, %v3389_v3  ;;  %v3516_v15 = vmul.f32 %v3508_v34, %v5947_v28  ;;  %v3052_v5 = vadd.f32 %v3012_v27, %v2972_v48  ;;  %v3606_v52 = vrot.slane %v3605_v7, 2  ;;  %v3172_v60 = vld [vmem:[#allocation2 + $0x272] sm:$0xff]  ;;  %v3171_v9 = vld [vmem:[#allocation2 + $0x26a] sm:$0xff] }
 0x2a8   : > { %v3595_v53 = vmul.f32 %v3587_v25, %v3515_v26  ;;  %v3430_v41 = vmul.f32 0.008264462, %v3390_v44  ;;  %v3211_v39 = vadd.f32 %v3171_v9, %v3131_v17  ;;  %v3232_v30 = vld [vmem:[#allocation2 + $0x273] sm:$0xff]  ;;  %v6610_v3 = vld [vmem:[#allocation14_spill] sm:$0xff]  ;;  %v3576_v44 = vmul.f32 %v6293_v40, %v6244_v11 }
 0x2a9   : > { %v3477_v63 = vsub.f32 %v3429_v45, %v5945_v36  ;;  %v3596_v50 = vmul.f32 %v3588_v18, %v3516_v15  ;;  %v3132_v24 = vadd.f32 %v3092_v32, %v3052_v5  ;;  %v3607_v0 = vadd.f32 %v3606_v52, %v3605_v7  ;;  %v3292_v57 = vld [vmem:[#allocation2 + $0x274] sm:$0xff] }
 0x2aa   : > { %v3610_v4 = vsel %vm276_vm0, %v3595_v53, 0.0  ;;  %v3478_v28 = vsub.f32 %v3430_v41, %v5959_v8  ;;  %v3589_v36 = vmul.f32 %v6254_v31, %v3581_v22  ;;  %v3590_v8 = vmul.f32 %v6259_v47, %v3582_v16  ;;  %v6609_v23 = vld [vmem:[#allocation12_spill] sm:$0xff] }
 0x2ab   : > { %v3501_v2 = vmul.f32 2.0, %v3477_v63  ;;  %v3611_v25 = vsel %vm276_vm0, %v3596_v50, 0.0  ;;  %v3212_v37 = vadd.f32 %v3172_v60, %v3132_v24  ;;  %v3608_v12 = vrot.slane %v3607_v0, 1  ;;  %v3352_v7 = vld [vmem:[#allocation2 + $0x275] sm:$0xff] }
 0x2ac   : > { %v3612_v42 = vadd.f32 %v3611_v25, %v3610_v4  ;;  %v3502_v19 = vmul.f32 2.0, %v3478_v28  ;;  %v3271_v58 = vadd.f32 %v3211_v39, %v6261_v14  ;;  %v3455_v35 = vmul.f32 %v6609_v23, %v6608_v38 }
 0x2ad   : > { %v3509_v21 = vadd.f32 0.0009, %v3501_v2  ;;  %v3272_v43 = vadd.f32 %v3232_v30, %v3212_v37  ;;  %v3609_v31 = vadd.f32 %v3608_v12, %v3607_v0  ;;  %v3456_v20 = vmul.f32 %v6611_v59, %v6610_v3 }
 0x2ae   : > { %v3613_v49 = vrot.slane %v3612_v42, 4  ;;  %v3510_v18 = vadd.f32 0.0009, %v3502_v19  ;;  %v3331_v34 = vadd.f32 %v3271_v58, %v6263_v29  ;;  %v3575_v47 = vmul.f32 %v6285_v33, %v6239_v46 }
 0x2af   : > { %v3517_v10 = vmul.f32 %v3509_v21, %v6607_v6  ;;  %v3332_v54 = vadd.f32 %v3292_v57, %v3272_v43  ;;  %3638 = vst.msk [vmem:[%s6313_s9] sm:$0x1] %vm3637_vm1, %v3609_v31  ;;  %v3487_v56 = vmul.f32 2.0, %v3455_v35  ;;  %v3488_v15 = vmul.f32 2.0, %v3456_v20 }
 0x2b0   : > { %v3614_v14 = vadd.f32 %v3613_v49, %v3612_v42  ;;  %v3518_v62 = vmul.f32 %v3510_v18, %v6612_v1  ;;  %v3391_v55 = vadd.f32 %v3331_v34, %v6279_v13  ;;  %v3583_v61 = vsub.f32 2.0, %v3575_v47 }
 0x2b1   : > { %v3597_v48 = vmul.f32 %v3589_v36, %v3517_v10  ;;  %v3392_v26 = vadd.f32 %v3352_v7, %v3332_v54  ;;  %v3584_v63 = vsub.f32 2.0, %v3576_v44  ;;  %v3495_v16 = vadd.f32 0.0001, %v3487_v56 }
 0x2b2   : > { %v3615_v45 = vrot.slane %v3614_v14, 2  ;;  %v3598_v27 = vmul.f32 %v3590_v8, %v3518_v62  ;;  %v3431_v22 = vmul.f32 0.008264462, %v3391_v55  ;;  %v3496_v17 = vadd.f32 0.0001, %v3488_v15 }
 0x2b3   : > { %v3619_v29 = vsel %vm276_vm0, %v3597_v48, 0.0  ;;  %v3432_v46 = vmul.f32 0.008264462, %v3392_v26  ;;  %v3591_v0 = vmul.f32 %v6285_v33, %v3583_v61  ;;  %v3592_v60 = vmul.f32 %v6293_v40, %v3584_v63 }
 0x2b4   : > { %v3616_v5 = vadd.f32 %v3615_v45, %v3614_v14  ;;  %v3620_v52 = vsel %vm276_vm0, %v3598_v27, 0.0  ;;  %v3479_v41 = vsub.f32 %v3431_v22, %v3455_v35 }
 0x2b5   : > { %v3621_v53 = vadd.f32 %v3620_v52, %v3619_v29  ;;  %v3480_v13 = vsub.f32 %v3432_v46, %v3456_v20 }
 0x2b6   : > { %v3617_v32 = vrot.slane %v3616_v5, 1  ;;  %v3503_v11 = vmul.f32 2.0, %v3479_v41 }
 0x2b7   : > { %v3622_v51 = vrot.slane %v3621_v53, 4  ;;  %v3504_v50 = vmul.f32 2.0, %v3480_v13 }
 0x2b8   : > { %v3618_v24 = vadd.f32 %v3617_v32, %v3616_v5  ;;  %v3511_v28 = vadd.f32 0.0009, %v3503_v11 }
 0x2b9   : > { %v3623_v4 = vadd.f32 %v3622_v51, %v3621_v53  ;;  %v3512_v2 = vadd.f32 0.0009, %v3504_v50 }
 0x2ba   : > { %3639 = vst.msk [vmem:[%s6313_s9 + $0x1] sm:$0x1] %vm3637_vm1, %v3618_v24  ;;  %v3519_v25 = vmul.f32 %v3511_v28, %v3495_v16 }
 0x2bb   : > { %v3624_v9 = vrot.slane %v3623_v4, 2  ;;  %v3520_v36 = vmul.f32 %v3512_v2, %v3496_v17 }
 0x2bc   : > { %v3599_v37 = vmul.f32 %v3591_v0, %v3519_v25 }
 0x2bd   : > { %v3625_v39 = vadd.f32 %v3624_v9, %v3623_v4  ;;  %v3600_v12 = vmul.f32 %v3592_v60, %v3520_v36 }
 0x2be   : > { %v3628_v19 = vsel %vm276_vm0, %v3599_v37, 0.0 }
 0x2bf   : > { %v3626_v42 = vrot.slane %v3625_v39, 1  ;;  %v3629_v33 = vsel %vm276_vm0, %v3600_v12, 0.0 }
 0x2c0   : > { %v3630_v21 = vadd.f32 %v3629_v33, %v3628_v19 }
 0x2c1   : > { %v3627_v30 = vadd.f32 %v3626_v42, %v3625_v39 }
 0x2c2   : > { %v3631_v8 = vrot.slane %v3630_v21, 4 }
 0x2c3   : > { %3640 = vst.msk [vmem:[%s6313_s9 + $0x2] sm:$0x1] %vm3637_vm1, %v3627_v30 }
 0x2c4   : > { %v3632_v40 = vadd.f32 %v3631_v8, %v3630_v21 }
 0x2c6   : > { %v3633_v58 = vrot.slane %v3632_v40, 2 }
 0x2c8   : > { %v3634_v43 = vadd.f32 %v3633_v58, %v3632_v40 }
 0x2ca   : > { %v3635_v31 = vrot.slane %v3634_v43, 1 }
 0x2cc   : > { %v3636_v49 = vadd.f32 %v3635_v31, %v3634_v43 }
 0x2ce   : > { %3641 = vst.msk [vmem:[%s6313_s9 + $0x3] sm:$0x1] %vm3637_vm1, %v3636_v49 }
 0x2cf PF: > { %p16_p11 = scmp.ge.s32.totalorder %s4816_s17, 4   ;;  %s6613_s12 = smov %s4761_s13 }
 0x2d0   : > { %s6614_s13 = smov %s4765_s14  ;;  %s6615_s14 = smov %s4826_s20 }
 0x2d1   : > { %s6616_s15 = smov %s4816_s17  ;;  %18 = sbr.rel (!%p16_p11) target bundleno = 5 (0x5), region = 85 }
 0x2d8   :  { %3662 = vsyncpa [#allocation4], 1 }
 0x2d9   :  { %3664 = vsyncpa [#allocation4 + $0x1], 1 }
 0x2da   :  { %3665 = vsyncpa [#allocation6], 1 }
 0x2db   :  { %3667 = vsyncpa [#allocation6 + $0x1], 1 }

</bundles_post_ra>
